<compile_context>
chip_gen: v5e
topology: v5e:2x2
jax: 0.10.0
libtpu: 0.0.40
codegen_flags: <defaults>
</compile_context>

<pallas_src>
import functools
import math

import jax
import jax.numpy as jnp
from jax.experimental import pallas as pl
from jax.experimental.pallas import tpu as pltpu  # noqa: F401  (TPU backend)

# ----------------------------------------------------------------------------
# Scaled-down model configuration (mirrors SIZES[size] of the reference code).
# ----------------------------------------------------------------------------
SIZES = {
    "medium": dict(d_model=32, nhead=2, num_encoder_layers=1,
                   num_decoder_layers=1, dim_feedforward=64),
}
SIZE = "medium"
D_MODEL = SIZES[SIZE]["d_model"]
N_HEAD = SIZES[SIZE]["nhead"]
N_ENC = SIZES[SIZE]["num_encoder_layers"]
N_DEC = SIZES[SIZE]["num_decoder_layers"]
DIM_FF = SIZES[SIZE]["dim_feedforward"]
D_HEAD = D_MODEL // N_HEAD

STATE_SIZE = 16          # np.prod(observation_shape.state)
ACTION_SIZE = 4
T_STEPS = 8
BATCH = 2
DEMO_LEN = 8

NEG_INF = -1e9           # bf16-safe "−inf" for the causal mask


# ----------------------------------------------------------------------------
# In-kernel helpers (traced inside the fused kernels; everything stays in
# vregs — no HBM round trips between sub-modules).
# ----------------------------------------------------------------------------
def _bf16(x):
    return x.astype(jnp.bfloat16)


def _layer_norm(x, ln):
    """x: (M, d) f32; ln: (2, d) f32 with row0=gamma, row1=beta."""
    mean = jnp.mean(x, axis=-1, keepdims=True)
    cen = x - mean
    var = jnp.mean(cen * cen, axis=-1, keepdims=True)
    return cen * jax.lax.rsqrt(var + 1e-5) * ln[0:1, :] + ln[1:2, :]


def _attention_heads(q2, k2, v2, mask, B, Sq, Sk, wo, bo):
    """Multi-head attention on batch-major flattened rows.

    q2: (B*Sq, d); k2, v2: (B*Sk, d) f32.  mask: (Sq, Sk) additive or None.
    wo: (d, d) bf16, bo: (1, d) f32.  Head outputs are merged into the output
    projection by accumulating o_h @ wo[h*dh:(h+1)*dh, :] (identical to
    concat(o_h) @ wo, but avoids a lane concatenate).
    """
    dh = D_HEAD
    scale = 1.0 / math.sqrt(dh)
    acc = None
    for h in range(N_HEAD):                      # statically unrolled (N_HEAD=2)
        q = q2[:, h * dh:(h + 1) * dh].reshape(B, Sq, dh)
        k = k2[:, h * dh:(h + 1) * dh].reshape(B, Sk, dh)
        v = v2[:, h * dh:(h + 1) * dh].reshape(B, Sk, dh)
        s = jnp.einsum("bqd,bkd->bqk", _bf16(q), _bf16(k),
                       preferred_element_type=jnp.float32) * scale
        if mask is not None:
            s = s + mask[None, :, :]
        s = s - jnp.max(s, axis=-1, keepdims=True)
        p = jnp.exp(s)
        p = p / jnp.sum(p, axis=-1, keepdims=True)
        o = jnp.einsum("bqk,bkd->bqd", _bf16(p), _bf16(v),
                       preferred_element_type=jnp.float32)
        o2 = o.reshape(B * Sq, dh)
        part = jnp.dot(_bf16(o2), wo[h * dh:(h + 1) * dh, :],
                       preferred_element_type=jnp.float32)
        acc = part if acc is None else acc + part
    return acc + bo


def _gru_gate(x2, y2, w3, u2, ug, bg):
    """GTrXL GRU gating (replaces the residual). x2, y2: (M, d) f32.

    w3 = [Wr|Wz|Wg] (d,3d) bf16; u2 = [Ur|Uz] (d,2d) bf16; ug = Ug (d,d) bf16.
    Ug is kept separate because it acts on (r * x), not x.
    """
    d = x2.shape[-1]
    y2 = jnp.maximum(y2, 0.0)          # "reordered": ReLU on submodule output
    yw = jnp.dot(_bf16(y2), w3, preferred_element_type=jnp.float32)    # (M,3d)
    xu = jnp.dot(_bf16(x2), u2, preferred_element_type=jnp.float32)    # (M,2d)
    r = jax.nn.sigmoid(yw[:, :d] + xu[:, :d])
    z = jax.nn.sigmoid(yw[:, d:2 * d] + xu[:, d:2 * d] - bg)
    h = jnp.tanh(yw[:, 2 * d:3 * d] +
                 jnp.dot(_bf16(r * x2), ug, preferred_element_type=jnp.float32))
    return (1.0 - z) * x2 + z * h


def _ffn(h2, w1, b1, w2, b2):
    f = jnp.dot(_bf16(h2), w1, preferred_element_type=jnp.float32) + b1
    f = jnp.maximum(f, 0.0)
    return jnp.dot(_bf16(f), w2, preferred_element_type=jnp.float32) + b2


# ----------------------------------------------------------------------------
# Fused Pallas kernels (one pallas_call per block below)
# ----------------------------------------------------------------------------
def _state_transform_kernel(x_ref, w_ref, b_ref, o_ref):
    y = jnp.dot(_bf16(x_ref[...]), w_ref[...],
                preferred_element_type=jnp.float32) + b_ref[...]
    o_ref[...] = y.astype(o_ref.dtype)


def _encoder_layer_kernel(x_ref,
                          ln1_ref, wqkv_ref, bqkv_ref, wo_ref, bo_ref,
                          g1w_ref, g1u_ref, g1ug_ref, g1b_ref,
                          ln2_ref, ffw1_ref, ffb1_ref, ffw2_ref, ffb2_ref,
                          g2w_ref, g2u_ref, g2ug_ref, g2b_ref,
                          o_ref, *, B, S):
    d = D_MODEL
    x = x_ref[...]                                       # (B*S, d), batch-major
    # ---- self-attention sublayer (pre-LN, ReLU + GRU gate) ----
    h = _layer_norm(x, ln1_ref[...])
    qkv = jnp.dot(_bf16(h), wqkv_ref[...],
                  preferred_element_type=jnp.float32) + bqkv_ref[...]
    y = _attention_heads(qkv[:, :d], qkv[:, d:2 * d], qkv[:, 2 * d:],
                         None, B, S, S, wo_ref[...], bo_ref[...])
    x = _gru_gate(x, y, g1w_ref[...], g1u_ref[...], g1ug_ref[...], g1b_ref[...])
    # ---- feed-forward sublayer ----
    h = _layer_norm(x, ln2_ref[...])
    y = _ffn(h, ffw1_ref[...], ffb1_ref[...], ffw2_ref[...], ffb2_ref[...])
    x = _gru_gate(x, y, g2w_ref[...], g2u_ref[...], g2ug_ref[...], g2b_ref[...])
    o_ref[...] = x.astype(o_ref.dtype)


def _decoder_layer_kernel(x_ref, mem_ref, mask_ref,
                          ln1_ref, sa_wqkv_ref, sa_bqkv_ref, sa_wo_ref, sa_bo_ref,
                          g1w_ref, g1u_ref, g1ug_ref, g1b_ref,
                          ln2_ref, ca_wq_ref, ca_bq_ref, ca_wkv_ref, ca_bkv_ref,
                          ca_wo_ref, ca_bo_ref,
                          g2w_ref, g2u_ref, g2ug_ref, g2b_ref,
                          ln3_ref, ffw1_ref, ffb1_ref, ffw2_ref, ffb2_ref,
                          g3w_ref, g3u_ref, g3ug_ref, g3b_ref,
                          o_ref, *, B, St, Ss):
    d = D_MODEL
    x = x_ref[...]                                       # (B*St, d)
    mem = mem_ref[...]                                   # (B*Ss, d)
    mask = mask_ref[...]                                 # (St, St) additive
    # ---- masked self-attention ----
    h = _layer_norm(x, ln1_ref[...])
    qkv = jnp.dot(_bf16(h), sa_wqkv_ref[...],
                  preferred_element_type=jnp.float32) + sa_bqkv_ref[...]
    y = _attention_heads(qkv[:, :d], qkv[:, d:2 * d], qkv[:, 2 * d:],
                         mask, B, St, St, sa_wo_ref[...], sa_bo_ref[...])
    x = _gru_gate(x, y, g1w_ref[...], g1u_ref[...], g1ug_ref[...], g1b_ref[...])
    # ---- cross-attention over encoder memory (no mask) ----
    h = _layer_norm(x, ln2_ref[...])
    q = jnp.dot(_bf16(h), ca_wq_ref[...],
                preferred_element_type=jnp.float32) + ca_bq_ref[...]
    kv = jnp.dot(_bf16(mem), ca_wkv_ref[...],
                 preferred_element_type=jnp.float32) + ca_bkv_ref[...]
    y = _attention_heads(q, kv[:, :d], kv[:, d:2 * d],
                         None, B, St, Ss, ca_wo_ref[...], ca_bo_ref[...])
    x = _gru_gate(x, y, g2w_ref[...], g2u_ref[...], g2ug_ref[...], g2b_ref[...])
    # ---- feed-forward ----
    h = _layer_norm(x, ln3_ref[...])
    y = _ffn(h, ffw1_ref[...], ffb1_ref[...], ffw2_ref[...], ffb2_ref[...])
    x = _gru_gate(x, y, g3w_ref[...], g3u_ref[...], g3ug_ref[...], g3b_ref[...])
    o_ref[...] = x.astype(o_ref.dtype)


def _mlp_head_kernel(x_ref, w1_ref, b1_ref, w2_ref, b2_ref, w3_ref, b3_ref,
                     o_ref):
    h = jnp.dot(_bf16(x_ref[...]), w1_ref[...],
                preferred_element_type=jnp.float32) + b1_ref[...]
    h = jnp.maximum(h, 0.0)
    h = jnp.dot(_bf16(h), w2_ref[...],
                preferred_element_type=jnp.float32) + b2_ref[...]
    h = jnp.maximum(h, 0.0)
    o = jnp.dot(_bf16(h), w3_ref[...],
                preferred_element_type=jnp.float32) + b3_ref[...]
    o_ref[...] = o.astype(o_ref.dtype)


# ----------------------------------------------------------------------------
# Kernel wrappers (one launch each; full arrays resident in VMEM)
# ----------------------------------------------------------------------------
def state_transform(x, w, b):
    M = x.shape[0]
    return pl.pallas_call(
        _state_transform_kernel,
        out_shape=jax.ShapeDtypeStruct((M, D_MODEL), jnp.float32),
    )(x, w, b)


def encoder_layer(x, p, B, S):
    M, d = x.shape
    return pl.pallas_call(
        functools.partial(_encoder_layer_kernel, B=B, S=S),
        out_shape=jax.ShapeDtypeStruct((M, d), jnp.float32),
    )(x,
      p["ln1"], p["wqkv"], p["bqkv"], p["wo"], p["bo"],
      p["g1_w"], p["g1_u"], p["g1_ug"], p["g1_b"],
      p["ln2"], p["ff_w1"], p["ff_b1"], p["ff_w2"], p["ff_b2"],
      p["g2_w"], p["g2_u"], p["g2_ug"], p["g2_b"])


def decoder_layer(x, memory, p, tgt_mask, B, St, Ss):
    M, d = x.shape
    return pl.pallas_call(
        functools.partial(_decoder_layer_kernel, B=B, St=St, Ss=Ss),
        out_shape=jax.ShapeDtypeStruct((M, d), jnp.float32),
    )(x, memory, tgt_mask,
      p["ln1"], p["sa_wqkv"], p["sa_bqkv"], p["sa_wo"], p["sa_bo"],
      p["g1_w"], p["g1_u"], p["g1_ug"], p["g1_b"],
      p["ln2"], p["ca_wq"], p["ca_bq"], p["ca_wkv"], p["ca_bkv"],
      p["ca_wo"], p["ca_bo"],
      p["g2_w"], p["g2_u"], p["g2_ug"], p["g2_b"],
      p["ln3"], p["ff_w1"], p["ff_b1"], p["ff_w2"], p["ff_b2"],
      p["g3_w"], p["g3_u"], p["g3_ug"], p["g3_b"])


def mlp_head(x, params):
    M = x.shape[0]
    return pl.pallas_call(
        _mlp_head_kernel,
        out_shape=jax.ShapeDtypeStruct((M, 2 * ACTION_SIZE), jnp.float32),
    )(x, params["mlp_w1"], params["mlp_b1"],
      params["mlp_w2"], params["mlp_b2"],
      params["mlp_w3"], params["mlp_b3"])


# ----------------------------------------------------------------------------
# Forward pass (T > 1 training branch)
# ----------------------------------------------------------------------------
def generate_square_subsequent_mask(n):
    i = jnp.arange(n)[:, None]
    j = jnp.arange(n)[None, :]
    return jnp.where(j <= i, 0.0, NEG_INF).astype(jnp.float32)


def pi_transformer_forward(params, state, demonstration, prev_action=None,
                           prev_reward=None, rnn_state=None):
    """state: (T, B, state_size); demonstration: (T, B, demo_len, state_size).

    Returns (mu, log_std, rnn_state=None) with mu/log_std: (T, B, action_size).
    """
    del prev_action, prev_reward, rnn_state
    T, B = state.shape[:2]
    # demonstration.view(T, B, -1, state_size)[0]  -> (B, L, state_size)
    demo = demonstration.reshape(T, B, -1, STATE_SIZE)[0]
    L = demo.shape[1]

    # Batch-major row flattening (b outer, s inner) so in-kernel reshapes
    # (B*S, d) <-> (B, S, d) are layout-preserving.
    src_rows = demo.reshape(B * L, STATE_SIZE)
    tgt_rows = jnp.transpose(state, (1, 0, 2)).reshape(B * T, STATE_SIZE)

    # state_transform for source AND target rows in a single launch.
    st_out = state_transform(jnp.concatenate([src_rows, tgt_rows], axis=0),
                             params["st_w"], params["st_b"])
    memory = st_out[:B * L]
    out = st_out[B * L:]

    tgt_mask = generate_square_subsequent_mask(T)

    for lp in params["encoder"]:
        memory = encoder_layer(memory, lp, B, L)
    for lp in params["decoder"]:
        out = decoder_layer(out, memory, lp, tgt_mask, B, T, L)

    o = mlp_head(out, params)                            # (B*T, 2A)
    o = o.reshape(B, T, 2 * ACTION_SIZE).transpose(1, 0, 2)   # (T, B, 2A)
    mu = o[..., :ACTION_SIZE]
    log_std = o[..., ACTION_SIZE:]
    return mu, log_std, None


# ----------------------------------------------------------------------------
# Deterministic synthetic parameter initialization (bf16 matmul weights,
# f32 biases / LayerNorm params; QKV and GRU-gate weights pre-concatenated).
# ----------------------------------------------------------------------------
def _w(key, din, dout, scale=0.05):
    return (scale * jax.random.normal(key, (din, dout), jnp.float32)
            ).astype(jnp.bfloat16)


def _bias(dout):
    return jnp.zeros((1, dout), jnp.float32)


def _ln_param(d):
    return jnp.concatenate([jnp.ones((1, d), jnp.float32),
                            jnp.zeros((1, d), jnp.float32)], axis=0)  # (2, d)


def _mha_self_params(key, d):
    ks = jax.random.split(key, 4)
    wqkv = jnp.concatenate([_w(ks[0], d, d), _w(ks[1], d, d), _w(ks[2], d, d)],
                           axis=1)                       # (d, 3d)
    return dict(wqkv=wqkv, bqkv=_bias(3 * d), wo=_w(ks[3], d, d), bo=_bias(d))


def _mha_cross_params(key, d):
    ks = jax.random.split(key, 4)
    wkv = jnp.concatenate([_w(ks[1], d, d), _w(ks[2], d, d)], axis=1)  # (d, 2d)
    return dict(wq=_w(ks[0], d, d), bq=_bias(d), wkv=wkv, bkv=_bias(2 * d),
                wo=_w(ks[3], d, d), bo=_bias(d))


def _gate_params(key, d):
    ks = jax.random.split(key, 6)
    w3 = jnp.concatenate([_w(ks[0], d, d), _w(ks[1], d, d), _w(ks[2], d, d)],
                         axis=1)                         # [Wr|Wz|Wg]  (d, 3d)
    u2 = jnp.concatenate([_w(ks[3], d, d), _w(ks[4], d, d)], axis=1)  # [Ur|Uz]
    return dict(w=w3, u=u2, ug=_w(ks[5], d, d),
                b=2.0 * jnp.ones((1, d), jnp.float32))   # GTrXL gating bias


def _enc_layer_params(key, d, dff):
    ks = jax.random.split(key, 5)
    attn = _mha_self_params(ks[0], d)
    g1, g2 = _gate_params(ks[1], d), _gate_params(ks[2], d)
    return dict(
        ln1=_ln_param(d),
        wqkv=attn["wqkv"], bqkv=attn["bqkv"], wo=attn["wo"], bo=attn["bo"],
        g1_w=g1["w"], g1_u=g1["u"], g1_ug=g1["ug"], g1_b=g1["b"],
        ln2=_ln_param(d),
        ff_w1=_w(ks[3], d, dff), ff_b1=_bias(dff),
        ff_w2=_w(ks[4], dff, d), ff_b2=_bias(d),
        g2_w=g2["w"], g2_u=g2["u"], g2_ug=g2["ug"], g2_b=g2["b"])


def _dec_layer_params(key, d, dff):
    ks = jax.random.split(key, 7)
    sa = _mha_self_params(ks[0], d)
    ca = _mha_cross_params(ks[1], d)
    g1, g2, g3 = (_gate_params(ks[2], d), _gate_params(ks[3], d),
                  _gate_params(ks[4], d))
    return dict(
        ln1=_ln_param(d),
        sa_wqkv=sa["wqkv"], sa_bqkv=sa["bqkv"], sa_wo=sa["wo"], sa_bo=sa["bo"],
        g1_w=g1["w"], g1_u=g1["u"], g1_ug=g1["ug"], g1_b=g1["b"],
        ln2=_ln_param(d),
        ca_wq=ca["wq"], ca_bq=ca["bq"], ca_wkv=ca["wkv"], ca_bkv=ca["bkv"],
        ca_wo=ca["wo"], ca_bo=ca["bo"],
        g2_w=g2["w"], g2_u=g2["u"], g2_ug=g2["ug"], g2_b=g2["b"],
        ln3=_ln_param(d),
        ff_w1=_w(ks[5], d, dff), ff_b1=_bias(dff),
        ff_w2=_w(ks[6], dff, d), ff_b2=_bias(d),
        g3_w=g3["w"], g3_u=g3["u"], g3_ug=g3["ug"], g3_b=g3["b"])


def init_params(key):
    ks = jax.random.split(key, 4 + N_ENC + N_DEC)
    return dict(
        st_w=_w(ks[0], STATE_SIZE, D_MODEL), st_b=_bias(D_MODEL),
        mlp_w1=_w(ks[1], D_MODEL, 256), mlp_b1=_bias(256),
        mlp_w2=_w(ks[2], 256, 256), mlp_b2=_bias(256),
        mlp_w3=_w(ks[3], 256, 2 * ACTION_SIZE), mlp_b3=_bias(2 * ACTION_SIZE),
        encoder=[_enc_layer_params(ks[4 + i], D_MODEL, DIM_FF)
                 for i in range(N_ENC)],
        decoder=[_dec_layer_params(ks[4 + N_ENC + i], D_MODEL, DIM_FF)
                 for i in range(N_DEC)])


# ----------------------------------------------------------------------------
# Main
# ----------------------------------------------------------------------------
if __name__ == "__main__":
    key = jax.random.PRNGKey(0)
    kp, ks, kd = jax.random.split(key, 3)

    params = init_params(kp)
    state = jax.random.normal(ks, (T_STEPS, BATCH, STATE_SIZE), jnp.float32)
    demonstration = jax.random.normal(
        kd, (T_STEPS, BATCH, DEMO_LEN, STATE_SIZE), jnp.float32)
    prev_action = jnp.zeros((T_STEPS, BATCH, ACTION_SIZE), jnp.float32)  # unused
    prev_reward = jnp.zeros((T_STEPS, BATCH), jnp.float32)               # unused

    fwd = jax.jit(pi_transformer_forward)
    mu, log_std, rnn_state = fwd(params, state, demonstration,
                                 prev_action, prev_reward, None)
    jax.block_until_ready((mu, log_std))

    assert mu.shape == (T_STEPS, BATCH, ACTION_SIZE)
    assert log_std.shape == (T_STEPS, BATCH, ACTION_SIZE)
    assert rnn_state is None
    assert bool(jnp.all(jnp.isfinite(mu))) and bool(jnp.all(jnp.isfinite(log_std)))
    print("KERNEL_OK")
</pallas_src>

<mosaic_0001>
module attributes {stable_mosaic.version = 11 : i64} {
  func.func @_state_transform_kernel(%arg0: memref<32x16xf32, #tpu.memory_space<vmem>>, %arg1: memref<16x32xbf16, #tpu.memory_space<vmem>>, %arg2: memref<1x32xf32, #tpu.memory_space<vmem>>, %arg3: memref<32x32xf32, #tpu.memory_space<vmem>>) attributes {dimension_semantics = [], scalar_prefetch = 0 : i64, scratch_operands = 0 : i64, tpu.core_type = #tpu.core_type<tc>} {
    %c0 = arith.constant 0 : index
    %c0_0 = arith.constant 0 : index
    %0 = vector.load %arg0[%c0, %c0_0] : memref<32x16xf32, #tpu.memory_space<vmem>>, vector<32x16xf32>
    %1 = arith.truncf %0 : vector<32x16xf32> to vector<32x16xbf16>
    %c0_1 = arith.constant 0 : index
    %c0_2 = arith.constant 0 : index
    %2 = vector.load %arg1[%c0_1, %c0_2] : memref<16x32xbf16, #tpu.memory_space<vmem>>, vector<16x32xbf16>
    %cst = arith.constant dense<0.000000e+00> : vector<32x32xf32>
    %3 = tpu.matmul %1, %2, %cst {dimension_numbers = #tpu.dot_dimension_numbers<[1], [0], [0], [1], [0, 0, 1, 1], [], []>} : vector<32x16xbf16>, vector<16x32xbf16>, vector<32x32xf32> -> vector<32x32xf32>
    %c0_3 = arith.constant 0 : index
    %c0_4 = arith.constant 0 : index
    %4 = vector.load %arg2[%c0_3, %c0_4] : memref<1x32xf32, #tpu.memory_space<vmem>>, vector<1x32xf32>
    %5 = vector.broadcast %4 : vector<1x32xf32> to vector<32x32xf32>
    %6 = arith.addf %3, %5 : vector<32x32xf32>
    %c0_5 = arith.constant 0 : index
    %c0_6 = arith.constant 0 : index
    %7 = vector.load %arg3[%c0_5, %c0_6] : memref<32x32xf32, #tpu.memory_space<vmem>>, vector<32x32xf32>
    tpu.vector_store %arg3[%c0_5, %c0_6], %6 {strides = array<i32>} : memref<32x32xf32, #tpu.memory_space<vmem>>, vector<32x32xf32>,
    return
  }
}

module attributes {stable_mosaic.version = 11 : i64} {
  func.func @_encoder_layer_kernel(%arg0: memref<16x32xf32, #tpu.memory_space<vmem>>, %arg1: memref<2x32xf32, #tpu.memory_space<vmem>>, %arg2: memref<32x96xbf16, #tpu.memory_space<vmem>>, %arg3: memref<1x96xf32, #tpu.memory_space<vmem>>, %arg4: memref<32x32xbf16, #tpu.memory_space<vmem>>, %arg5: memref<1x32xf32, #tpu.memory_space<vmem>>, %arg6: memref<32x96xbf16, #tpu.memory_space<vmem>>, %arg7: memref<32x64xbf16, #tpu.memory_space<vmem>>, %arg8: memref<32x32xbf16, #tpu.memory_space<vmem>>, %arg9: memref<1x32xf32, #tpu.memory_space<vmem>>, %arg10: memref<2x32xf32, #tpu.memory_space<vmem>>, %arg11: memref<32x64xbf16, #tpu.memory_space<vmem>>, %arg12: memref<1x64xf32, #tpu.memory_space<vmem>>, %arg13: memref<64x32xbf16, #tpu.memory_space<vmem>>, %arg14: memref<1x32xf32, #tpu.memory_space<vmem>>, %arg15: memref<32x96xbf16, #tpu.memory_space<vmem>>, %arg16: memref<32x64xbf16, #tpu.memory_space<vmem>>, %arg17: memref<32x32xbf16, #tpu.memory_space<vmem>>, %arg18: memref<1x32xf32, #tpu.memory_space<vmem>>, %arg19: memref<16x32xf32, #tpu.memory_space<vmem>>) attributes {dimension_semantics = [], scalar_prefetch = 0 : i64, scratch_operands = 0 : i64, tpu.core_type = #tpu.core_type<tc>} {
    %c0 = arith.constant 0 : index
    %c0_0 = arith.constant 0 : index
    %0 = vector.load %arg0[%c0, %c0_0] : memref<16x32xf32, #tpu.memory_space<vmem>>, vector<16x32xf32>
    %c0_1 = arith.constant 0 : index
    %c0_2 = arith.constant 0 : index
    %1 = vector.load %arg1[%c0_1, %c0_2] : memref<2x32xf32, #tpu.memory_space<vmem>>, vector<2x32xf32>
    %cst = arith.constant dense<0.000000e+00> : vector<16xf32>
    %2 = vector.multi_reduction <add>, %0, %cst [1] : vector<16x32xf32> to vector<16xf32>
    %3 = vector.shape_cast %2 : vector<16xf32> to vector<16x1xf32>
    %cst_3 = arith.constant 3.200000e+01 : f32
    %4 = vector.broadcast %cst_3 : f32 to vector<16x1xf32>
    %5 = arith.divf %3, %4 : vector<16x1xf32>
    %6 = vector.broadcast %5 : vector<16x1xf32> to vector<16x32xf32>
    %7 = arith.subf %0, %6 : vector<16x32xf32>
    %8 = arith.mulf %7, %7 : vector<16x32xf32>
    %cst_4 = arith.constant dense<0.000000e+00> : vector<16xf32>
    %9 = vector.multi_reduction <add>, %8, %cst_4 [1] : vector<16x32xf32> to vector<16xf32>
    %10 = vector.shape_cast %9 : vector<16xf32> to vector<16x1xf32>
    %cst_5 = arith.constant 3.200000e+01 : f32
    %11 = vector.broadcast %cst_5 : f32 to vector<16x1xf32>
    %12 = arith.divf %10, %11 : vector<16x1xf32>
    %cst_6 = arith.constant 9.99999974E-6 : f32
    %13 = vector.broadcast %cst_6 : f32 to vector<16x1xf32>
    %14 = arith.addf %12, %13 : vector<16x1xf32>
    %15 = math.rsqrt %14 : vector<16x1xf32>
    %16 = vector.broadcast %15 : vector<16x1xf32> to vector<16x32xf32>
    %17 = arith.mulf %7, %16 : vector<16x32xf32>
    %18 = vector.extract_strided_slice %1 {offsets = [0, 0], sizes = [1, 32], strides = [1, 1]} : vector<2x32xf32> to vector<1x32xf32>
    %19 = vector.broadcast %18 : vector<1x32xf32> to vector<16x32xf32>
    %20 = arith.mulf %17, %19 : vector<16x32xf32>
    %21 = vector.extract_strided_slice %1 {offsets = [1, 0], sizes = [1, 32], strides = [1, 1]} : vector<2x32xf32> to vector<1x32xf32>
    %22 = vector.broadcast %21 : vector<1x32xf32> to vector<16x32xf32>
    %23 = arith.addf %20, %22 : vector<16x32xf32>
    %24 = arith.truncf %23 : vector<16x32xf32> to vector<16x32xbf16>
    %c0_7 = arith.constant 0 : index
    %c0_8 = arith.constant 0 : index
    %25 = vector.load %arg2[%c0_7, %c0_8] : memref<32x96xbf16, #tpu.memory_space<vmem>>, vector<32x96xbf16>
    %cst_9 = arith.constant dense<0.000000e+00> : vector<16x96xf32>
    %26 = tpu.matmul %24, %25, %cst_9 {dimension_numbers = #tpu.dot_dimension_numbers<[1], [0], [0], [1], [0, 0, 1, 1], [], []>} : vector<16x32xbf16>, vector<32x96xbf16>, vector<16x96xf32> -> vector<16x96xf32>
    %c0_10 = arith.constant 0 : index
    %c0_11 = arith.constant 0 : index
    %27 = vector.load %arg3[%c0_10, %c0_11] : memref<1x96xf32, #tpu.memory_space<vmem>>, vector<1x96xf32>
    %28 = vector.broadcast %27 : vector<1x96xf32> to vector<16x96xf32>
    %29 = arith.addf %26, %28 : vector<16x96xf32>
    %30 = vector.extract_strided_slice %29 {offsets = [0, 0], sizes = [16, 32], strides = [1, 1]} : vector<16x96xf32> to vector<16x32xf32>
    %31 = vector.extract_strided_slice %29 {offsets = [0, 32], sizes = [16, 32], strides = [1, 1]} : vector<16x96xf32> to vector<16x32xf32>
    %32 = vector.extract_strided_slice %29 {offsets = [0, 64], sizes = [16, 32], strides = [1, 1]} : vector<16x96xf32> to vector<16x32xf32>
    %c0_12 = arith.constant 0 : index
    %c0_13 = arith.constant 0 : index
    %33 = vector.load %arg4[%c0_12, %c0_13] : memref<32x32xbf16, #tpu.memory_space<vmem>>, vector<32x32xbf16>
    %c0_14 = arith.constant 0 : index
    %c0_15 = arith.constant 0 : index
    %34 = vector.load %arg5[%c0_14, %c0_15] : memref<1x32xf32, #tpu.memory_space<vmem>>, vector<1x32xf32>
    %35 = vector.extract_strided_slice %30 {offsets = [0, 0], sizes = [16, 16], strides = [1, 1]} : vector<16x32xf32> to vector<16x16xf32>
    %36 = vector.shape_cast %35 : vector<16x16xf32> to vector<2x8x16xf32>
    %37 = vector.extract_strided_slice %31 {offsets = [0, 0], sizes = [16, 16], strides = [1, 1]} : vector<16x32xf32> to vector<16x16xf32>
    %38 = vector.shape_cast %37 : vector<16x16xf32> to vector<2x8x16xf32>
    %39 = vector.extract_strided_slice %32 {offsets = [0, 0], sizes = [16, 16], strides = [1, 1]} : vector<16x32xf32> to vector<16x16xf32>
    %40 = vector.shape_cast %39 : vector<16x16xf32> to vector<2x8x16xf32>
    %41 = arith.truncf %36 : vector<2x8x16xf32> to vector<2x8x16xbf16>
    %42 = arith.truncf %38 : vector<2x8x16xf32> to vector<2x8x16xbf16>
    "tpu.trace_start"() <{level = 10 : i32, message = "bqd,bkd->bqk"}> : () -> ()
    %cst_16 = arith.constant dense<0.000000e+00> : vector<2x8x8xf32>
    %43 = tpu.matmul %41, %42, %cst_16 {dimension_numbers = #tpu.dot_dimension_numbers<[2], [2], [1], [1], [0, 0, 0, 1, 1, 1], [0], [0]>} : vector<2x8x16xbf16>, vector<2x8x16xbf16>, vector<2x8x8xf32> -> vector<2x8x8xf32>
    "tpu.trace_stop"() : () -> ()
    %cst_17 = arith.constant 2.500000e-01 : f32
    %44 = vector.broadcast %cst_17 : f32 to vector<2x8x8xf32>
    %45 = arith.mulf %43, %44 : vector<2x8x8xf32>
    %cst_18 = arith.constant dense<0xFF800000> : vector<2x8xf32>
    %46 = vector.multi_reduction <maximumf>, %45, %cst_18 [2] : vector<2x8x8xf32> to vector<2x8xf32>
    %47 = vector.shape_cast %46 : vector<2x8xf32> to vector<2x8x1xf32>
    %48 = vector.broadcast %47 : vector<2x8x1xf32> to vector<2x8x8xf32>
    %49 = arith.subf %45, %48 : vector<2x8x8xf32>
    %50 = math.exp %49 : vector<2x8x8xf32>
    %cst_19 = arith.constant dense<0.000000e+00> : vector<2x8xf32>
    %51 = vector.multi_reduction <add>, %50, %cst_19 [2] : vector<2x8x8xf32> to vector<2x8xf32>
    %52 = vector.shape_cast %51 : vector<2x8xf32> to vector<2x8x1xf32>
    %53 = vector.broadcast %52 : vector<2x8x1xf32> to vector<2x8x8xf32>
    %54 = arith.divf %50, %53 : vector<2x8x8xf32>
    %55 = arith.truncf %54 : vector<2x8x8xf32> to vector<2x8x8xbf16>
    %56 = arith.truncf %40 : vector<2x8x16xf32> to vector<2x8x16xbf16>
    "tpu.trace_start"() <{level = 10 : i32, message = "bqk,bkd->bqd"}> : () -> ()
    %cst_20 = arith.constant dense<0.000000e+00> : vector<2x8x16xf32>
    %57 = tpu.matmul %55, %56, %cst_20 {dimension_numbers = #tpu.dot_dimension_numbers<[2], [1], [1], [2], [0, 0, 0, 1, 1, 2], [0], [0]>} : vector<2x8x8xbf16>, vector<2x8x16xbf16>, vector<2x8x16xf32> -> vector<2x8x16xf32>
    "tpu.trace_stop"() : () -> ()
    %58 = vector.shape_cast %57 : vector<2x8x16xf32> to vector<16x16xf32>
    %59 = arith.truncf %58 : vector<16x16xf32> to vector<16x16xbf16>
    %60 = vector.extract_strided_slice %33 {offsets = [0, 0], sizes = [16, 32], strides = [1, 1]} : vector<32x32xbf16> to vector<16x32xbf16>
    %cst_21 = arith.constant dense<0.000000e+00> : vector<16x32xf32>
    %61 = tpu.matmul %59, %60, %cst_21 {dimension_numbers = #tpu.dot_dimension_numbers<[1], [0], [0], [1], [0, 0, 1, 1], [], []>} : vector<16x16xbf16>, vector<16x32xbf16>, vector<16x32xf32> -> vector<16x32xf32>
    %62 = vector.extract_strided_slice %30 {offsets = [0, 16], sizes = [16, 16], strides = [1, 1]} : vector<16x32xf32> to vector<16x16xf32>
    %63 = vector.shape_cast %62 : vector<16x16xf32> to vector<2x8x16xf32>
    %64 = vector.extract_strided_slice %31 {offsets = [0, 16], sizes = [16, 16], strides = [1, 1]} : vector<16x32xf32> to vector<16x16xf32>
    %65 = vector.shape_cast %64 : vector<16x16xf32> to vector<2x8x16xf32>
    %66 = vector.extract_strided_slice %32 {offsets = [0, 16], sizes = [16, 16], strides = [1, 1]} : vector<16x32xf32> to vector<16x16xf32>
    %67 = vector.shape_cast %66 : vector<16x16xf32> to vector<2x8x16xf32>
    %68 = arith.truncf %63 : vector<2x8x16xf32> to vector<2x8x16xbf16>
    %69 = arith.truncf %65 : vector<2x8x16xf32> to vector<2x8x16xbf16>
    "tpu.trace_start"() <{level = 10 : i32, message = "bqd,bkd->bqk"}> : () -> ()
    %cst_22 = arith.constant dense<0.000000e+00> : vector<2x8x8xf32>
    %70 = tpu.matmul %68, %69, %cst_22 {dimension_numbers = #tpu.dot_dimension_numbers<[2], [2], [1], [1], [0, 0, 0, 1, 1, 1], [0], [0]>} : vector<2x8x16xbf16>, vector<2x8x16xbf16>, vector<2x8x8xf32> -> vector<2x8x8xf32>
    "tpu.trace_stop"() : () -> ()
    %cst_23 = arith.constant 2.500000e-01 : f32
    %71 = vector.broadcast %cst_23 : f32 to vector<2x8x8xf32>
    %72 = arith.mulf %70, %71 : vector<2x8x8xf32>
    %cst_24 = arith.constant dense<0xFF800000> : vector<2x8xf32>
    %73 = vector.multi_reduction <maximumf>, %72, %cst_24 [2] : vector<2x8x8xf32> to vector<2x8xf32>
    %74 = vector.shape_cast %73 : vector<2x8xf32> to vector<2x8x1xf32>
    %75 = vector.broadcast %74 : vector<2x8x1xf32> to vector<2x8x8xf32>
    %76 = arith.subf %72, %75 : vector<2x8x8xf32>
    %77 = math.exp %76 : vector<2x8x8xf32>
    %cst_25 = arith.constant dense<0.000000e+00> : vector<2x8xf32>
    %78 = vector.multi_reduction <add>, %77, %cst_25 [2] : vector<2x8x8xf32> to vector<2x8xf32>
    %79 = vector.shape_cast %78 : vector<2x8xf32> to vector<2x8x1xf32>
    %80 = vector.broadcast %79 : vector<2x8x1xf32> to vector<2x8x8xf32>
    %81 = arith.divf %77, %80 : vector<2x8x8xf32>
    %82 = arith.truncf %81 : vector<2x8x8xf32> to vector<2x8x8xbf16>
    %83 = arith.truncf %67 : vector<2x8x16xf32> to vector<2x8x16xbf16>
    "tpu.trace_start"() <{level = 10 : i32, message = "bqk,bkd->bqd"}> : () -> ()
    %cst_26 = arith.constant dense<0.000000e+00> : vector<2x8x16xf32>
    %84 = tpu.matmul %82, %83, %cst_26 {dimension_numbers = #tpu.dot_dimension_numbers<[2], [1], [1], [2], [0, 0, 0, 1, 1, 2], [0], [0]>} : vector<2x8x8xbf16>, vector<2x8x16xbf16>, vector<2x8x16xf32> -> vector<2x8x16xf32>
    "tpu.trace_stop"() : () -> ()
    %85 = vector.shape_cast %84 : vector<2x8x16xf32> to vector<16x16xf32>
    %86 = arith.truncf %85 : vector<16x16xf32> to vector<16x16xbf16>
    %87 = vector.extract_strided_slice %33 {offsets = [16, 0], sizes = [16, 32], strides = [1, 1]} : vector<32x32xbf16> to vector<16x32xbf16>
    %cst_27 = arith.constant dense<0.000000e+00> : vector<16x32xf32>
    %88 = tpu.matmul %86, %87, %cst_27 {dimension_numbers = #tpu.dot_dimension_numbers<[1], [0], [0], [1], [0, 0, 1, 1], [], []>} : vector<16x16xbf16>, vector<16x32xbf16>, vector<16x32xf32> -> vector<16x32xf32>
    %89 = arith.addf %61, %88 : vector<16x32xf32>
    %90 = vector.broadcast %34 : vector<1x32xf32> to vector<16x32xf32>
    %91 = arith.addf %89, %90 : vector<16x32xf32>
    %c0_28 = arith.constant 0 : index
    %c0_29 = arith.constant 0 : index
    %92 = vector.load %arg6[%c0_28, %c0_29] : memref<32x96xbf16, #tpu.memory_space<vmem>>, vector<32x96xbf16>
    %c0_30 = arith.constant 0 : index
    %c0_31 = arith.constant 0 : index
    %93 = vector.load %arg7[%c0_30, %c0_31] : memref<32x64xbf16, #tpu.memory_space<vmem>>, vector<32x64xbf16>
    %c0_32 = arith.constant 0 : index
    %c0_33 = arith.constant 0 : index
    %94 = vector.load %arg8[%c0_32, %c0_33] : memref<32x32xbf16, #tpu.memory_space<vmem>>, vector<32x32xbf16>
    %c0_34 = arith.constant 0 : index
    %c0_35 = arith.constant 0 : index
    %95 = vector.load %arg9[%c0_34, %c0_35] : memref<1x32xf32, #tpu.memory_space<vmem>>, vector<1x32xf32>
    %cst_36 = arith.constant 0.000000e+00 : f32
    %96 = vector.broadcast %cst_36 : f32 to vector<16x32xf32>
    %97 = arith.maximumf %91, %96 : vector<16x32xf32>
    %98 = arith.truncf %97 : vector<16x32xf32> to vector<16x32xbf16>
    %cst_37 = arith.constant dense<0.000000e+00> : vector<16x96xf32>
    %99 = tpu.matmul %98, %92, %cst_37 {dimension_numbers = #tpu.dot_dimension_numbers<[1], [0], [0], [1], [0, 0, 1, 1], [], []>} : vector<16x32xbf16>, vector<32x96xbf16>, vector<16x96xf32> -> vector<16x96xf32>
    %100 = arith.truncf %0 : vector<16x32xf32> to vector<16x32xbf16>
    %cst_38 = arith.constant dense<0.000000e+00> : vector<16x64xf32>
    %101 = tpu.matmul %100, %93, %cst_38 {dimension_numbers = #tpu.dot_dimension_numbers<[1], [0], [0], [1], [0, 0, 1, 1], [], []>} : vector<16x32xbf16>, vector<32x64xbf16>, vector<16x64xf32> -> vector<16x64xf32>
    %102 = vector.extract_strided_slice %99 {offsets = [0, 0], sizes = [16, 32], strides = [1, 1]} : vector<16x96xf32> to vector<16x32xf32>
    %103 = vector.extract_strided_slice %101 {offsets = [0, 0], sizes = [16, 32], strides = [1, 1]} : vector<16x64xf32> to vector<16x32xf32>
    %104 = arith.addf %102, %103 : vector<16x32xf32>
    %105 = arith.negf %104 : vector<16x32xf32>
    %106 = math.exp %105 : vector<16x32xf32>
    %cst_39 = arith.constant 1.000000e+00 : f32
    %107 = vector.broadcast %cst_39 : f32 to vector<16x32xf32>
    %108 = arith.addf %107, %106 : vector<16x32xf32>
    %109 = arith.divf %107, %108 : vector<16x32xf32>
    %110 = vector.extract_strided_slice %99 {offsets = [0, 32], sizes = [16, 32], strides = [1, 1]} : vector<16x96xf32> to vector<16x32xf32>
    %111 = vector.extract_strided_slice %101 {offsets = [0, 32], sizes = [16, 32], strides = [1, 1]} : vector<16x64xf32> to vector<16x32xf32>
    %112 = arith.addf %110, %111 : vector<16x32xf32>
    %113 = vector.broadcast %95 : vector<1x32xf32> to vector<16x32xf32>
    %114 = arith.subf %112, %113 : vector<16x32xf32>
    %115 = arith.negf %114 : vector<16x32xf32>
    %116 = math.exp %115 : vector<16x32xf32>
    %cst_40 = arith.constant 1.000000e+00 : f32
    %117 = vector.broadcast %cst_40 : f32 to vector<16x32xf32>
    %118 = arith.addf %117, %116 : vector<16x32xf32>
    %119 = arith.divf %117, %118 : vector<16x32xf32>
    %120 = vector.extract_strided_slice %99 {offsets = [0, 64], sizes = [16, 32], strides = [1, 1]} : vector<16x96xf32> to vector<16x32xf32>
    %121 = arith.mulf %109, %0 : vector<16x32xf32>
    %122 = arith.truncf %121 : vector<16x32xf32> to vector<16x32xbf16>
    %cst_41 = arith.constant dense<0.000000e+00> : vector<16x32xf32>
    %123 = tpu.matmul %122, %94, %cst_41 {dimension_numbers = #tpu.dot_dimension_numbers<[1], [0], [0], [1], [0, 0, 1, 1], [], []>} : vector<16x32xbf16>, vector<32x32xbf16>, vector<16x32xf32> -> vector<16x32xf32>
    %124 = arith.addf %120, %123 : vector<16x32xf32>
    %125 = math.tanh %124 : vector<16x32xf32>
    %cst_42 = arith.constant 1.000000e+00 : f32
    %126 = vector.broadcast %cst_42 : f32 to vector<16x32xf32>
    %127 = arith.subf %126, %119 : vector<16x32xf32>
    %128 = arith.mulf %127, %0 : vector<16x32xf32>
    %129 = arith.mulf %119, %125 : vector<16x32xf32>
    %130 = arith.addf %128, %129 : vector<16x32xf32>
    %c0_43 = arith.constant 0 : index
    %c0_44 = arith.constant 0 : index
    %131 = vector.load %arg10[%c0_43, %c0_44] : memref<2x32xf32, #tpu.memory_space<vmem>>, vector<2x32xf32>
    %cst_45 = arith.constant dense<0.000000e+00> : vector<16xf32>
    %132 = vector.multi_reduction <add>, %130, %cst_45 [1] : vector<16x32xf32> to vector<16xf32>
    %133 = vector.shape_cast %132 : vector<16xf32> to vector<16x1xf32>
    %cst_46 = arith.constant 3.200000e+01 : f32
    %134 = vector.broadcast %cst_46 : f32 to vector<16x1xf32>
    %135 = arith.divf %133, %134 : vector<16x1xf32>
    %136 = vector.broadcast %135 : vector<16x1xf32> to vector<16x32xf32>
    %137 = arith.subf %130, %136 : vector<16x32xf32>
    %138 = arith.mulf %137, %137 : vector<16x32xf32>
    %cst_47 = arith.constant dense<0.000000e+00> : vector<16xf32>
    %139 = vector.multi_reduction <add>, %138, %cst_47 [1] : vector<16x32xf32> to vector<16xf32>
    %140 = vector.shape_cast %139 : vector<16xf32> to vector<16x1xf32>
    %cst_48 = arith.constant 3.200000e+01 : f32
    %141 = vector.broadcast %cst_48 : f32 to vector<16x1xf32>
    %142 = arith.divf %140, %141 : vector<16x1xf32>
    %cst_49 = arith.constant 9.99999974E-6 : f32
    %143 = vector.broadcast %cst_49 : f32 to vector<16x1xf32>
    %144 = arith.addf %142, %143 : vector<16x1xf32>
    %145 = math.rsqrt %144 : vector<16x1xf32>
    %146 = vector.broadcast %145 : vector<16x1xf32> to vector<16x32xf32>
    %147 = arith.mulf %137, %146 : vector<16x32xf32>
    %148 = vector.extract_strided_slice %131 {offsets = [0, 0], sizes = [1, 32], strides = [1, 1]} : vector<2x32xf32> to vector<1x32xf32>
    %149 = vector.broadcast %148 : vector<1x32xf32> to vector<16x32xf32>
    %150 = arith.mulf %147, %149 : vector<16x32xf32>
    %151 = vector.extract_strided_slice %131 {offsets = [1, 0], sizes = [1, 32], strides = [1, 1]} : vector<2x32xf32> to vector<1x32xf32>
    %152 = vector.broadcast %151 : vector<1x32xf32> to vector<16x32xf32>
    %153 = arith.addf %150, %152 : vector<16x32xf32>
    %c0_50 = arith.constant 0 : index
    %c0_51 = arith.constant 0 : index
    %154 = vector.load %arg11[%c0_50, %c0_51] : memref<32x64xbf16, #tpu.memory_space<vmem>>, vector<32x64xbf16>
    %c0_52 = arith.constant 0 : index
    %c0_53 = arith.constant 0 : index
    %155 = vector.load %arg12[%c0_52, %c0_53] : memref<1x64xf32, #tpu.memory_space<vmem>>, vector<1x64xf32>
    %c0_54 = arith.constant 0 : index
    %c0_55 = arith.constant 0 : index
    %156 = vector.load %arg13[%c0_54, %c0_55] : memref<64x32xbf16, #tpu.memory_space<vmem>>, vector<64x32xbf16>
    %c0_56 = arith.constant 0 : index
    %c0_57 = arith.constant 0 : index
    %157 = vector.load %arg14[%c0_56, %c0_57] : memref<1x32xf32, #tpu.memory_space<vmem>>, vector<1x32xf32>
    %158 = arith.truncf %153 : vector<16x32xf32> to vector<16x32xbf16>
    %cst_58 = arith.constant dense<0.000000e+00> : vector<16x64xf32>
    %159 = tpu.matmul %158, %154, %cst_58 {dimension_numbers = #tpu.dot_dimension_numbers<[1], [0], [0], [1], [0, 0, 1, 1], [], []>} : vector<16x32xbf16>, vector<32x64xbf16>, vector<16x64xf32> -> vector<16x64xf32>
    %160 = vector.broadcast %155 : vector<1x64xf32> to vector<16x64xf32>
    %161 = arith.addf %159, %160 : vector<16x64xf32>
    %cst_59 = arith.constant 0.000000e+00 : f32
    %162 = vector.broadcast %cst_59 : f32 to vector<16x64xf32>
    %163 = arith.maximumf %161, %162 : vector<16x64xf32>
    %164 = arith.truncf %163 : vector<16x64xf32> to vector<16x64xbf16>
    %cst_60 = arith.constant dense<0.000000e+00> : vector<16x32xf32>
    %165 = tpu.matmul %164, %156, %cst_60 {dimension_numbers = #tpu.dot_dimension_numbers<[1], [0], [0], [1], [0, 0, 1, 1], [], []>} : vector<16x64xbf16>, vector<64x32xbf16>, vector<16x32xf32> -> vector<16x32xf32>
    %166 = vector.broadcast %157 : vector<1x32xf32> to vector<16x32xf32>
    %167 = arith.addf %165, %166 : vector<16x32xf32>
    %c0_61 = arith.constant 0 : index
    %c0_62 = arith.constant 0 : index
    %168 = vector.load %arg15[%c0_61, %c0_62] : memref<32x96xbf16, #tpu.memory_space<vmem>>, vector<32x96xbf16>
    %c0_63 = arith.constant 0 : index
    %c0_64 = arith.constant 0 : index
    %169 = vector.load %arg16[%c0_63, %c0_64] : memref<32x64xbf16, #tpu.memory_space<vmem>>, vector<32x64xbf16>
    %c0_65 = arith.constant 0 : index
    %c0_66 = arith.constant 0 : index
    %170 = vector.load %arg17[%c0_65, %c0_66] : memref<32x32xbf16, #tpu.memory_space<vmem>>, vector<32x32xbf16>
    %c0_67 = arith.constant 0 : index
    %c0_68 = arith.constant 0 : index
    %171 = vector.load %arg18[%c0_67, %c0_68] : memref<1x32xf32, #tpu.memory_space<vmem>>, vector<1x32xf32>
    %cst_69 = arith.constant 0.000000e+00 : f32
    %172 = vector.broadcast %cst_69 : f32 to vector<16x32xf32>
    %173 = arith.maximumf %167, %172 : vector<16x32xf32>
    %174 = arith.truncf %173 : vector<16x32xf32> to vector<16x32xbf16>
    %cst_70 = arith.constant dense<0.000000e+00> : vector<16x96xf32>
    %175 = tpu.matmul %174, %168, %cst_70 {dimension_numbers = #tpu.dot_dimension_numbers<[1], [0], [0], [1], [0, 0, 1, 1], [], []>} : vector<16x32xbf16>, vector<32x96xbf16>, vector<16x96xf32> -> vector<16x96xf32>
    %176 = arith.truncf %130 : vector<16x32xf32> to vector<16x32xbf16>
    %cst_71 = arith.constant dense<0.000000e+00> : vector<16x64xf32>
    %177 = tpu.matmul %176, %169, %cst_71 {dimension_numbers = #tpu.dot_dimension_numbers<[1], [0], [0], [1], [0, 0, 1, 1], [], []>} : vector<16x32xbf16>, vector<32x64xbf16>, vector<16x64xf32> -> vector<16x64xf32>
    %178 = vector.extract_strided_slice %175 {offsets = [0, 0], sizes = [16, 32], strides = [1, 1]} : vector<16x96xf32> to vector<16x32xf32>
    %179 = vector.extract_strided_slice %177 {offsets = [0, 0], sizes = [16, 32], strides = [1, 1]} : vector<16x64xf32> to vector<16x32xf32>
    %180 = arith.addf %178, %179 : vector<16x32xf32>
    %181 = arith.negf %180 : vector<16x32xf32>
    %182 = math.exp %181 : vector<16x32xf32>
    %cst_72 = arith.constant 1.000000e+00 : f32
    %183 = vector.broadcast %cst_72 : f32 to vector<16x32xf32>
    %184 = arith.addf %183, %182 : vector<16x32xf32>
    %185 = arith.divf %183, %184 : vector<16x32xf32>
    %186 = vector.extract_strided_slice %175 {offsets = [0, 32], sizes = [16, 32], strides = [1, 1]} : vector<16x96xf32> to vector<16x32xf32>
    %187 = vector.extract_strided_slice %177 {offsets = [0, 32], sizes = [16, 32], strides = [1, 1]} : vector<16x64xf32> to vector<16x32xf32>
    %188 = arith.addf %186, %187 : vector<16x32xf32>
    %189 = vector.broadcast %171 : vector<1x32xf32> to vector<16x32xf32>
    %190 = arith.subf %188, %189 : vector<16x32xf32>
    %191 = arith.negf %190 : vector<16x32xf32>
    %192 = math.exp %191 : vector<16x32xf32>
    %cst_73 = arith.constant 1.000000e+00 : f32
    %193 = vector.broadcast %cst_73 : f32 to vector<16x32xf32>
    %194 = arith.addf %193, %192 : vector<16x32xf32>
    %195 = arith.divf %193, %194 : vector<16x32xf32>
    %196 = vector.extract_strided_slice %175 {offsets = [0, 64], sizes = [16, 32], strides = [1, 1]} : vector<16x96xf32> to vector<16x32xf32>
    %197 = arith.mulf %185, %130 : vector<16x32xf32>
    %198 = arith.truncf %197 : vector<16x32xf32> to vector<16x32xbf16>
    %cst_74 = arith.constant dense<0.000000e+00> : vector<16x32xf32>
    %199 = tpu.matmul %198, %170, %cst_74 {dimension_numbers = #tpu.dot_dimension_numbers<[1], [0], [0], [1], [0, 0, 1, 1], [], []>} : vector<16x32xbf16>, vector<32x32xbf16>, vector<16x32xf32> -> vector<16x32xf32>
    %200 = arith.addf %196, %199 : vector<16x32xf32>
    %201 = math.tanh %200 : vector<16x32xf32>
    %cst_75 = arith.constant 1.000000e+00 : f32
    %202 = vector.broadcast %cst_75 : f32 to vector<16x32xf32>
    %203 = arith.subf %202, %195 : vector<16x32xf32>
    %204 = arith.mulf %203, %130 : vector<16x32xf32>
    %205 = arith.mulf %195, %201 : vector<16x32xf32>
    %206 = arith.addf %204, %205 : vector<16x32xf32>
    %c0_76 = arith.constant 0 : index
    %c0_77 = arith.constant 0 : index
    %207 = vector.load %arg19[%c0_76, %c0_77] : memref<16x32xf32, #tpu.memory_space<vmem>>, vector<16x32xf32>
    tpu.vector_store %arg19[%c0_76, %c0_77], %206 {strides = array<i32>} : memref<16x32xf32, #tpu.memory_space<vmem>>, vector<16x32xf32>,
    return
  }
}

module attributes {stable_mosaic.version = 11 : i64} {
  func.func @_decoder_layer_kernel(%arg0: memref<16x32xf32, #tpu.memory_space<vmem>>, %arg1: memref<16x32xf32, #tpu.memory_space<vmem>>, %arg2: memref<8x8xf32, #tpu.memory_space<vmem>>, %arg3: memref<2x32xf32, #tpu.memory_space<vmem>>, %arg4: memref<32x96xbf16, #tpu.memory_space<vmem>>, %arg5: memref<1x96xf32, #tpu.memory_space<vmem>>, %arg6: memref<32x32xbf16, #tpu.memory_space<vmem>>, %arg7: memref<1x32xf32, #tpu.memory_space<vmem>>, %arg8: memref<32x96xbf16, #tpu.memory_space<vmem>>, %arg9: memref<32x64xbf16, #tpu.memory_space<vmem>>, %arg10: memref<32x32xbf16, #tpu.memory_space<vmem>>, %arg11: memref<1x32xf32, #tpu.memory_space<vmem>>, %arg12: memref<2x32xf32, #tpu.memory_space<vmem>>, %arg13: memref<32x32xbf16, #tpu.memory_space<vmem>>, %arg14: memref<1x32xf32, #tpu.memory_space<vmem>>, %arg15: memref<32x64xbf16, #tpu.memory_space<vmem>>, %arg16: memref<1x64xf32, #tpu.memory_space<vmem>>, %arg17: memref<32x32xbf16, #tpu.memory_space<vmem>>, %arg18: memref<1x32xf32, #tpu.memory_space<vmem>>, %arg19: memref<32x96xbf16, #tpu.memory_space<vmem>>, %arg20: memref<32x64xbf16, #tpu.memory_space<vmem>>, %arg21: memref<32x32xbf16, #tpu.memory_space<vmem>>, %arg22: memref<1x32xf32, #tpu.memory_space<vmem>>, %arg23: memref<2x32xf32, #tpu.memory_space<vmem>>, %arg24: memref<32x64xbf16, #tpu.memory_space<vmem>>, %arg25: memref<1x64xf32, #tpu.memory_space<vmem>>, %arg26: memref<64x32xbf16, #tpu.memory_space<vmem>>, %arg27: memref<1x32xf32, #tpu.memory_space<vmem>>, %arg28: memref<32x96xbf16, #tpu.memory_space<vmem>>, %arg29: memref<32x64xbf16, #tpu.memory_space<vmem>>, %arg30: memref<32x32xbf16, #tpu.memory_space<vmem>>, %arg31: memref<1x32xf32, #tpu.memory_space<vmem>>, %arg32: memref<16x32xf32, #tpu.memory_space<vmem>>) attributes {dimension_semantics = [], scalar_prefetch = 0 : i64, scratch_operands = 0 : i64, tpu.core_type = #tpu.core_type<tc>} {
    %c0 = arith.constant 0 : index
    %c0_0 = arith.constant 0 : index
    %0 = vector.load %arg0[%c0, %c0_0] : memref<16x32xf32, #tpu.memory_space<vmem>>, vector<16x32xf32>
    %c0_1 = arith.constant 0 : index
    %c0_2 = arith.constant 0 : index
    %1 = vector.load %arg1[%c0_1, %c0_2] : memref<16x32xf32, #tpu.memory_space<vmem>>, vector<16x32xf32>
    %c0_3 = arith.constant 0 : index
    %c0_4 = arith.constant 0 : index
    %2 = vector.load %arg2[%c0_3, %c0_4] : memref<8x8xf32, #tpu.memory_space<vmem>>, vector<8x8xf32>
    %c0_5 = arith.constant 0 : index
    %c0_6 = arith.constant 0 : index
    %3 = vector.load %arg3[%c0_5, %c0_6] : memref<2x32xf32, #tpu.memory_space<vmem>>, vector<2x32xf32>
    %cst = arith.constant dense<0.000000e+00> : vector<16xf32>
    %4 = vector.multi_reduction <add>, %0, %cst [1] : vector<16x32xf32> to vector<16xf32>
    %5 = vector.shape_cast %4 : vector<16xf32> to vector<16x1xf32>
    %cst_7 = arith.constant 3.200000e+01 : f32
    %6 = vector.broadcast %cst_7 : f32 to vector<16x1xf32>
    %7 = arith.divf %5, %6 : vector<16x1xf32>
    %8 = vector.broadcast %7 : vector<16x1xf32> to vector<16x32xf32>
    %9 = arith.subf %0, %8 : vector<16x32xf32>
    %10 = arith.mulf %9, %9 : vector<16x32xf32>
    %cst_8 = arith.constant dense<0.000000e+00> : vector<16xf32>
    %11 = vector.multi_reduction <add>, %10, %cst_8 [1] : vector<16x32xf32> to vector<16xf32>
    %12 = vector.shape_cast %11 : vector<16xf32> to vector<16x1xf32>
    %cst_9 = arith.constant 3.200000e+01 : f32
    %13 = vector.broadcast %cst_9 : f32 to vector<16x1xf32>
    %14 = arith.divf %12, %13 : vector<16x1xf32>
    %cst_10 = arith.constant 9.99999974E-6 : f32
    %15 = vector.broadcast %cst_10 : f32 to vector<16x1xf32>
    %16 = arith.addf %14, %15 : vector<16x1xf32>
    %17 = math.rsqrt %16 : vector<16x1xf32>
    %18 = vector.broadcast %17 : vector<16x1xf32> to vector<16x32xf32>
    %19 = arith.mulf %9, %18 : vector<16x32xf32>
    %20 = vector.extract_strided_slice %3 {offsets = [0, 0], sizes = [1, 32], strides = [1, 1]} : vector<2x32xf32> to vector<1x32xf32>
    %21 = vector.broadcast %20 : vector<1x32xf32> to vector<16x32xf32>
    %22 = arith.mulf %19, %21 : vector<16x32xf32>
    %23 = vector.extract_strided_slice %3 {offsets = [1, 0], sizes = [1, 32], strides = [1, 1]} : vector<2x32xf32> to vector<1x32xf32>
    %24 = vector.broadcast %23 : vector<1x32xf32> to vector<16x32xf32>
    %25 = arith.addf %22, %24 : vector<16x32xf32>
    %26 = arith.truncf %25 : vector<16x32xf32> to vector<16x32xbf16>
    %c0_11 = arith.constant 0 : index
    %c0_12 = arith.constant 0 : index
    %27 = vector.load %arg4[%c0_11, %c0_12] : memref<32x96xbf16, #tpu.memory_space<vmem>>, vector<32x96xbf16>
    %cst_13 = arith.constant dense<0.000000e+00> : vector<16x96xf32>
    %28 = tpu.matmul %26, %27, %cst_13 {dimension_numbers = #tpu.dot_dimension_numbers<[1], [0], [0], [1], [0, 0, 1, 1], [], []>} : vector<16x32xbf16>, vector<32x96xbf16>, vector<16x96xf32> -> vector<16x96xf32>
    %c0_14 = arith.constant 0 : index
    %c0_15 = arith.constant 0 : index
    %29 = vector.load %arg5[%c0_14, %c0_15] : memref<1x96xf32, #tpu.memory_space<vmem>>, vector<1x96xf32>
    %30 = vector.broadcast %29 : vector<1x96xf32> to vector<16x96xf32>
    %31 = arith.addf %28, %30 : vector<16x96xf32>
    %32 = vector.extract_strided_slice %31 {offsets = [0, 0], sizes = [16, 32], strides = [1, 1]} : vector<16x96xf32> to vector<16x32xf32>
    %33 = vector.extract_strided_slice %31 {offsets = [0, 32], sizes = [16, 32], strides = [1, 1]} : vector<16x96xf32> to vector<16x32xf32>
    %34 = vector.extract_strided_slice %31 {offsets = [0, 64], sizes = [16, 32], strides = [1, 1]} : vector<16x96xf32> to vector<16x32xf32>
    %c0_16 = arith.constant 0 : index
    %c0_17 = arith.constant 0 : index
    %35 = vector.load %arg6[%c0_16, %c0_17] : memref<32x32xbf16, #tpu.memory_space<vmem>>, vector<32x32xbf16>
    %c0_18 = arith.constant 0 : index
    %c0_19 = arith.constant 0 : index
    %36 = vector.load %arg7[%c0_18, %c0_19] : memref<1x32xf32, #tpu.memory_space<vmem>>, vector<1x32xf32>
    %37 = vector.extract_strided_slice %32 {offsets = [0, 0], sizes = [16, 16], strides = [1, 1]} : vector<16x32xf32> to vector<16x16xf32>
    %38 = vector.shape_cast %37 : vector<16x16xf32> to vector<2x8x16xf32>
    %39 = vector.extract_strided_slice %33 {offsets = [0, 0], sizes = [16, 16], strides = [1, 1]} : vector<16x32xf32> to vector<16x16xf32>
    %40 = vector.shape_cast %39 : vector<16x16xf32> to vector<2x8x16xf32>
    %41 = vector.extract_strided_slice %34 {offsets = [0, 0], sizes = [16, 16], strides = [1, 1]} : vector<16x32xf32> to vector<16x16xf32>
    %42 = vector.shape_cast %41 : vector<16x16xf32> to vector<2x8x16xf32>
    %43 = arith.truncf %38 : vector<2x8x16xf32> to vector<2x8x16xbf16>
    %44 = arith.truncf %40 : vector<2x8x16xf32> to vector<2x8x16xbf16>
    "tpu.trace_start"() <{level = 10 : i32, message = "bqd,bkd->bqk"}> : () -> ()
    %cst_20 = arith.constant dense<0.000000e+00> : vector<2x8x8xf32>
    %45 = tpu.matmul %43, %44, %cst_20 {dimension_numbers = #tpu.dot_dimension_numbers<[2], [2], [1], [1], [0, 0, 0, 1, 1, 1], [0], [0]>} : vector<2x8x16xbf16>, vector<2x8x16xbf16>, vector<2x8x8xf32> -> vector<2x8x8xf32>
    "tpu.trace_stop"() : () -> ()
    %cst_21 = arith.constant 2.500000e-01 : f32
    %46 = vector.broadcast %cst_21 : f32 to vector<2x8x8xf32>
    %47 = arith.mulf %45, %46 : vector<2x8x8xf32>
    %48 = vector.shape_cast %2 : vector<8x8xf32> to vector<1x8x8xf32>
    %49 = vector.broadcast %48 : vector<1x8x8xf32> to vector<2x8x8xf32>
    %50 = arith.addf %47, %49 : vector<2x8x8xf32>
    %cst_22 = arith.constant dense<0xFF800000> : vector<2x8xf32>
    %51 = vector.multi_reduction <maximumf>, %50, %cst_22 [2] : vector<2x8x8xf32> to vector<2x8xf32>
    %52 = vector.shape_cast %51 : vector<2x8xf32> to vector<2x8x1xf32>
    %53 = vector.broadcast %52 : vector<2x8x1xf32> to vector<2x8x8xf32>
    %54 = arith.subf %50, %53 : vector<2x8x8xf32>
    %55 = math.exp %54 : vector<2x8x8xf32>
    %cst_23 = arith.constant dense<0.000000e+00> : vector<2x8xf32>
    %56 = vector.multi_reduction <add>, %55, %cst_23 [2] : vector<2x8x8xf32> to vector<2x8xf32>
    %57 = vector.shape_cast %56 : vector<2x8xf32> to vector<2x8x1xf32>
    %58 = vector.broadcast %57 : vector<2x8x1xf32> to vector<2x8x8xf32>
    %59 = arith.divf %55, %58 : vector<2x8x8xf32>
    %60 = arith.truncf %59 : vector<2x8x8xf32> to vector<2x8x8xbf16>
    %61 = arith.truncf %42 : vector<2x8x16xf32> to vector<2x8x16xbf16>
    "tpu.trace_start"() <{level = 10 : i32, message = "bqk,bkd->bqd"}> : () -> ()
    %cst_24 = arith.constant dense<0.000000e+00> : vector<2x8x16xf32>
    %62 = tpu.matmul %60, %61, %cst_24 {dimension_numbers = #tpu.dot_dimension_numbers<[2], [1], [1], [2], [0, 0, 0, 1, 1, 2], [0], [0]>} : vector<2x8x8xbf16>, vector<2x8x16xbf16>, vector<2x8x16xf32> -> vector<2x8x16xf32>
    "tpu.trace_stop"() : () -> ()
    %63 = vector.shape_cast %62 : vector<2x8x16xf32> to vector<16x16xf32>
    %64 = arith.truncf %63 : vector<16x16xf32> to vector<16x16xbf16>
    %65 = vector.extract_strided_slice %35 {offsets = [0, 0], sizes = [16, 32], strides = [1, 1]} : vector<32x32xbf16> to vector<16x32xbf16>
    %cst_25 = arith.constant dense<0.000000e+00> : vector<16x32xf32>
    %66 = tpu.matmul %64, %65, %cst_25 {dimension_numbers = #tpu.dot_dimension_numbers<[1], [0], [0], [1], [0, 0, 1, 1], [], []>} : vector<16x16xbf16>, vector<16x32xbf16>, vector<16x32xf32> -> vector<16x32xf32>
    %67 = vector.extract_strided_slice %32 {offsets = [0, 16], sizes = [16, 16], strides = [1, 1]} : vector<16x32xf32> to vector<16x16xf32>
    %68 = vector.shape_cast %67 : vector<16x16xf32> to vector<2x8x16xf32>
    %69 = vector.extract_strided_slice %33 {offsets = [0, 16], sizes = [16, 16], strides = [1, 1]} : vector<16x32xf32> to vector<16x16xf32>
    %70 = vector.shape_cast %69 : vector<16x16xf32> to vector<2x8x16xf32>
    %71 = vector.extract_strided_slice %34 {offsets = [0, 16], sizes = [16, 16], strides = [1, 1]} : vector<16x32xf32> to vector<16x16xf32>
    %72 = vector.shape_cast %71 : vector<16x16xf32> to vector<2x8x16xf32>
    %73 = arith.truncf %68 : vector<2x8x16xf32> to vector<2x8x16xbf16>
    %74 = arith.truncf %70 : vector<2x8x16xf32> to vector<2x8x16xbf16>
    "tpu.trace_start"() <{level = 10 : i32, message = "bqd,bkd->bqk"}> : () -> ()
    %cst_26 = arith.constant dense<0.000000e+00> : vector<2x8x8xf32>
    %75 = tpu.matmul %73, %74, %cst_26 {dimension_numbers = #tpu.dot_dimension_numbers<[2], [2], [1], [1], [0, 0, 0, 1, 1, 1], [0], [0]>} : vector<2x8x16xbf16>, vector<2x8x16xbf16>, vector<2x8x8xf32> -> vector<2x8x8xf32>
    "tpu.trace_stop"() : () -> ()
    %cst_27 = arith.constant 2.500000e-01 : f32
    %76 = vector.broadcast %cst_27 : f32 to vector<2x8x8xf32>
    %77 = arith.mulf %75, %76 : vector<2x8x8xf32>
    %78 = vector.shape_cast %2 : vector<8x8xf32> to vector<1x8x8xf32>
    %79 = vector.broadcast %78 : vector<1x8x8xf32> to vector<2x8x8xf32>
    %80 = arith.addf %77, %79 : vector<2x8x8xf32>
    %cst_28 = arith.constant dense<0xFF800000> : vector<2x8xf32>
    %81 = vector.multi_reduction <maximumf>, %80, %cst_28 [2] : vector<2x8x8xf32> to vector<2x8xf32>
    %82 = vector.shape_cast %81 : vector<2x8xf32> to vector<2x8x1xf32>
    %83 = vector.broadcast %82 : vector<2x8x1xf32> to vector<2x8x8xf32>
    %84 = arith.subf %80, %83 : vector<2x8x8xf32>
    %85 = math.exp %84 : vector<2x8x8xf32>
    %cst_29 = arith.constant dense<0.000000e+00> : vector<2x8xf32>
    %86 = vector.multi_reduction <add>, %85, %cst_29 [2] : vector<2x8x8xf32> to vector<2x8xf32>
    %87 = vector.shape_cast %86 : vector<2x8xf32> to vector<2x8x1xf32>
    %88 = vector.broadcast %87 : vector<2x8x1xf32> to vector<2x8x8xf32>
    %89 = arith.divf %85, %88 : vector<2x8x8xf32>
    %90 = arith.truncf %89 : vector<2x8x8xf32> to vector<2x8x8xbf16>
    %91 = arith.truncf %72 : vector<2x8x16xf32> to vector<2x8x16xbf16>
    "tpu.trace_start"() <{level = 10 : i32, message = "bqk,bkd->bqd"}> : () -> ()
    %cst_30 = arith.constant dense<0.000000e+00> : vector<2x8x16xf32>
    %92 = tpu.matmul %90, %91, %cst_30 {dimension_numbers = #tpu.dot_dimension_numbers<[2], [1], [1], [2], [0, 0, 0, 1, 1, 2], [0], [0]>} : vector<2x8x8xbf16>, vector<2x8x16xbf16>, vector<2x8x16xf32> -> vector<2x8x16xf32>
    "tpu.trace_stop"() : () -> ()
    %93 = vector.shape_cast %92 : vector<2x8x16xf32> to vector<16x16xf32>
    %94 = arith.truncf %93 : vector<16x16xf32> to vector<16x16xbf16>
    %95 = vector.extract_strided_slice %35 {offsets = [16, 0], sizes = [16, 32], strides = [1, 1]} : vector<32x32xbf16> to vector<16x32xbf16>
    %cst_31 = arith.constant dense<0.000000e+00> : vector<16x32xf32>
    %96 = tpu.matmul %94, %95, %cst_31 {dimension_numbers = #tpu.dot_dimension_numbers<[1], [0], [0], [1], [0, 0, 1, 1], [], []>} : vector<16x16xbf16>, vector<16x32xbf16>, vector<16x32xf32> -> vector<16x32xf32>
    %97 = arith.addf %66, %96 : vector<16x32xf32>
    %98 = vector.broadcast %36 : vector<1x32xf32> to vector<16x32xf32>
    %99 = arith.addf %97, %98 : vector<16x32xf32>
    %c0_32 = arith.constant 0 : index
    %c0_33 = arith.constant 0 : index
    %100 = vector.load %arg8[%c0_32, %c0_33] : memref<32x96xbf16, #tpu.memory_space<vmem>>, vector<32x96xbf16>
    %c0_34 = arith.constant 0 : index
    %c0_35 = arith.constant 0 : index
    %101 = vector.load %arg9[%c0_34, %c0_35] : memref<32x64xbf16, #tpu.memory_space<vmem>>, vector<32x64xbf16>
    %c0_36 = arith.constant 0 : index
    %c0_37 = arith.constant 0 : index
    %102 = vector.load %arg10[%c0_36, %c0_37] : memref<32x32xbf16, #tpu.memory_space<vmem>>, vector<32x32xbf16>
    %c0_38 = arith.constant 0 : index
    %c0_39 = arith.constant 0 : index
    %103 = vector.load %arg11[%c0_38, %c0_39] : memref<1x32xf32, #tpu.memory_space<vmem>>, vector<1x32xf32>
    %cst_40 = arith.constant 0.000000e+00 : f32
    %104 = vector.broadcast %cst_40 : f32 to vector<16x32xf32>
    %105 = arith.maximumf %99, %104 : vector<16x32xf32>
    %106 = arith.truncf %105 : vector<16x32xf32> to vector<16x32xbf16>
    %cst_41 = arith.constant dense<0.000000e+00> : vector<16x96xf32>
    %107 = tpu.matmul %106, %100, %cst_41 {dimension_numbers = #tpu.dot_dimension_numbers<[1], [0], [0], [1], [0, 0, 1, 1], [], []>} : vector<16x32xbf16>, vector<32x96xbf16>, vector<16x96xf32> -> vector<16x96xf32>
    %108 = arith.truncf %0 : vector<16x32xf32> to vector<16x32xbf16>
    %cst_42 = arith.constant dense<0.000000e+00> : vector<16x64xf32>
    %109 = tpu.matmul %108, %101, %cst_42 {dimension_numbers = #tpu.dot_dimension_numbers<[1], [0], [0], [1], [0, 0, 1, 1], [], []>} : vector<16x32xbf16>, vector<32x64xbf16>, vector<16x64xf32> -> vector<16x64xf32>
    %110 = vector.extract_strided_slice %107 {offsets = [0, 0], sizes = [16, 32], strides = [1, 1]} : vector<16x96xf32> to vector<16x32xf32>
    %111 = vector.extract_strided_slice %109 {offsets = [0, 0], sizes = [16, 32], strides = [1, 1]} : vector<16x64xf32> to vector<16x32xf32>
    %112 = arith.addf %110, %111 : vector<16x32xf32>
    %113 = arith.negf %112 : vector<16x32xf32>
    %114 = math.exp %113 : vector<16x32xf32>
    %cst_43 = arith.constant 1.000000e+00 : f32
    %115 = vector.broadcast %cst_43 : f32 to vector<16x32xf32>
    %116 = arith.addf %115, %114 : vector<16x32xf32>
    %117 = arith.divf %115, %116 : vector<16x32xf32>
    %118 = vector.extract_strided_slice %107 {offsets = [0, 32], sizes = [16, 32], strides = [1, 1]} : vector<16x96xf32> to vector<16x32xf32>
    %119 = vector.extract_strided_slice %109 {offsets = [0, 32], sizes = [16, 32], strides = [1, 1]} : vector<16x64xf32> to vector<16x32xf32>
    %120 = arith.addf %118, %119 : vector<16x32xf32>
    %121 = vector.broadcast %103 : vector<1x32xf32> to vector<16x32xf32>
    %122 = arith.subf %120, %121 : vector<16x32xf32>
    %123 = arith.negf %122 : vector<16x32xf32>
    %124 = math.exp %123 : vector<16x32xf32>
    %cst_44 = arith.constant 1.000000e+00 : f32
    %125 = vector.broadcast %cst_44 : f32 to vector<16x32xf32>
    %126 = arith.addf %125, %124 : vector<16x32xf32>
    %127 = arith.divf %125, %126 : vector<16x32xf32>
    %128 = vector.extract_strided_slice %107 {offsets = [0, 64], sizes = [16, 32], strides = [1, 1]} : vector<16x96xf32> to vector<16x32xf32>
    %129 = arith.mulf %117, %0 : vector<16x32xf32>
    %130 = arith.truncf %129 : vector<16x32xf32> to vector<16x32xbf16>
    %cst_45 = arith.constant dense<0.000000e+00> : vector<16x32xf32>
    %131 = tpu.matmul %130, %102, %cst_45 {dimension_numbers = #tpu.dot_dimension_numbers<[1], [0], [0], [1], [0, 0, 1, 1], [], []>} : vector<16x32xbf16>, vector<32x32xbf16>, vector<16x32xf32> -> vector<16x32xf32>
    %132 = arith.addf %128, %131 : vector<16x32xf32>
    %133 = math.tanh %132 : vector<16x32xf32>
    %cst_46 = arith.constant 1.000000e+00 : f32
    %134 = vector.broadcast %cst_46 : f32 to vector<16x32xf32>
    %135 = arith.subf %134, %127 : vector<16x32xf32>
    %136 = arith.mulf %135, %0 : vector<16x32xf32>
    %137 = arith.mulf %127, %133 : vector<16x32xf32>
    %138 = arith.addf %136, %137 : vector<16x32xf32>
    %c0_47 = arith.constant 0 : index
    %c0_48 = arith.constant 0 : index
    %139 = vector.load %arg12[%c0_47, %c0_48] : memref<2x32xf32, #tpu.memory_space<vmem>>, vector<2x32xf32>
    %cst_49 = arith.constant dense<0.000000e+00> : vector<16xf32>
    %140 = vector.multi_reduction <add>, %138, %cst_49 [1] : vector<16x32xf32> to vector<16xf32>
    %141 = vector.shape_cast %140 : vector<16xf32> to vector<16x1xf32>
    %cst_50 = arith.constant 3.200000e+01 : f32
    %142 = vector.broadcast %cst_50 : f32 to vector<16x1xf32>
    %143 = arith.divf %141, %142 : vector<16x1xf32>
    %144 = vector.broadcast %143 : vector<16x1xf32> to vector<16x32xf32>
    %145 = arith.subf %138, %144 : vector<16x32xf32>
    %146 = arith.mulf %145, %145 : vector<16x32xf32>
    %cst_51 = arith.constant dense<0.000000e+00> : vector<16xf32>
    %147 = vector.multi_reduction <add>, %146, %cst_51 [1] : vector<16x32xf32> to vector<16xf32>
    %148 = vector.shape_cast %147 : vector<16xf32> to vector<16x1xf32>
    %cst_52 = arith.constant 3.200000e+01 : f32
    %149 = vector.broadcast %cst_52 : f32 to vector<16x1xf32>
    %150 = arith.divf %148, %149 : vector<16x1xf32>
    %cst_53 = arith.constant 9.99999974E-6 : f32
    %151 = vector.broadcast %cst_53 : f32 to vector<16x1xf32>
    %152 = arith.addf %150, %151 : vector<16x1xf32>
    %153 = math.rsqrt %152 : vector<16x1xf32>
    %154 = vector.broadcast %153 : vector<16x1xf32> to vector<16x32xf32>
    %155 = arith.mulf %145, %154 : vector<16x32xf32>
    %156 = vector.extract_strided_slice %139 {offsets = [0, 0], sizes = [1, 32], strides = [1, 1]} : vector<2x32xf32> to vector<1x32xf32>
    %157 = vector.broadcast %156 : vector<1x32xf32> to vector<16x32xf32>
    %158 = arith.mulf %155, %157 : vector<16x32xf32>
    %159 = vector.extract_strided_slice %139 {offsets = [1, 0], sizes = [1, 32], strides = [1, 1]} : vector<2x32xf32> to vector<1x32xf32>
    %160 = vector.broadcast %159 : vector<1x32xf32> to vector<16x32xf32>
    %161 = arith.addf %158, %160 : vector<16x32xf32>
    %162 = arith.truncf %161 : vector<16x32xf32> to vector<16x32xbf16>
    %c0_54 = arith.constant 0 : index
    %c0_55 = arith.constant 0 : index
    %163 = vector.load %arg13[%c0_54, %c0_55] : memref<32x32xbf16, #tpu.memory_space<vmem>>, vector<32x32xbf16>
    %cst_56 = arith.constant dense<0.000000e+00> : vector<16x32xf32>
    %164 = tpu.matmul %162, %163, %cst_56 {dimension_numbers = #tpu.dot_dimension_numbers<[1], [0], [0], [1], [0, 0, 1, 1], [], []>} : vector<16x32xbf16>, vector<32x32xbf16>, vector<16x32xf32> -> vector<16x32xf32>
    %c0_57 = arith.constant 0 : index
    %c0_58 = arith.constant 0 : index
    %165 = vector.load %arg14[%c0_57, %c0_58] : memref<1x32xf32, #tpu.memory_space<vmem>>, vector<1x32xf32>
    %166 = vector.broadcast %165 : vector<1x32xf32> to vector<16x32xf32>
    %167 = arith.addf %164, %166 : vector<16x32xf32>
    %168 = arith.truncf %1 : vector<16x32xf32> to vector<16x32xbf16>
    %c0_59 = arith.constant 0 : index
    %c0_60 = arith.constant 0 : index
    %169 = vector.load %arg15[%c0_59, %c0_60] : memref<32x64xbf16, #tpu.memory_space<vmem>>, vector<32x64xbf16>
    %cst_61 = arith.constant dense<0.000000e+00> : vector<16x64xf32>
    %170 = tpu.matmul %168, %169, %cst_61 {dimension_numbers = #tpu.dot_dimension_numbers<[1], [0], [0], [1], [0, 0, 1, 1], [], []>} : vector<16x32xbf16>, vector<32x64xbf16>, vector<16x64xf32> -> vector<16x64xf32>
    %c0_62 = arith.constant 0 : index
    %c0_63 = arith.constant 0 : index
    %171 = vector.load %arg16[%c0_62, %c0_63] : memref<1x64xf32, #tpu.memory_space<vmem>>, vector<1x64xf32>
    %172 = vector.broadcast %171 : vector<1x64xf32> to vector<16x64xf32>
    %173 = arith.addf %170, %172 : vector<16x64xf32>
    %174 = vector.extract_strided_slice %173 {offsets = [0, 0], sizes = [16, 32], strides = [1, 1]} : vector<16x64xf32> to vector<16x32xf32>
    %175 = vector.extract_strided_slice %173 {offsets = [0, 32], sizes = [16, 32], strides = [1, 1]} : vector<16x64xf32> to vector<16x32xf32>
    %c0_64 = arith.constant 0 : index
    %c0_65 = arith.constant 0 : index
    %176 = vector.load %arg17[%c0_64, %c0_65] : memref<32x32xbf16, #tpu.memory_space<vmem>>, vector<32x32xbf16>
    %c0_66 = arith.constant 0 : index
    %c0_67 = arith.constant 0 : index
    %177 = vector.load %arg18[%c0_66, %c0_67] : memref<1x32xf32, #tpu.memory_space<vmem>>, vector<1x32xf32>
    %178 = vector.extract_strided_slice %167 {offsets = [0, 0], sizes = [16, 16], strides = [1, 1]} : vector<16x32xf32> to vector<16x16xf32>
    %179 = vector.shape_cast %178 : vector<16x16xf32> to vector<2x8x16xf32>
    %180 = vector.extract_strided_slice %174 {offsets = [0, 0], sizes = [16, 16], strides = [1, 1]} : vector<16x32xf32> to vector<16x16xf32>
    %181 = vector.shape_cast %180 : vector<16x16xf32> to vector<2x8x16xf32>
    %182 = vector.extract_strided_slice %175 {offsets = [0, 0], sizes = [16, 16], strides = [1, 1]} : vector<16x32xf32> to vector<16x16xf32>
    %183 = vector.shape_cast %182 : vector<16x16xf32> to vector<2x8x16xf32>
    %184 = arith.truncf %179 : vector<2x8x16xf32> to vector<2x8x16xbf16>
    %185 = arith.truncf %181 : vector<2x8x16xf32> to vector<2x8x16xbf16>
    "tpu.trace_start"() <{level = 10 : i32, message = "bqd,bkd->bqk"}> : () -> ()
    %cst_68 = arith.constant dense<0.000000e+00> : vector<2x8x8xf32>
    %186 = tpu.matmul %184, %185, %cst_68 {dimension_numbers = #tpu.dot_dimension_numbers<[2], [2], [1], [1], [0, 0, 0, 1, 1, 1], [0], [0]>} : vector<2x8x16xbf16>, vector<2x8x16xbf16>, vector<2x8x8xf32> -> vector<2x8x8xf32>
    "tpu.trace_stop"() : () -> ()
    %cst_69 = arith.constant 2.500000e-01 : f32
    %187 = vector.broadcast %cst_69 : f32 to vector<2x8x8xf32>
    %188 = arith.mulf %186, %187 : vector<2x8x8xf32>
    %cst_70 = arith.constant dense<0xFF800000> : vector<2x8xf32>
    %189 = vector.multi_reduction <maximumf>, %188, %cst_70 [2] : vector<2x8x8xf32> to vector<2x8xf32>
    %190 = vector.shape_cast %189 : vector<2x8xf32> to vector<2x8x1xf32>
    %191 = vector.broadcast %190 : vector<2x8x1xf32> to vector<2x8x8xf32>
    %192 = arith.subf %188, %191 : vector<2x8x8xf32>
    %193 = math.exp %192 : vector<2x8x8xf32>
    %cst_71 = arith.constant dense<0.000000e+00> : vector<2x8xf32>
    %194 = vector.multi_reduction <add>, %193, %cst_71 [2] : vector<2x8x8xf32> to vector<2x8xf32>
    %195 = vector.shape_cast %194 : vector<2x8xf32> to vector<2x8x1xf32>
    %196 = vector.broadcast %195 : vector<2x8x1xf32> to vector<2x8x8xf32>
    %197 = arith.divf %193, %196 : vector<2x8x8xf32>
    %198 = arith.truncf %197 : vector<2x8x8xf32> to vector<2x8x8xbf16>
    %199 = arith.truncf %183 : vector<2x8x16xf32> to vector<2x8x16xbf16>
    "tpu.trace_start"() <{level = 10 : i32, message = "bqk,bkd->bqd"}> : () -> ()
    %cst_72 = arith.constant dense<0.000000e+00> : vector<2x8x16xf32>
    %200 = tpu.matmul %198, %199, %cst_72 {dimension_numbers = #tpu.dot_dimension_numbers<[2], [1], [1], [2], [0, 0, 0, 1, 1, 2], [0], [0]>} : vector<2x8x8xbf16>, vector<2x8x16xbf16>, vector<2x8x16xf32> -> vector<2x8x16xf32>
    "tpu.trace_stop"() : () -> ()
    %201 = vector.shape_cast %200 : vector<2x8x16xf32> to vector<16x16xf32>
    %202 = arith.truncf %201 : vector<16x16xf32> to vector<16x16xbf16>
    %203 = vector.extract_strided_slice %176 {offsets = [0, 0], sizes = [16, 32], strides = [1, 1]} : vector<32x32xbf16> to vector<16x32xbf16>
    %cst_73 = arith.constant dense<0.000000e+00> : vector<16x32xf32>
    %204 = tpu.matmul %202, %203, %cst_73 {dimension_numbers = #tpu.dot_dimension_numbers<[1], [0], [0], [1], [0, 0, 1, 1], [], []>} : vector<16x16xbf16>, vector<16x32xbf16>, vector<16x32xf32> -> vector<16x32xf32>
    %205 = vector.extract_strided_slice %167 {offsets = [0, 16], sizes = [16, 16], strides = [1, 1]} : vector<16x32xf32> to vector<16x16xf32>
    %206 = vector.shape_cast %205 : vector<16x16xf32> to vector<2x8x16xf32>
    %207 = vector.extract_strided_slice %174 {offsets = [0, 16], sizes = [16, 16], strides = [1, 1]} : vector<16x32xf32> to vector<16x16xf32>
    %208 = vector.shape_cast %207 : vector<16x16xf32> to vector<2x8x16xf32>
    %209 = vector.extract_strided_slice %175 {offsets = [0, 16], sizes = [16, 16], strides = [1, 1]} : vector<16x32xf32> to vector<16x16xf32>
    %210 = vector.shape_cast %209 : vector<16x16xf32> to vector<2x8x16xf32>
    %211 = arith.truncf %206 : vector<2x8x16xf32> to vector<2x8x16xbf16>
    %212 = arith.truncf %208 : vector<2x8x16xf32> to vector<2x8x16xbf16>
    "tpu.trace_start"() <{level = 10 : i32, message = "bqd,bkd->bqk"}> : () -> ()
    %cst_74 = arith.constant dense<0.000000e+00> : vector<2x8x8xf32>
    %213 = tpu.matmul %211, %212, %cst_74 {dimension_numbers = #tpu.dot_dimension_numbers<[2], [2], [1], [1], [0, 0, 0, 1, 1, 1], [0], [0]>} : vector<2x8x16xbf16>, vector<2x8x16xbf16>, vector<2x8x8xf32> -> vector<2x8x8xf32>
    "tpu.trace_stop"() : () -> ()
    %cst_75 = arith.constant 2.500000e-01 : f32
    %214 = vector.broadcast %cst_75 : f32 to vector<2x8x8xf32>
    %215 = arith.mulf %213, %214 : vector<2x8x8xf32>
    %cst_76 = arith.constant dense<0xFF800000> : vector<2x8xf32>
    %216 = vector.multi_reduction <maximumf>, %215, %cst_76 [2] : vector<2x8x8xf32> to vector<2x8xf32>
    %217 = vector.shape_cast %216 : vector<2x8xf32> to vector<2x8x1xf32>
    %218 = vector.broadcast %217 : vector<2x8x1xf32> to vector<2x8x8xf32>
    %219 = arith.subf %215, %218 : vector<2x8x8xf32>
    %220 = math.exp %219 : vector<2x8x8xf32>
    %cst_77 = arith.constant dense<0.000000e+00> : vector<2x8xf32>
    %221 = vector.multi_reduction <add>, %220, %cst_77 [2] : vector<2x8x8xf32> to vector<2x8xf32>
    %222 = vector.shape_cast %221 : vector<2x8xf32> to vector<2x8x1xf32>
    %223 = vector.broadcast %222 : vector<2x8x1xf32> to vector<2x8x8xf32>
    %224 = arith.divf %220, %223 : vector<2x8x8xf32>
    %225 = arith.truncf %224 : vector<2x8x8xf32> to vector<2x8x8xbf16>
    %226 = arith.truncf %210 : vector<2x8x16xf32> to vector<2x8x16xbf16>
    "tpu.trace_start"() <{level = 10 : i32, message = "bqk,bkd->bqd"}> : () -> ()
    %cst_78 = arith.constant dense<0.000000e+00> : vector<2x8x16xf32>
    %227 = tpu.matmul %225, %226, %cst_78 {dimension_numbers = #tpu.dot_dimension_numbers<[2], [1], [1], [2], [0, 0, 0, 1, 1, 2], [0], [0]>} : vector<2x8x8xbf16>, vector<2x8x16xbf16>, vector<2x8x16xf32> -> vector<2x8x16xf32>
    "tpu.trace_stop"() : () -> ()
    %228 = vector.shape_cast %227 : vector<2x8x16xf32> to vector<16x16xf32>
    %229 = arith.truncf %228 : vector<16x16xf32> to vector<16x16xbf16>
    %230 = vector.extract_strided_slice %176 {offsets = [16, 0], sizes = [16, 32], strides = [1, 1]} : vector<32x32xbf16> to vector<16x32xbf16>
    %cst_79 = arith.constant dense<0.000000e+00> : vector<16x32xf32>
    %231 = tpu.matmul %229, %230, %cst_79 {dimension_numbers = #tpu.dot_dimension_numbers<[1], [0], [0], [1], [0, 0, 1, 1], [], []>} : vector<16x16xbf16>, vector<16x32xbf16>, vector<16x32xf32> -> vector<16x32xf32>
    %232 = arith.addf %204, %231 : vector<16x32xf32>
    %233 = vector.broadcast %177 : vector<1x32xf32> to vector<16x32xf32>
    %234 = arith.addf %232, %233 : vector<16x32xf32>
    %c0_80 = arith.constant 0 : index
    %c0_81 = arith.constant 0 : index
    %235 = vector.load %arg19[%c0_80, %c0_81] : memref<32x96xbf16, #tpu.memory_space<vmem>>, vector<32x96xbf16>
    %c0_82 = arith.constant 0 : index
    %c0_83 = arith.constant 0 : index
    %236 = vector.load %arg20[%c0_82, %c0_83] : memref<32x64xbf16, #tpu.memory_space<vmem>>, vector<32x64xbf16>
    %c0_84 = arith.constant 0 : index
    %c0_85 = arith.constant 0 : index
    %237 = vector.load %arg21[%c0_84, %c0_85] : memref<32x32xbf16, #tpu.memory_space<vmem>>, vector<32x32xbf16>
    %c0_86 = arith.constant 0 : index
    %c0_87 = arith.constant 0 : index
    %238 = vector.load %arg22[%c0_86, %c0_87] : memref<1x32xf32, #tpu.memory_space<vmem>>, vector<1x32xf32>
    %cst_88 = arith.constant 0.000000e+00 : f32
    %239 = vector.broadcast %cst_88 : f32 to vector<16x32xf32>
    %240 = arith.maximumf %234, %239 : vector<16x32xf32>
    %241 = arith.truncf %240 : vector<16x32xf32> to vector<16x32xbf16>
    %cst_89 = arith.constant dense<0.000000e+00> : vector<16x96xf32>
    %242 = tpu.matmul %241, %235, %cst_89 {dimension_numbers = #tpu.dot_dimension_numbers<[1], [0], [0], [1], [0, 0, 1, 1], [], []>} : vector<16x32xbf16>, vector<32x96xbf16>, vector<16x96xf32> -> vector<16x96xf32>
    %243 = arith.truncf %138 : vector<16x32xf32> to vector<16x32xbf16>
    %cst_90 = arith.constant dense<0.000000e+00> : vector<16x64xf32>
    %244 = tpu.matmul %243, %236, %cst_90 {dimension_numbers = #tpu.dot_dimension_numbers<[1], [0], [0], [1], [0, 0, 1, 1], [], []>} : vector<16x32xbf16>, vector<32x64xbf16>, vector<16x64xf32> -> vector<16x64xf32>
    %245 = vector.extract_strided_slice %242 {offsets = [0, 0], sizes = [16, 32], strides = [1, 1]} : vector<16x96xf32> to vector<16x32xf32>
    %246 = vector.extract_strided_slice %244 {offsets = [0, 0], sizes = [16, 32], strides = [1, 1]} : vector<16x64xf32> to vector<16x32xf32>
    %247 = arith.addf %245, %246 : vector<16x32xf32>
    %248 = arith.negf %247 : vector<16x32xf32>
    %249 = math.exp %248 : vector<16x32xf32>
    %cst_91 = arith.constant 1.000000e+00 : f32
    %250 = vector.broadcast %cst_91 : f32 to vector<16x32xf32>
    %251 = arith.addf %250, %249 : vector<16x32xf32>
    %252 = arith.divf %250, %251 : vector<16x32xf32>
    %253 = vector.extract_strided_slice %242 {offsets = [0, 32], sizes = [16, 32], strides = [1, 1]} : vector<16x96xf32> to vector<16x32xf32>
    %254 = vector.extract_strided_slice %244 {offsets = [0, 32], sizes = [16, 32], strides = [1, 1]} : vector<16x64xf32> to vector<16x32xf32>
    %255 = arith.addf %253, %254 : vector<16x32xf32>
    %256 = vector.broadcast %238 : vector<1x32xf32> to vector<16x32xf32>
    %257 = arith.subf %255, %256 : vector<16x32xf32>
    %258 = arith.negf %257 : vector<16x32xf32>
    %259 = math.exp %258 : vector<16x32xf32>
    %cst_92 = arith.constant 1.000000e+00 : f32
    %260 = vector.broadcast %cst_92 : f32 to vector<16x32xf32>
    %261 = arith.addf %260, %259 : vector<16x32xf32>
    %262 = arith.divf %260, %261 : vector<16x32xf32>
    %263 = vector.extract_strided_slice %242 {offsets = [0, 64], sizes = [16, 32], strides = [1, 1]} : vector<16x96xf32> to vector<16x32xf32>
    %264 = arith.mulf %252, %138 : vector<16x32xf32>
    %265 = arith.truncf %264 : vector<16x32xf32> to vector<16x32xbf16>
    %cst_93 = arith.constant dense<0.000000e+00> : vector<16x32xf32>
    %266 = tpu.matmul %265, %237, %cst_93 {dimension_numbers = #tpu.dot_dimension_numbers<[1], [0], [0], [1], [0, 0, 1, 1], [], []>} : vector<16x32xbf16>, vector<32x32xbf16>, vector<16x32xf32> -> vector<16x32xf32>
    %267 = arith.addf %263, %266 : vector<16x32xf32>
    %268 = math.tanh %267 : vector<16x32xf32>
    %cst_94 = arith.constant 1.000000e+00 : f32
    %269 = vector.broadcast %cst_94 : f32 to vector<16x32xf32>
    %270 = arith.subf %269, %262 : vector<16x32xf32>
    %271 = arith.mulf %270, %138 : vector<16x32xf32>
    %272 = arith.mulf %262, %268 : vector<16x32xf32>
    %273 = arith.addf %271, %272 : vector<16x32xf32>
    %c0_95 = arith.constant 0 : index
    %c0_96 = arith.constant 0 : index
    %274 = vector.load %arg23[%c0_95, %c0_96] : memref<2x32xf32, #tpu.memory_space<vmem>>, vector<2x32xf32>
    %cst_97 = arith.constant dense<0.000000e+00> : vector<16xf32>
    %275 = vector.multi_reduction <add>, %273, %cst_97 [1] : vector<16x32xf32> to vector<16xf32>
    %276 = vector.shape_cast %275 : vector<16xf32> to vector<16x1xf32>
    %cst_98 = arith.constant 3.200000e+01 : f32
    %277 = vector.broadcast %cst_98 : f32 to vector<16x1xf32>
    %278 = arith.divf %276, %277 : vector<16x1xf32>
    %279 = vector.broadcast %278 : vector<16x1xf32> to vector<16x32xf32>
    %280 = arith.subf %273, %279 : vector<16x32xf32>
    %281 = arith.mulf %280, %280 : vector<16x32xf32>
    %cst_99 = arith.constant dense<0.000000e+00> : vector<16xf32>
    %282 = vector.multi_reduction <add>, %281, %cst_99 [1] : vector<16x32xf32> to vector<16xf32>
    %283 = vector.shape_cast %282 : vector<16xf32> to vector<16x1xf32>
    %cst_100 = arith.constant 3.200000e+01 : f32
    %284 = vector.broadcast %cst_100 : f32 to vector<16x1xf32>
    %285 = arith.divf %283, %284 : vector<16x1xf32>
    %cst_101 = arith.constant 9.99999974E-6 : f32
    %286 = vector.broadcast %cst_101 : f32 to vector<16x1xf32>
    %287 = arith.addf %285, %286 : vector<16x1xf32>
    %288 = math.rsqrt %287 : vector<16x1xf32>
    %289 = vector.broadcast %288 : vector<16x1xf32> to vector<16x32xf32>
    %290 = arith.mulf %280, %289 : vector<16x32xf32>
    %291 = vector.extract_strided_slice %274 {offsets = [0, 0], sizes = [1, 32], strides = [1, 1]} : vector<2x32xf32> to vector<1x32xf32>
    %292 = vector.broadcast %291 : vector<1x32xf32> to vector<16x32xf32>
    %293 = arith.mulf %290, %292 : vector<16x32xf32>
    %294 = vector.extract_strided_slice %274 {offsets = [1, 0], sizes = [1, 32], strides = [1, 1]} : vector<2x32xf32> to vector<1x32xf32>
    %295 = vector.broadcast %294 : vector<1x32xf32> to vector<16x32xf32>
    %296 = arith.addf %293, %295 : vector<16x32xf32>
    %c0_102 = arith.constant 0 : index
    %c0_103 = arith.constant 0 : index
    %297 = vector.load %arg24[%c0_102, %c0_103] : memref<32x64xbf16, #tpu.memory_space<vmem>>, vector<32x64xbf16>
    %c0_104 = arith.constant 0 : index
    %c0_105 = arith.constant 0 : index
    %298 = vector.load %arg25[%c0_104, %c0_105] : memref<1x64xf32, #tpu.memory_space<vmem>>, vector<1x64xf32>
    %c0_106 = arith.constant 0 : index
    %c0_107 = arith.constant 0 : index
    %299 = vector.load %arg26[%c0_106, %c0_107] : memref<64x32xbf16, #tpu.memory_space<vmem>>, vector<64x32xbf16>
    %c0_108 = arith.constant 0 : index
    %c0_109 = arith.constant 0 : index
    %300 = vector.load %arg27[%c0_108, %c0_109] : memref<1x32xf32, #tpu.memory_space<vmem>>, vector<1x32xf32>
    %301 = arith.truncf %296 : vector<16x32xf32> to vector<16x32xbf16>
    %cst_110 = arith.constant dense<0.000000e+00> : vector<16x64xf32>
    %302 = tpu.matmul %301, %297, %cst_110 {dimension_numbers = #tpu.dot_dimension_numbers<[1], [0], [0], [1], [0, 0, 1, 1], [], []>} : vector<16x32xbf16>, vector<32x64xbf16>, vector<16x64xf32> -> vector<16x64xf32>
    %303 = vector.broadcast %298 : vector<1x64xf32> to vector<16x64xf32>
    %304 = arith.addf %302, %303 : vector<16x64xf32>
    %cst_111 = arith.constant 0.000000e+00 : f32
    %305 = vector.broadcast %cst_111 : f32 to vector<16x64xf32>
    %306 = arith.maximumf %304, %305 : vector<16x64xf32>
    %307 = arith.truncf %306 : vector<16x64xf32> to vector<16x64xbf16>
    %cst_112 = arith.constant dense<0.000000e+00> : vector<16x32xf32>
    %308 = tpu.matmul %307, %299, %cst_112 {dimension_numbers = #tpu.dot_dimension_numbers<[1], [0], [0], [1], [0, 0, 1, 1], [], []>} : vector<16x64xbf16>, vector<64x32xbf16>, vector<16x32xf32> -> vector<16x32xf32>
    %309 = vector.broadcast %300 : vector<1x32xf32> to vector<16x32xf32>
    %310 = arith.addf %308, %309 : vector<16x32xf32>
    %c0_113 = arith.constant 0 : index
    %c0_114 = arith.constant 0 : index
    %311 = vector.load %arg28[%c0_113, %c0_114] : memref<32x96xbf16, #tpu.memory_space<vmem>>, vector<32x96xbf16>
    %c0_115 = arith.constant 0 : index
    %c0_116 = arith.constant 0 : index
    %312 = vector.load %arg29[%c0_115, %c0_116] : memref<32x64xbf16, #tpu.memory_space<vmem>>, vector<32x64xbf16>
    %c0_117 = arith.constant 0 : index
    %c0_118 = arith.constant 0 : index
    %313 = vector.load %arg30[%c0_117, %c0_118] : memref<32x32xbf16, #tpu.memory_space<vmem>>, vector<32x32xbf16>
    %c0_119 = arith.constant 0 : index
    %c0_120 = arith.constant 0 : index
    %314 = vector.load %arg31[%c0_119, %c0_120] : memref<1x32xf32, #tpu.memory_space<vmem>>, vector<1x32xf32>
    %cst_121 = arith.constant 0.000000e+00 : f32
    %315 = vector.broadcast %cst_121 : f32 to vector<16x32xf32>
    %316 = arith.maximumf %310, %315 : vector<16x32xf32>
    %317 = arith.truncf %316 : vector<16x32xf32> to vector<16x32xbf16>
    %cst_122 = arith.constant dense<0.000000e+00> : vector<16x96xf32>
    %318 = tpu.matmul %317, %311, %cst_122 {dimension_numbers = #tpu.dot_dimension_numbers<[1], [0], [0], [1], [0, 0, 1, 1], [], []>} : vector<16x32xbf16>, vector<32x96xbf16>, vector<16x96xf32> -> vector<16x96xf32>
    %319 = arith.truncf %273 : vector<16x32xf32> to vector<16x32xbf16>
    %cst_123 = arith.constant dense<0.000000e+00> : vector<16x64xf32>
    %320 = tpu.matmul %319, %312, %cst_123 {dimension_numbers = #tpu.dot_dimension_numbers<[1], [0], [0], [1], [0, 0, 1, 1], [], []>} : vector<16x32xbf16>, vector<32x64xbf16>, vector<16x64xf32> -> vector<16x64xf32>
    %321 = vector.extract_strided_slice %318 {offsets = [0, 0], sizes = [16, 32], strides = [1, 1]} : vector<16x96xf32> to vector<16x32xf32>
    %322 = vector.extract_strided_slice %320 {offsets = [0, 0], sizes = [16, 32], strides = [1, 1]} : vector<16x64xf32> to vector<16x32xf32>
    %323 = arith.addf %321, %322 : vector<16x32xf32>
    %324 = arith.negf %323 : vector<16x32xf32>
    %325 = math.exp %324 : vector<16x32xf32>
    %cst_124 = arith.constant 1.000000e+00 : f32
    %326 = vector.broadcast %cst_124 : f32 to vector<16x32xf32>
    %327 = arith.addf %326, %325 : vector<16x32xf32>
    %328 = arith.divf %326, %327 : vector<16x32xf32>
    %329 = vector.extract_strided_slice %318 {offsets = [0, 32], sizes = [16, 32], strides = [1, 1]} : vector<16x96xf32> to vector<16x32xf32>
    %330 = vector.extract_strided_slice %320 {offsets = [0, 32], sizes = [16, 32], strides = [1, 1]} : vector<16x64xf32> to vector<16x32xf32>
    %331 = arith.addf %329, %330 : vector<16x32xf32>
    %332 = vector.broadcast %314 : vector<1x32xf32> to vector<16x32xf32>
    %333 = arith.subf %331, %332 : vector<16x32xf32>
    %334 = arith.negf %333 : vector<16x32xf32>
    %335 = math.exp %334 : vector<16x32xf32>
    %cst_125 = arith.constant 1.000000e+00 : f32
    %336 = vector.broadcast %cst_125 : f32 to vector<16x32xf32>
    %337 = arith.addf %336, %335 : vector<16x32xf32>
    %338 = arith.divf %336, %337 : vector<16x32xf32>
    %339 = vector.extract_strided_slice %318 {offsets = [0, 64], sizes = [16, 32], strides = [1, 1]} : vector<16x96xf32> to vector<16x32xf32>
    %340 = arith.mulf %328, %273 : vector<16x32xf32>
    %341 = arith.truncf %340 : vector<16x32xf32> to vector<16x32xbf16>
    %cst_126 = arith.constant dense<0.000000e+00> : vector<16x32xf32>
    %342 = tpu.matmul %341, %313, %cst_126 {dimension_numbers = #tpu.dot_dimension_numbers<[1], [0], [0], [1], [0, 0, 1, 1], [], []>} : vector<16x32xbf16>, vector<32x32xbf16>, vector<16x32xf32> -> vector<16x32xf32>
    %343 = arith.addf %339, %342 : vector<16x32xf32>
    %344 = math.tanh %343 : vector<16x32xf32>
    %cst_127 = arith.constant 1.000000e+00 : f32
    %345 = vector.broadcast %cst_127 : f32 to vector<16x32xf32>
    %346 = arith.subf %345, %338 : vector<16x32xf32>
    %347 = arith.mulf %346, %273 : vector<16x32xf32>
    %348 = arith.mulf %338, %344 : vector<16x32xf32>
    %349 = arith.addf %347, %348 : vector<16x32xf32>
    %c0_128 = arith.constant 0 : index
    %c0_129 = arith.constant 0 : index
    %350 = vector.load %arg32[%c0_128, %c0_129] : memref<16x32xf32, #tpu.memory_space<vmem>>, vector<16x32xf32>
    tpu.vector_store %arg32[%c0_128, %c0_129], %349 {strides = array<i32>} : memref<16x32xf32, #tpu.memory_space<vmem>>, vector<16x32xf32>,
    return
  }
}

module attributes {stable_mosaic.version = 11 : i64} {
  func.func @_mlp_head_kernel(%arg0: memref<16x32xf32, #tpu.memory_space<vmem>>, %arg1: memref<32x256xbf16, #tpu.memory_space<vmem>>, %arg2: memref<1x256xf32, #tpu.memory_space<vmem>>, %arg3: memref<256x256xbf16, #tpu.memory_space<vmem>>, %arg4: memref<1x256xf32, #tpu.memory_space<vmem>>, %arg5: memref<256x8xbf16, #tpu.memory_space<vmem>>, %arg6: memref<1x8xf32, #tpu.memory_space<vmem>>, %arg7: memref<16x8xf32, #tpu.memory_space<vmem>>) attributes {dimension_semantics = [], scalar_prefetch = 0 : i64, scratch_operands = 0 : i64, tpu.core_type = #tpu.core_type<tc>} {
    %c0 = arith.constant 0 : index
    %c0_0 = arith.constant 0 : index
    %0 = vector.load %arg0[%c0, %c0_0] : memref<16x32xf32, #tpu.memory_space<vmem>>, vector<16x32xf32>
    %1 = arith.truncf %0 : vector<16x32xf32> to vector<16x32xbf16>
    %c0_1 = arith.constant 0 : index
    %c0_2 = arith.constant 0 : index
    %2 = vector.load %arg1[%c0_1, %c0_2] : memref<32x256xbf16, #tpu.memory_space<vmem>>, vector<32x256xbf16>
    %cst = arith.constant dense<0.000000e+00> : vector<16x256xf32>
    %3 = tpu.matmul %1, %2, %cst {dimension_numbers = #tpu.dot_dimension_numbers<[1], [0], [0], [1], [0, 0, 1, 1], [], []>} : vector<16x32xbf16>, vector<32x256xbf16>, vector<16x256xf32> -> vector<16x256xf32>
    %c0_3 = arith.constant 0 : index
    %c0_4 = arith.constant 0 : index
    %4 = vector.load %arg2[%c0_3, %c0_4] : memref<1x256xf32, #tpu.memory_space<vmem>>, vector<1x256xf32>
    %5 = vector.broadcast %4 : vector<1x256xf32> to vector<16x256xf32>
    %6 = arith.addf %3, %5 : vector<16x256xf32>
    %cst_5 = arith.constant 0.000000e+00 : f32
    %7 = vector.broadcast %cst_5 : f32 to vector<16x256xf32>
    %8 = arith.maximumf %6, %7 : vector<16x256xf32>
    %9 = arith.truncf %8 : vector<16x256xf32> to vector<16x256xbf16>
    %c0_6 = arith.constant 0 : index
    %c0_7 = arith.constant 0 : index
    %10 = vector.load %arg3[%c0_6, %c0_7] : memref<256x256xbf16, #tpu.memory_space<vmem>>, vector<256x256xbf16>
    %cst_8 = arith.constant dense<0.000000e+00> : vector<16x256xf32>
    %11 = tpu.matmul %9, %10, %cst_8 {dimension_numbers = #tpu.dot_dimension_numbers<[1], [0], [0], [1], [0, 0, 1, 1], [], []>} : vector<16x256xbf16>, vector<256x256xbf16>, vector<16x256xf32> -> vector<16x256xf32>
    %c0_9 = arith.constant 0 : index
    %c0_10 = arith.constant 0 : index
    %12 = vector.load %arg4[%c0_9, %c0_10] : memref<1x256xf32, #tpu.memory_space<vmem>>, vector<1x256xf32>
    %13 = vector.broadcast %12 : vector<1x256xf32> to vector<16x256xf32>
    %14 = arith.addf %11, %13 : vector<16x256xf32>
    %cst_11 = arith.constant 0.000000e+00 : f32
    %15 = vector.broadcast %cst_11 : f32 to vector<16x256xf32>
    %16 = arith.maximumf %14, %15 : vector<16x256xf32>
    %17 = arith.truncf %16 : vector<16x256xf32> to vector<16x256xbf16>
    %c0_12 = arith.constant 0 : index
    %c0_13 = arith.constant 0 : index
    %18 = vector.load %arg5[%c0_12, %c0_13] : memref<256x8xbf16, #tpu.memory_space<vmem>>, vector<256x8xbf16>
    %cst_14 = arith.constant dense<0.000000e+00> : vector<16x8xf32>
    %19 = tpu.matmul %17, %18, %cst_14 {dimension_numbers = #tpu.dot_dimension_numbers<[1], [0], [0], [1], [0, 0, 1, 1], [], []>} : vector<16x256xbf16>, vector<256x8xbf16>, vector<16x8xf32> -> vector<16x8xf32>
    %c0_15 = arith.constant 0 : index
    %c0_16 = arith.constant 0 : index
    %20 = vector.load %arg6[%c0_15, %c0_16] : memref<1x8xf32, #tpu.memory_space<vmem>>, vector<1x8xf32>
    %21 = vector.broadcast %20 : vector<1x8xf32> to vector<16x8xf32>
    %22 = arith.addf %19, %21 : vector<16x8xf32>
    %c0_17 = arith.constant 0 : index
    %c0_18 = arith.constant 0 : index
    %23 = vector.load %arg7[%c0_17, %c0_18] : memref<16x8xf32, #tpu.memory_space<vmem>>, vector<16x8xf32>
    tpu.vector_store %arg7[%c0_17, %c0_18], %22 {strides = array<i32>} : memref<16x8xf32, #tpu.memory_space<vmem>>, vector<16x8xf32>,
    return
  }
}

</mosaic_0001>

<bundles_post_ra>
// kernel: pi_transformer_forward.4
= control target key start
LH: loop header
LB: loop body
LE: loop exit
PB: predicated region body
PF: predicated region fallthrough
CT: control target
= control target key end

     0   :  { %vm33_vm0 = vcmask 130048   ;;  %vm59_vm1 = vcmask 261120   ;;  %s127_s1 = inlined_call_operand.vmem [shape: bf16[16,32], index: 1, kind: input, shape index: {}]   ;;  %s128_s0 = inlined_call_operand.vmem [shape: f32[32,16], index: 0, kind: input, shape index: {}]   ;;  %s129_s2 = inlined_call_operand.vmem [shape: f32[1,32], index: 2, kind: input, shape index: {}]   ;;  %s130_s3 = inlined_call_operand.vmem [shape: f32[32,32], index: 3, kind: output, shape index: {}]  }
   0x1   :  { %v74_v0 = vld [vmem:[%s127_s1] sm:$0xff]  ;;  %v16_v2 = vld [vmem:[%s128_s0 + $0x8] sm:$0xff]  ;;  %v17_v4 = vld [vmem:[%s128_s0 + $0x10] sm:$0xff] }
   0x2   :  { %v15_v1 = vld [vmem:[%s128_s0] sm:$0xff]  ;;  %v18_v5 = vld [vmem:[%s128_s0 + $0x18] sm:$0xff]  ;;  %47 = vmatpush.bf16.msra.mxu0 %v74_v0  ;;  %75 = vmatpush.bf16.msra.mxu1 %v74_v0 }
   0x3   :  { %v19_v3 = vpack.c.bf16 %v16_v2, %v15_v1  ;;  %v20_v6 = vpack.c.bf16 %v18_v5, %v17_v4  ;;  %v76_v7 = vld [vmem:[%s129_s2] ss:$0 sm:$0xff] }
   0x5   :  { %72 = vmatmul.msk.bf16.vlgmr.msra.gmra.mxu0 %vm33_vm0, %v19_v3  ;;  %73 = vmatmul.msk.bf16.vlgmr.msra.gmra.mxu1 %vm33_vm0, %v20_v6 }
  0x82   :  { %v49_v8 = vpop.f32.mrf.mxu0  ;;  %v54_v9 = vpop.f32.mrf.mxu1 }
  0x83   :  { %v50_v10 = vadd.f32 %v76_v7, %v49_v8  ;;  %v55_v11 = vadd.f32 %v76_v7, %v54_v9 }
  0x85   :  { %60 = vst.msk [vmem:[%s130_s3] sm:$0xff] %vm59_vm1, %v50_v10 }
  0x86   :  { %62 = vst.msk [vmem:[%s130_s3 + $0x10] sm:$0xff] %vm59_vm1, %v55_v11 }
  0x8a   :  { %v51_v12 = vpop.f32.mrf.mxu0  ;;  %v56_v13 = vpop.f32.mrf.mxu1 }
  0x8b   :  { %v52_v14 = vadd.f32 %v76_v7, %v51_v12  ;;  %v57_v15 = vadd.f32 %v76_v7, %v56_v13 }
  0x8d   :  { %61 = vst.msk [vmem:[%s130_s3 + $0x8] sm:$0xff] %vm59_vm1, %v52_v14 }
  0x8e   :  { %63 = vst.msk [vmem:[%s130_s3 + $0x18] sm:$0xff] %vm59_vm1, %v57_v15 }

// kernel: pi_transformer_forward.5
= control target key start
LH: loop header
LB: loop body
LE: loop exit
PB: predicated region body
PF: predicated region fallthrough
CT: control target
= control target key end

     0   :  { %s1810_s0 = inlined_call_operand.vmem [shape: f32[16,32], index: 0, kind: input, shape index: {}]   ;;  %s1811_s1 = inlined_call_operand.vmem [shape: f32[2,32], index: 1, kind: input, shape index: {}]   ;;  %s1812_s2 = inlined_call_operand.vmem [shape: bf16[32,96], index: 2, kind: input, shape index: {}]   ;;  %s1813_s3 = inlined_call_operand.hbm [shape: f32[1,96], index: 3, kind: input, shape index: {}]   ;;  %s1814_s4 = inlined_call_operand.vmem [shape: bf16[32,32], index: 4, kind: input, shape index: {}]   ;;  %s1815_s5 = inlined_call_operand.hbm [shape: f32[1,32], index: 5, kind: input, shape index: {}]   ;;  %s1816_s6 = inlined_call_operand.vmem [shape: bf16[32,96], index: 6, kind: input, shape index: {}]   ;;  %s1817_s7 = inlined_call_operand.vmem [shape: bf16[32,64], index: 7, kind: input, shape index: {}]   ;;  %s1818_s8 = inlined_call_operand.vmem [shape: bf16[32,32], index: 8, kind: input, shape index: {}]   ;;  %s1819_s9 = inlined_call_operand.vmem [shape: f32[1,32], index: 9, kind: input, shape index: {}]   ;;  %s1820_s10 = inlined_call_operand.vmem [shape: f32[2,32], index: 10, kind: input, shape index: {}]   ;;  %s1821_s11 = inlined_call_operand.vmem [shape: bf16[32,64], index: 11, kind: input, shape index: {}]   ;;  %s1822_s12 = inlined_call_operand.vmem [shape: f32[1,64], index: 12, kind: input, shape index: {}]   ;;  %s1823_s13 = inlined_call_operand.vmem [shape: bf16[64,32], index: 13, kind: input, shape index: {}]   ;;  %s1824_s14 = inlined_call_operand.vmem [shape: f32[1,32], index: 14, kind: input, shape index: {}]   ;;  %s1825_s15 = inlined_call_operand.vmem [shape: bf16[32,96], index: 15, kind: input, shape index: {}]   ;;  %s1826_s16 = inlined_call_operand.vmem [shape: bf16[32,64], index: 16, kind: input, shape index: {}]   ;;  %s1827_s17 = inlined_call_operand.vmem [shape: bf16[32,32], index: 17, kind: input, shape index: {}]   ;;  %s1828_s18 = inlined_call_operand.vmem [shape: f32[1,32], index: 18, kind: input, shape index: {}]   ;;  %s1829_s19 = inlined_call_operand.vmem [shape: f32[16,32], index: 19, kind: output, shape index: {}]  }
   0x1   :  { %1832 = sst [smem:[#allocation8_spill]] %s1810_s0 }
   0x2   :  { %1833 = sst [smem:[#allocation9_spill]] %s1811_s1 }
   0x3   :  { %1834 = sst [smem:[#allocation10_spill]] %s1812_s2 }
   0x4   :  { %1835 = sst [smem:[#allocation11_spill]] %s1813_s3 }
   0x5   :  { %24 = vsyncpa [#allocation3], 0  ;;  %s1836_s20 = sld [smem:[#allocation11_spill]] }
   0xb   :  { %s37_s21 = sshll.u32 %s1836_s20, 4  ;;  %s38_s21 = int_to_ptr.hbm [resolvable:$true] %s37_s21 }
   0xc   :  { %25 = vsyncpa [#allocation5], 0  ;;  %s1445_s1 = smov [#allocation2]   ;;  %s50_s24 = sshll.u32 %s1815_s5, 4  ;;  %s51_s24 = int_to_ptr.hbm [resolvable:$true] %s50_s24 }
   0xd   :  { %s39_s22 = sshll.u32 %s1445_s1, 4  ;;  %s1446_s25 = smov [#allocation4]   ;;  %s40_s22 = int_to_ptr.vmem [resolvable:$true] %s39_s22 }
   0xe   :  { %42 = dma.hbm_to_vmem [thread:$0]  %s38_s21, 16, %s40_s22, [#allocation3]  }
   0xf   :  { %s52_s3 = sshll.u32 %s1446_s25, 4  ;;  %s53_s3 = int_to_ptr.vmem [resolvable:$true] %s52_s3 }
  0x10   :  { %55 = dma.hbm_to_vmem [thread:$0]  %s51_s24, 16, %s53_s3, [#allocation5]  }
  0x11   :  { %1441 = dma.done.wait [#allocation3], 16  }
  0x12   :  { %1442 = vsyncadd [#allocation3], 4294967280 }
  0x13   :  { %1443 = dma.done.wait [#allocation5], 16  }
  0x14   :  { %1444 = vsyncadd [#allocation5], 4294967280  ;;  %vm94_vm0 = vcmask 261120   ;;  %s1837_s28 = sld [smem:[#allocation8_spill]]  ;;  %v1447_v4 = vmov 32.0   ;;  %s1448_s24 = smov 80  }
  0x15   :  { %1327 = vrcp.f32 %v1447_v4  ;;  %s1838_s20 = sld [smem:[#allocation10_spill]]  ;;  %v1321_v53 = vld [vmem:[#allocation2] ss:$0 sm:$0xff]  ;;  %s1449_s25 = smov 96   ;;  %vm202_vm8 = vcmask 130048   ;;  %vm248_vm9 = vcmask 64512  }
  0x16   :  { %s1839_s23 = sld [smem:[#allocation9_spill]]  ;;  %s1450_s3 = smov 112   ;;  %vm304_vm10 = vcmask 1043456  }
  0x17   :  { %s1451_s26 = smov 64   ;;  %s1452_s27 = smov 48  }
  0x1a   :  { %v1563_v0 = vld [vmem:[%s1837_s28] sm:$0xff]  ;;  %v1570_v2 = vld [vmem:[%s1837_s28 + $0x8] sm:$0xff] }
  0x1b   :  { %v95_v1 = vsel %vm94_vm0, %v1563_v0, 0.0  ;;  %v98_v3 = vsel %vm94_vm0, %v1570_v2, 0.0  ;;  %v1328_v5 = vpop.eup %1327  ;;  %v1291_v21 = vld [vmem:[%s1838_s20 + $0x8] sm:$0xff]  ;;  %v1290_v23 = vld [vmem:[%s1838_s20] sm:$0xff] }
  0x1c   :  { %96 = vadd.xlane.f32.xlu0 %v95_v1  ;;  %v102_v6 = vmul.f32 32.0, %v1328_v5  ;;  %vm106_vm1 = vweird.f32 %v1328_v5  ;;  %182 = vmatpush.bf16.msra.mxu0 %v1291_v21  ;;  %v93_v40 = vld [vmem:[%s1839_s23] sm:$0x3] }
  0x1d   :  { %v146_v43 = vperm.slane %v93_v40, 0  ;;  %v149_v48 = vperm.slane %v93_v40, 1 }
  0x1e   :  { %v103_v7 = vsub.f32 1.0, %v102_v6 }
  0x20   :  { %v104_v8 = vmul.f32 %v1328_v5, %v103_v7  ;;  %183 = vmatpush.bf16.msra.mxu0 %v1290_v23 }
  0x22   :  { %v105_v9 = vadd.f32 %v1328_v5, %v104_v8 }
  0x24   :  { %99 = vadd.xlane.f32.xlu0 %v98_v3  ;;  %v1574_v10 = vsel %vm106_vm1, %v1328_v5, %v105_v9 }
  0x8f   :  { %v97_v11 = vpop.xlane.xlu0 %96 }
  0x90   :  { %v108_v12 = vmul.f32 %v1574_v10, %v97_v11 }
  0x92   :  { %v110_v13 = vsub.f32 %v1563_v0, %v108_v12 }
  0x94   :  { %v112_v14 = vmul.f32 %v110_v13, %v110_v13 }
  0x96   :  { %v114_v15 = vsel %vm94_vm0, %v112_v14, 0.0 }
  0x97   :  { %115 = vadd.xlane.f32.xlu1 %v114_v15  ;;  %v100_v16 = vpop.xlane.xlu0 %99 }
  0x98   :  { %v109_v17 = vmul.f32 %v1574_v10, %v100_v16 }
  0x9a   :  { %v111_v18 = vsub.f32 %v1570_v2, %v109_v17 }
  0x9c   :  { %v113_v19 = vmul.f32 %v111_v18, %v111_v18 }
  0x9e   :  { %v117_v20 = vsel %vm94_vm0, %v113_v19, 0.0 }
  0x9f   :  { %118 = vadd.xlane.f32.xlu1 %v117_v20 }
 0x10a   :  { %v116_v22 = vpop.xlane.xlu1 %115 }
 0x10b   :  { %v120_v24 = vmul.f32 %v116_v22, %v1574_v10 }
 0x10d   :  { %v122_v25 = vadd.f32 1e-05, %v120_v24 }
 0x10f   :  { %1329 = vrsqrt.f32 %v122_v25  ;;  %vm130_vm3 = vweird.f32 %v122_v25 }
 0x112   :  { %v119_v26 = vpop.xlane.xlu1 %118 }
 0x113   :  { %v121_v27 = vmul.f32 %v119_v26, %v1574_v10 }
 0x115   :  { %v1330_v28 = vpop.eup %1329  ;;  %v123_v29 = vadd.f32 1e-05, %v121_v27 }
 0x116   :  { %v125_v30 = vmul.f32 %v1330_v28, %v122_v25  ;;  %vm131_vm2 = vweird.f32 %v1330_v28 }
 0x117   :  { %1331 = vrsqrt.f32 %v123_v29  ;;  %vm132_vm4 = vmor %vm130_vm3, %vm131_vm2  ;;  %vm140_vm6 = vweird.f32 %v123_v29 }
 0x118   :  { %v126_v31 = vmul.f32 %v1330_v28, %v125_v30 }
 0x11a   :  { %v127_v32 = vmul.f32 0.5, %v126_v31 }
 0x11c   :  { %v128_v33 = vsub.f32 1.5, %v127_v32 }
 0x11d   :  { %v1332_v34 = vpop.eup %1331 }
 0x11e   :  { %v129_v35 = vmul.f32 %v1330_v28, %v128_v33  ;;  %v135_v36 = vmul.f32 %v1332_v34, %v123_v29  ;;  %vm141_vm5 = vweird.f32 %v1332_v34 }
 0x11f   :  { %vm142_vm7 = vmor %vm140_vm6, %vm141_vm5 }
 0x120   :  { %v136_v37 = vmul.f32 %v1332_v34, %v135_v36  ;;  %v133_v38 = vsel %vm132_vm4, %v1330_v28, %v129_v35 }
 0x121   :  { %v144_v42 = vmul.f32 %v133_v38, %v110_v13 }
 0x122   :  { %v137_v39 = vmul.f32 0.5, %v136_v37 }
 0x123   :  { %v147_v47 = vmul.f32 %v146_v43, %v144_v42 }
 0x124   :  { %v138_v41 = vsub.f32 1.5, %v137_v39 }
 0x125   :  { %v150_v50 = vadd.f32 %v149_v48, %v147_v47 }
 0x126   :  { %v139_v44 = vmul.f32 %v1332_v34, %v138_v41 }
 0x128   :  { %v143_v45 = vsel %vm142_vm7, %v1332_v34, %v139_v44 }
 0x129   :  { %v145_v46 = vmul.f32 %v143_v45, %v111_v18 }
 0x12b   :  { %v148_v49 = vmul.f32 %v146_v43, %v145_v46 }
 0x12d   :  { %v151_v51 = vadd.f32 %v149_v48, %v148_v49 }
 0x12f   :  { %v152_v52 = vpack.c.bf16 %v151_v51, %v150_v50 }
 0x131   :  { %1183 = vmatmul.msk.bf16.vlgmr.msra.gmra.mxu0 %vm94_vm0, %v152_v52 }
 0x1ae   :  { %v185_v54 = vpop.f32.mrf.mxu0 }
 0x1af   :  { %v186_v55 = vadd.f32 %v1321_v53, %v185_v54 }
 0x1b1   :  { %v195_v56 = vpack.c.bf16 %v186_v55, %v186_v55 }
 0x1b3   :  { %v198_v57 = vunpack.c.l.b16 %v195_v56 }
 0x1b5   :  { %v1594_v58 = vpack.c.b16 %v198_v57, %v198_v57 }
 0x1b6   :  { %v187_v59 = vpop.f32.mrf.mxu0 }
 0x1b7   :  { %v188_v60 = vadd.f32 %v1321_v53, %v187_v59  ;;  %345 = vrot.lane.b32.xlu0 %v1594_v58, %s1448_s24  ;;  %200 = vrot.lane.b32.xlu2 %v1594_v58, %s1449_s25 }
 0x1b9   :  { %v196_v61 = vpack.c.bf16 %v188_v60, %v188_v60 }
 0x1bb   :  { %v223_v62 = vunpack.c.l.b16 %v196_v61 }
 0x1bd   :  { %v1599_v63 = vpack.c.b16 %v223_v62, %v223_v62 }
 0x1bf   :  { %368 = vrot.lane.b32.xlu1 %v1599_v63, %s1448_s24  ;;  %225 = vrot.lane.b32.xlu2 %v1599_v63, %s1449_s25 }
 0x1c7   :  { %343 = vrot.lane.b32.xlu2 %v1594_v58, %s1450_s3 }
 0x1cf   :  { %366 = vrot.lane.b32.xlu2 %v1599_v63, %s1450_s3 }
 0x211   :  { %v201_v1 = vpop.permute.xlu2 %200 }
 0x212   :  { %v207_v3 = vsel %vm202_vm8, %v201_v1, 0 }
 0x213   :  { %216 = vmatpush.bf16.xpose.msra.mxu1 %v207_v3 }
 0x219   :  { %v226_v4 = vpop.permute.xlu2 %225 }
 0x21a   :  { %1184 = vmatmul.msk.bf16.vlgmr.msra.gmra.mxu1 %vm202_vm8, %v195_v56  ;;  %v231_v5 = vsel %vm202_vm8, %v226_v4, 0 }
 0x21b   :  { %240 = vmatpush.bf16.xpose.msra.mxu2 %v231_v5 }
 0x221   :  { %v344_v8 = vpop.permute.xlu2 %343 }
 0x222   :  { %1185 = vmatmul.msk.bf16.vlgmr.msra.gmra.mxu2 %vm202_vm8, %v196_v61 }
 0x229   :  { %v346_v6 = vpop.permute.xlu0 %345  ;;  %v367_v12 = vpop.permute.xlu2 %366 }
 0x22a   :  { %v351_v7 = vsel %vm202_vm8, %v346_v6, 0 }
 0x22b   :  { %360 = vmatpush.bf16.xpose.msrb.mxu0 %v351_v7 }
 0x231   :  { %v369_v9 = vpop.permute.xlu1 %368 }
 0x232   :  { %1188 = vmatmul.msk.bf16.vlgmr.msrb.gmra.mxu0 %vm202_vm8, %v344_v8  ;;  %v374_v11 = vsel %vm202_vm8, %v369_v9, 0 }
 0x233   :  { %383 = vmatpush.bf16.xpose.msrb.mxu1 %v374_v11 }
 0x23a   :  { %1189 = vmatmul.msk.bf16.vlgmr.msrb.gmra.mxu1 %vm202_vm8, %v367_v12 }
 0x297   :  { %v218_v13 = vpop.f32.mrf.mxu1 }
 0x298   :  { %v246_v14 = vmul.f32 0.25, %v218_v13 }
 0x29a   :  { %v249_v15 = vsel %vm248_vm9, %v246_v14, -inf }
 0x29b   :  { %250 = vmax.xlane.f32.xlu2 %v249_v15 }
 0x29f   :  { %v220_v16 = vpop.f32.mrf.mxu1 }
 0x2a5   :  { %v242_v17 = vpop.f32.mrf.mxu2 }
 0x2a6   :  { %v247_v18 = vmul.f32 0.25, %v242_v17 }
 0x2a8   :  { %v252_v19 = vsel %vm248_vm9, %v247_v18, -inf }
 0x2a9   :  { %253 = vmax.xlane.f32.xlu0 %v252_v19 }
 0x2ad   :  { %v244_v20 = vpop.f32.mrf.mxu2 }
 0x2af   :  { %v362_v21 = vpop.f32.mrf.mxu0 }
 0x2b0   :  { %v389_v22 = vmul.f32 0.25, %v362_v21 }
 0x2b2   :  { %v391_v23 = vsel %vm248_vm9, %v389_v22, -inf }
 0x2b3   :  { %392 = vmax.xlane.f32.xlu1 %v391_v23 }
 0x2b7   :  { %v364_v24 = vpop.f32.mrf.mxu0  ;;  %v385_v25 = vpop.f32.mrf.mxu1 }
 0x2b8   :  { %v390_v26 = vmul.f32 0.25, %v385_v25 }
 0x2ba   :  { %v394_v27 = vsel %vm248_vm9, %v390_v26, -inf }
 0x2bb   :  { %395 = vmax.xlane.f32.xlu2 %v394_v27 }
 0x2bf   :  { %v387_v28 = vpop.f32.mrf.mxu1 }
 0x2cc   :  { %299 = vrot.lane.b32.xlu1 %v1594_v58, %s1451_s26 }
 0x2d4   :  { %462 = vrot.lane.b32.xlu1 %v1599_v63, %s1452_s27 }
 0x30e   :  { %v251_v29 = vpop.xlane.xlu2 %250 }
 0x30f   :  { %v255_v30 = vsub.f32 %v246_v14, %v251_v29 }
 0x311   :  { %v257_v31 = vmul.f32 1.442695, %v255_v30 }
 0x313   :  { %1333 = vpow2.f32 %v257_v31 }
 0x319   :  { %v1334_v32 = vpop.eup %1333 }
 0x31a   :  { %v261_v33 = vsel %vm248_vm9, %v1334_v32, 0.0 }
 0x31b   :  { %262 = vadd.xlane.f32.xlu0 %v261_v33 }
 0x31c   :  { %v254_v34 = vpop.xlane.xlu0 %253 }
 0x31d   :  { %v256_v35 = vsub.f32 %v247_v18, %v254_v34 }
 0x31f   :  { %v259_v36 = vmul.f32 1.442695, %v256_v35 }
 0x321   :  { %1335 = vpow2.f32 %v259_v36 }
 0x326   :  { %v393_v37 = vpop.xlane.xlu1 %392 }
 0x327   :  { %v1623_v38 = vpop.eup %1335  ;;  %v397_v39 = vsub.f32 %v389_v22, %v393_v37 }
 0x328   :  { %v264_v40 = vsel %vm248_vm9, %v1623_v38, 0.0 }
 0x329   :  { %v399_v41 = vmul.f32 1.442695, %v397_v39  ;;  %265 = vadd.xlane.f32.xlu2 %v264_v40 }
 0x32b   :  { %1337 = vpow2.f32 %v399_v41 }
 0x32e   :  { %v396_v42 = vpop.xlane.xlu2 %395 }
 0x32f   :  { %v398_v43 = vsub.f32 %v390_v26, %v396_v42 }
 0x331   :  { %v1627_v44 = vpop.eup %1337  ;;  %v401_v45 = vmul.f32 1.442695, %v398_v43 }
 0x332   :  { %v403_v46 = vsel %vm248_vm9, %v1627_v44, 0.0 }
 0x333   :  { %1339 = vpow2.f32 %v401_v45  ;;  %404 = vadd.xlane.f32.xlu0 %v403_v46 }
 0x339   :  { %v1631_v47 = vpop.eup %1339 }
 0x33a   :  { %v406_v48 = vsel %vm248_vm9, %v1631_v47, 0.0 }
 0x33b   :  { %407 = vadd.xlane.f32.xlu2 %v406_v48 }
 0x33e   :  { %v300_v49 = vpop.permute.xlu1 %299 }
 0x33f   :  { %v306_v50 = vsel %vm304_vm10, %v300_v49, 0  ;;  %v1292_v49 = vld [vmem:[%s1814_s4] sm:$0xff] }
 0x340   :  { %315 = vmatpush.bf16.msra.mxu3 %v306_v50  ;;  %523 = vmatpush.bf16.msra.mxu1 %v1292_v49 }
 0x346   :  { %v463_v30 = vpop.permute.xlu1 %462 }
 0x347   :  { %321 = vrot.lane.b32.xlu0 %v1599_v63, %s1451_s26  ;;  %v468_v39 = vsel %vm304_vm10, %v463_v30, 0 }
 0x353   :  { %441 = vrot.lane.b32.xlu2 %v1594_v58, %s1452_s27 }
 0x38e   :  { %v263_v51 = vpop.xlane.xlu0 %262 }
 0x38f   :  { %1341 = vrcp.f32 %v263_v51  ;;  %v278_v55 = vand.u32 2147483648, %v263_v51  ;;  %v276_v57 = vand.u32 2147483647, %v263_v51  ;;  %vm272_vm12 = vweird.f32 %v263_v51 }
 0x391   :  { %v279_v61 = vor.u32 1.1754944e-38, %v278_v55  ;;  %vm277_vm14 = vcmp.eq.f32.partialorder %v276_v57, 8.507059e+37 }
 0x395   :  { %v1342_v52 = vpop.eup %1341 }
 0x396   :  { %v268_v53 = vmul.f32 %v1342_v52, %v263_v51  ;;  %vm273_vm11 = vweird.f32 %v1342_v52 }
 0x397   :  { %vm274_vm13 = vmor %vm272_vm12, %vm273_vm11 }
 0x398   :  { %v269_v54 = vsub.f32 1.0, %v268_v53 }
 0x39a   :  { %v270_v56 = vmul.f32 %v1342_v52, %v269_v54 }
 0x39c   :  { %v266_v59 = vpop.xlane.xlu2 %265  ;;  %v271_v60 = vadd.f32 %v1342_v52, %v270_v56 }
 0x39d   :  { %1343 = vrcp.f32 %v266_v59  ;;  %v293_v13 = vand.u32 2147483648, %v266_v59  ;;  %vm287_vm1 = vweird.f32 %v266_v59  ;;  %v291_v14 = vand.u32 2147483647, %v266_v59 }
 0x39e   :  { %v275_v62 = vsel %vm274_vm13, %v1342_v52, %v271_v60  ;;  %v1293_v52 = vld [vmem:[%s1814_s4 + $0x8] sm:$0xff] }
 0x39f   :  { %v280_v63 = vsel %vm277_vm14, %v279_v61, %v275_v62  ;;  %v294_v20 = vor.u32 1.1754944e-38, %v293_v13  ;;  %vm292_vm4 = vcmp.eq.f32.partialorder %v291_v14, 8.507059e+37  ;;  %500 = vmatpush.bf16.msra.mxu0 %v1293_v52  ;;  %v1297_v61 = vld [vmem:[%s1817_s7 + $0x8] sm:$0xff]  ;;  %v1296_v62 = vld [vmem:[%s1817_s7] sm:$0xff]  ;;  %s1453_s7 = smov 32  }
 0x3a0   :  { %v281_v1 = vmul.f32 %v1334_v32, %v280_v63  ;;  %v580_v63 = vpack.c.bf16 %v1570_v2, %v1563_v0 }
 0x3a2   :  { %v297_v58 = vpack.c.bf16 %v281_v1, %v281_v1  ;;  %v1295_v1 = vld [vmem:[%s1816_s6 + $0x8] sm:$0xff] }
 0x3a3   :  { %v1344_v3 = vpop.eup %1343 }
 0x3a4   :  { %v283_v4 = vmul.f32 %v1344_v3, %v266_v59  ;;  %1186 = vmatmul.msk.bf16.vlgmr.msra.gmra.mxu3 %vm248_vm9, %v297_v58  ;;  %vm288_vm15 = vweird.f32 %v1344_v3  ;;  %v1294_v58 = vld [vmem:[%s1816_s6] sm:$0xff] }
 0x3a5   :  { %vm289_vm2 = vmor %vm287_vm1, %vm288_vm15 }
 0x3a6   :  { %v284_v5 = vsub.f32 1.0, %v283_v4  ;;  %v405_v6 = vpop.xlane.xlu0 %404 }
 0x3a7   :  { %1345 = vrcp.f32 %v405_v6  ;;  %v420_v16 = vand.u32 2147483648, %v405_v6  ;;  %v418_v18 = vand.u32 2147483647, %v405_v6  ;;  %vm414_vm5 = vweird.f32 %v405_v6 }
 0x3a8   :  { %v285_v7 = vmul.f32 %v1344_v3, %v284_v5 }
 0x3a9   :  { %v421_v23 = vor.u32 1.1754944e-38, %v420_v16  ;;  %vm419_vm7 = vcmp.eq.f32.partialorder %v418_v18, 8.507059e+37 }
 0x3aa   :  { %v286_v9 = vadd.f32 %v1344_v3, %v285_v7  ;;  %v1322_v7 = vld [vmem:[#allocation4] ss:$0 sm:$0xff] }
 0x3ac   :  { %v290_v19 = vsel %vm289_vm2, %v1344_v3, %v286_v9  ;;  %v1323_v3 = vld [vmem:[%s1819_s9] ss:$0 sm:$0xff] }
 0x3ad   :  { %v1346_v8 = vpop.eup %1345  ;;  %v295_v24 = vsel %vm292_vm4, %v294_v20, %v290_v19  ;;  %652 = vrot.lane.b32.xlu2 %v1323_v3, %s1453_s7  ;;  %v1299_v20 = vld [vmem:[%s1818_s8 + $0x8] sm:$0xff] }
 0x3ae   :  { %v410_v11 = vmul.f32 %v1346_v8, %v405_v6  ;;  %v408_v12 = vpop.xlane.xlu2 %407  ;;  %vm415_vm3 = vweird.f32 %v1346_v8  ;;  %v296_v33 = vmul.f32 %v1623_v38, %v295_v24  ;;  %719 = vmatpush.bf16.msrb.mxu0 %v1299_v20 }
 0x3af   :  { %1347 = vrcp.f32 %v408_v12  ;;  %vm416_vm6 = vmor %vm414_vm5, %vm415_vm3  ;;  %v435_v42 = vand.u32 2147483648, %v408_v12  ;;  %vm429_vm12 = vweird.f32 %v408_v12  ;;  %v433_v43 = vand.u32 2147483647, %v408_v12 }
 0x3b0   :  { %v411_v15 = vsub.f32 1.0, %v410_v11  ;;  %v298_v40 = vpack.c.bf16 %v296_v33, %v296_v33 }
 0x3b1   :  { %vm434_vm14 = vcmp.eq.f32.partialorder %v433_v43, 8.507059e+37 }
 0x3b2   :  { %v412_v17 = vmul.f32 %v1346_v8, %v411_v15 }
 0x3b4   :  { %v413_v21 = vadd.f32 %v1346_v8, %v412_v17 }
 0x3b5   :  { %v1348_v22 = vpop.eup %1347 }
 0x3b6   :  { %v425_v25 = vmul.f32 %v1348_v22, %v408_v12  ;;  %v442_v26 = vpop.permute.xlu2 %441  ;;  %v417_v27 = vsel %vm416_vm6, %v1346_v8, %v413_v21  ;;  %vm430_vm11 = vweird.f32 %v1348_v22 }
 0x3b7   :  { %v447_v28 = vsel %vm304_vm10, %v442_v26, 0  ;;  %v422_v29 = vsel %vm419_vm7, %v421_v23, %v417_v27  ;;  %vm431_vm13 = vmor %vm429_vm12, %vm430_vm11 }
 0x3b8   :  { %v426_v31 = vsub.f32 1.0, %v425_v25  ;;  %456 = vmatpush.bf16.msrb.mxu2 %v447_v28  ;;  %v423_v32 = vmul.f32 %v1627_v44, %v422_v29  ;;  %v436_v44 = vor.u32 1.1754944e-38, %v435_v42 }
 0x3b9   :  { %v322_v34 = vpop.permute.xlu0 %321 }
 0x3ba   :  { %v427_v35 = vmul.f32 %v1348_v22, %v426_v31  ;;  %v327_v36 = vsel %vm304_vm10, %v322_v34, 0  ;;  %v439_v37 = vpack.c.bf16 %v423_v32, %v423_v32 }
 0x3bb   :  { %336 = vmatpush.bf16.msrb.mxu3 %v327_v36 }
 0x3bc   :  { %1190 = vmatmul.msk.bf16.vlgmr.msrb.gmra.mxu2 %vm248_vm9, %v439_v37  ;;  %v428_v41 = vadd.f32 %v1348_v22, %v427_v35 }
 0x3bd   :  { %572 = vmatpush.bf16.msra.mxu2 %v1295_v1 }
 0x3be   :  { %1187 = vmatmul.msk.bf16.vlgmr.msrb.gmra.mxu3 %vm248_vm9, %v298_v40  ;;  %v432_v38 = vsel %vm431_vm13, %v1348_v22, %v428_v41  ;;  %v1298_v22 = vld [vmem:[%s1818_s8] sm:$0xff] }
 0x3bf   :  { %477 = vmatpush.bf16.msra.mxu3 %v468_v39  ;;  %v437_v45 = vsel %vm434_vm14, %v436_v44, %v432_v38  ;;  %720 = vmatpush.bf16.msrb.mxu0 %v1298_v22 }
 0x3c0   :  { %v438_v46 = vmul.f32 %v1631_v47, %v437_v45 }
 0x3c1   :  { %573 = vmatpush.bf16.msra.mxu2 %v1294_v58 }
 0x3c2   :  { %v440_v48 = vpack.c.bf16 %v438_v46, %v438_v46 }
 0x3c3   :  { %602 = vmatpush.bf16.msrb.mxu3 %v1297_v61 }
 0x3c7   :  { %603 = vmatpush.bf16.msrb.mxu3 %v1296_v62 }
 0x3ce   :  { %1191 = vmatmul.msk.bf16.vlgmr.msra.gmra.mxu3 %vm248_vm9, %v440_v48 }
 0x3de   :  { %1219 = vmatmul.msk.bf16.vlgmr.msrb.gmra.mxu3 %vm94_vm0, %v580_v63 }
 0x407   :  { %v653_v63 = vpop.permute.xlu2 %652 }
 0x427   :  { %v317_v50 = vpop.f32.mrf.mxu3 }
 0x42f   :  { %v319_v51 = vpop.f32.mrf.mxu3 }
 0x43f   :  { %v458_v53 = vpop.f32.mrf.mxu2 }
 0x441   :  { %v338_v54 = vpop.f32.mrf.mxu3 }
 0x442   :  { %v342_v55 = vpack.c.bf16 %v338_v54, %v317_v50 }
 0x444   :  { %1201 = vmatmul.msk.bf16.vlgmr.msra.gmra.mxu1 %vm202_vm8, %v342_v55 }
 0x447   :  { %v460_v47 = vpop.f32.mrf.mxu2 }
 0x449   :  { %v340_v56 = vpop.f32.mrf.mxu3 }
 0x451   :  { %v479_v57 = vpop.f32.mrf.mxu3 }
 0x452   :  { %v483_v59 = vpack.c.bf16 %v479_v57, %v458_v53 }
 0x454   :  { %1196 = vmatmul.msk.bf16.vlgmr.msra.gmra.mxu0 %vm202_vm8, %v483_v59 }
 0x459   :  { %v481_v60 = vpop.f32.mrf.mxu3 }
 0x461   :  { %v605_v17 = vpop.f32.mrf.mxu3 }
 0x469   :  { %v607_v24 = vpop.f32.mrf.mxu3 }
 0x4c1   :  { %v525_v4 = vpop.f32.mrf.mxu1 }
 0x4c9   :  { %v527_v8 = vpop.f32.mrf.mxu1 }
 0x4d1   :  { %v502_v5 = vpop.f32.mrf.mxu0 }
 0x4d2   :  { %v526_v6 = vadd.f32 %v525_v4, %v502_v5 }
 0x4d4   :  { %v533_v11 = vadd.f32 %v1322_v7, %v526_v6 }
 0x4d6   :  { %v548_v14 = vmax.f32 %v533_v11, 0.0 }
 0x4d9   :  { %v504_v9 = vpop.f32.mrf.mxu0 }
 0x4da   :  { %v528_v12 = vadd.f32 %v527_v8, %v504_v9 }
 0x4dc   :  { %v534_v13 = vadd.f32 %v1322_v7, %v528_v12 }
 0x4de   :  { %v549_v15 = vmax.f32 %v534_v13, 0.0 }
 0x4e0   :  { %v550_v16 = vpack.c.bf16 %v549_v15, %v548_v14 }
 0x4e2   :  { %1210 = vmatmul.msk.bf16.vlgmr.msra.gmra.mxu2 %vm94_vm0, %v550_v16 }
 0x565   :  { %v575_v18 = vpop.f32.mrf.mxu2 }
 0x566   :  { %v1678_v19 = vadd.f32 %v605_v17, %v575_v18 }
 0x568   :  { %v1220_v21 = vmul.f32 -1.442695, %v1678_v19 }
 0x56a   :  { %1349 = vpow2.f32 %v1220_v21 }
 0x56d   :  { %v577_v23 = vpop.f32.mrf.mxu2 }
 0x56e   :  { %v1687_v25 = vadd.f32 %v607_v24, %v577_v23 }
 0x570   :  { %v1350_v26 = vpop.eup %1349  ;;  %v1221_v27 = vmul.f32 -1.442695, %v1687_v25  ;;  %v656_v5 = vsub.f32 %v1687_v25, %v653_v63 }
 0x571   :  { %v618_v28 = vadd.f32 1.0, %v1350_v26 }
 0x572   :  { %1351 = vpow2.f32 %v1221_v27  ;;  %v1223_v7 = vmul.f32 -1.442695, %v656_v5 }
 0x573   :  { %1353 = vrcp.f32 %v618_v28  ;;  %v631_v39 = vand.u32 2147483648, %v618_v28  ;;  %vm625_vm9 = vweird.f32 %v618_v28  ;;  %v629_v40 = vand.u32 2147483647, %v618_v28 }
 0x575   :  { %v632_v45 = vor.u32 1.1754944e-38, %v631_v39  ;;  %vm630_vm2 = vcmp.eq.f32.partialorder %v629_v40, 8.507059e+37 }
 0x578   :  { %v1352_v29 = vpop.eup %1351 }
 0x579   :  { %v1354_v30 = vpop.eup %1353  ;;  %v619_v31 = vadd.f32 1.0, %v1352_v29 }
 0x57a   :  { %v621_v32 = vmul.f32 %v1354_v30, %v618_v28  ;;  %vm626_vm8 = vweird.f32 %v1354_v30 }
 0x57b   :  { %1355 = vrcp.f32 %v619_v31  ;;  %vm627_vm10 = vmor %vm625_vm9, %vm626_vm8  ;;  %v646_v42 = vand.u32 2147483648, %v619_v31  ;;  %v644_v38 = vand.u32 2147483647, %v619_v31  ;;  %vm640_vm1 = vweird.f32 %v619_v31 }
 0x57c   :  { %v622_v33 = vsub.f32 1.0, %v621_v32 }
 0x57d   :  { %v647_v48 = vor.u32 1.1754944e-38, %v646_v42  ;;  %vm645_vm4 = vcmp.eq.f32.partialorder %v644_v38, 8.507059e+37 }
 0x57e   :  { %v623_v34 = vmul.f32 %v1354_v30, %v622_v33 }
 0x580   :  { %v624_v37 = vadd.f32 %v1354_v30, %v623_v34 }
 0x581   :  { %v1356_v35 = vpop.eup %1355 }
 0x582   :  { %v636_v36 = vmul.f32 %v1356_v35, %v619_v31  ;;  %vm641_vm15 = vweird.f32 %v1356_v35  ;;  %v628_v44 = vsel %vm627_vm10, %v1354_v30, %v624_v37 }
 0x583   :  { %vm642_vm3 = vmor %vm640_vm1, %vm641_vm15  ;;  %v633_v49 = vsel %vm630_vm2, %v632_v45, %v628_v44  ;;  %v763_v44 = vld [vmem:[%s1820_s10] sm:$0x3] }
 0x584   :  { %v637_v41 = vsub.f32 1.0, %v636_v36  ;;  %v695_v52 = vmul.f32 %v633_v49, %v1563_v0  ;;  %v824_v45 = vperm.slane %v763_v44, 0  ;;  %v1309_v49 = vld [vmem:[%s1826_s16 + $0x8] sm:$0xff] }
 0x585   :  { %1006 = vmatpush.bf16.msra.mxu0 %v1309_v49  ;;  %v1306_v49 = vld [vmem:[%s1825_s15] sm:$0xff] }
 0x586   :  { %v638_v43 = vmul.f32 %v1356_v35, %v637_v41 }
 0x588   :  { %v639_v46 = vadd.f32 %v1356_v35, %v638_v43 }
 0x58a   :  { %v643_v50 = vsel %vm642_vm3, %v1356_v35, %v639_v46 }
 0x58b   :  { %v648_v51 = vsel %vm645_vm4, %v647_v48, %v643_v50  ;;  %vm918_vm4 = vcmask 523264  }
 0x58c   :  { %v696_v53 = vmul.f32 %v648_v51, %v1570_v2  ;;  %v1308_v51 = vld [vmem:[%s1826_s16] sm:$0xff] }
 0x58d   :  { %1007 = vmatpush.bf16.msra.mxu0 %v1308_v51  ;;  %v1325_v51 = vld [vmem:[%s1824_s14] ss:$0 sm:$0xff] }
 0x58e   :  { %v697_v54 = vpack.c.bf16 %v696_v53, %v695_v52 }
 0x590   :  { %1232 = vmatmul.msk.bf16.vlgmr.msrb.gmra.mxu0 %vm94_vm0, %v697_v54 }
 0x60d   :  { %v722_v55 = vpop.f32.mrf.mxu0 }
 0x60e   :  { %729 = vrot.lane.b32.xlu0 %v722_v55, %s1451_s26 }
 0x615   :  { %v724_v47 = vpop.f32.mrf.mxu0 }
 0x616   :  { %743 = vrot.lane.b32.xlu0 %v1563_v0, %s1453_s7  ;;  %731 = vrot.lane.b32.xlu1 %v724_v47, %s1451_s26  ;;  %v655_v0 = vsub.f32 %v1678_v19, %v653_v63 }
 0x618   :  { %v1222_v1 = vmul.f32 -1.442695, %v655_v0  ;;  %v831_v0 = vperm.slane %v763_v44, 1 }
 0x61e   :  { %745 = vrot.lane.b32.xlu1 %v1570_v2, %s1453_s7 }
 0x680   :  { %v730_v56 = vpop.permute.xlu0 %729 }
 0x681   :  { %v735_v57 = vadd.f32 %v730_v56, %v575_v18 }
 0x683   :  { %1357 = vtanh.f32 %v735_v57 }
 0x688   :  { %v732_v59 = vpop.permute.xlu1 %731  ;;  %v744_v18 = vpop.permute.xlu0 %743 }
 0x689   :  { %v1358_v60 = vpop.eup %1357  ;;  %v736_v61 = vadd.f32 %v732_v59, %v577_v23 }
 0x68a   :  { %753 = vrot.lane.b32.xlu2 %v1358_v60, %s1449_s25 }
 0x68b   :  { %1359 = vtanh.f32 %v736_v61 }
 0x68c   :  { %1361 = vpow2.f32 %v1222_v1 }
 0x690   :  { %v746_v34 = vpop.permute.xlu1 %745 }
 0x691   :  { %v1360_v62 = vpop.eup %1359 }
 0x692   :  { %755 = vrot.lane.b32.xlu0 %v1360_v62, %s1449_s25  ;;  %v1362_v58 = vpop.eup %1361 }
 0x693   :  { %v663_v3 = vadd.f32 1.0, %v1362_v58 }
 0x695   :  { %1363 = vrcp.f32 %v663_v3  ;;  %v676_v11 = vand.u32 2147483648, %v663_v3  ;;  %vm670_vm6 = vweird.f32 %v663_v3  ;;  %v674_v12 = vand.u32 2147483647, %v663_v3 }
 0x696   :  { %1365 = vpow2.f32 %v1223_v7 }
 0x697   :  { %v677_v15 = vor.u32 1.1754944e-38, %v676_v11  ;;  %vm675_vm11 = vcmp.eq.f32.partialorder %v674_v12, 8.507059e+37 }
 0x69b   :  { %v1364_v2 = vpop.eup %1363 }
 0x69c   :  { %v666_v4 = vmul.f32 %v1364_v2, %v663_v3  ;;  %vm671_vm5 = vweird.f32 %v1364_v2  ;;  %v1366_v13 = vpop.eup %1365 }
 0x69d   :  { %vm672_vm7 = vmor %vm670_vm6, %vm671_vm5  ;;  %v664_v16 = vadd.f32 1.0, %v1366_v13 }
 0x69e   :  { %v667_v6 = vsub.f32 1.0, %v666_v4 }
 0x69f   :  { %1367 = vrcp.f32 %v664_v16  ;;  %v691_v29 = vand.u32 2147483648, %v664_v16  ;;  %vm685_vm13 = vweird.f32 %v664_v16  ;;  %v689_v30 = vand.u32 2147483647, %v664_v16 }
 0x6a0   :  { %v668_v8 = vmul.f32 %v1364_v2, %v667_v6  ;;  %v1300_v6 = vld [vmem:[%s1821_s11] sm:$0xff] }
 0x6a1   :  { %v692_v32 = vor.u32 1.1754944e-38, %v691_v29  ;;  %vm690_vm8 = vcmp.eq.f32.partialorder %v689_v30, 8.507059e+37 }
 0x6a2   :  { %v669_v9 = vadd.f32 %v1364_v2, %v668_v8 }
 0x6a4   :  { %v673_v14 = vsel %vm672_vm7, %v1364_v2, %v669_v9  ;;  %v1301_v2 = vld [vmem:[%s1821_s11 + $0x8] sm:$0xff] }
 0x6a5   :  { %v678_v17 = vsel %vm675_vm11, %v677_v15, %v673_v14  ;;  %v1368_v24 = vpop.eup %1367  ;;  %880 = vmatpush.bf16.msrb.mxu1 %v1301_v2 }
 0x6a6   :  { %v739_v19 = vsub.f32 1.0, %v678_v17  ;;  %v681_v25 = vmul.f32 %v1368_v24, %v664_v16  ;;  %vm686_vm12 = vweird.f32 %v1368_v24 }
 0x6a7   :  { %vm687_vm14 = vmor %vm685_vm13, %vm686_vm12 }
 0x6a8   :  { %v749_v21 = vmul.f32 %v744_v18, %v739_v19  ;;  %v682_v26 = vsub.f32 1.0, %v681_v25 }
 0x6a9   :  { %881 = vmatpush.bf16.msrb.mxu1 %v1300_v6 }
 0x6aa   :  { %v683_v27 = vmul.f32 %v1368_v24, %v682_v26 }
 0x6ac   :  { %v684_v28 = vadd.f32 %v1368_v24, %v683_v27 }
 0x6ae   :  { %v688_v31 = vsel %vm687_vm14, %v1368_v24, %v684_v28 }
 0x6af   :  { %v693_v33 = vsel %vm690_vm8, %v692_v32, %v688_v31  ;;  %v1305_v32 = vld [vmem:[%s1823_s13 + $0x18] sm:$0xff] }
 0x6b0   :  { %v740_v35 = vsub.f32 1.0, %v693_v33  ;;  %926 = vmatpush.bf16.msrb.mxu2 %v1305_v32  ;;  %v1326_v32 = vld [vmem:[%s1828_s18] ss:$0 sm:$0xff] }
 0x6b2   :  { %v750_v37 = vmul.f32 %v746_v34, %v740_v35  ;;  %v1303_v34 = vld [vmem:[%s1823_s13 + $0x8] sm:$0xff]  ;;  %v1302_v35 = vld [vmem:[%s1823_s13] sm:$0xff] }
 0x6e4   :  { %v754_v20 = vpop.permute.xlu2 %753 }
 0x6e5   :  { %v759_v22 = vmul.f32 %v754_v20, %v678_v17 }
 0x6e7   :  { %v1703_v23 = vadd.f32 %v759_v22, %v749_v21 }
 0x6e9   :  { %766 = vrot.lane.b32.xlu1 %v1703_v23, %s1449_s25 }
 0x704   :  { %v756_v36 = vpop.permute.xlu0 %755 }
 0x705   :  { %v760_v39 = vmul.f32 %v756_v36, %v693_v33  ;;  %v1304_v33 = vld [vmem:[%s1823_s13 + $0x10] sm:$0xff] }
 0x706   :  { %927 = vmatpush.bf16.msrb.mxu2 %v1304_v33 }
 0x707   :  { %v1707_v40 = vadd.f32 %v760_v39, %v750_v37  ;;  %v1324_v37 = vld [vmem:[%s1822_s12] ss:$0 sm:$0xff] }
 0x709   :  { %768 = vrot.lane.b32.xlu2 %v1707_v40, %s1449_s25  ;;  %v981_v46 = vpack.c.bf16 %v1707_v40, %v1703_v23 }
 0x70a   :  { %928 = vmatpush.bf16.msrb.mxu2 %v1303_v34 }
 0x70e   :  { %929 = vmatpush.bf16.msrb.mxu2 %v1302_v35 }
 0x75b   :  { %v1711_v41 = vpop.permute.xlu1 %766 }
 0x75c   :  { %v772_v42 = vsel %vm94_vm0, %v1711_v41, 0.0 }
 0x75d   :  { %773 = vadd.xlane.f32.xlu0 %v772_v42 }
 0x763   :  { %v1715_v43 = vpop.permute.xlu2 %768 }
 0x764   :  { %v775_v38 = vsel %vm94_vm0, %v1715_v43, 0.0 }
 0x765   :  { %776 = vadd.xlane.f32.xlu1 %v775_v38 }
 0x77e   :  { %826 = vrot.lane.b32.xlu1 %v824_v45, %s1453_s7 }
 0x786   :  { %983 = vrot.lane.b32.xlu1 %v981_v46, %s1449_s25 }
 0x7d0   :  { %v774_v48 = vpop.xlane.xlu0 %773 }
 0x7d1   :  { %v778_v50 = vmul.f32 %v774_v48, %v1574_v10  ;;  %v1307_v48 = vld [vmem:[%s1825_s15 + $0x8] sm:$0xff] }
 0x7d2   :  { %973 = vmatpush.bf16.msra.mxu3 %v1307_v48 }
 0x7d3   :  { %v780_v52 = vsub.f32 %v1703_v23, %v778_v50 }
 0x7d5   :  { %v782_v53 = vmul.f32 %v780_v52, %v780_v52 }
 0x7d6   :  { %974 = vmatpush.bf16.msra.mxu3 %v1306_v49 }
 0x7d7   :  { %786 = vrot.lane.b32.xlu2 %v782_v53, %s1449_s25 }
 0x7d8   :  { %v777_v54 = vpop.xlane.xlu1 %776 }
 0x7d9   :  { %v779_v55 = vmul.f32 %v777_v54, %v1574_v10 }
 0x7db   :  { %v781_v47 = vsub.f32 %v1707_v40, %v779_v55 }
 0x7dd   :  { %v783_v56 = vmul.f32 %v781_v47, %v781_v47 }
 0x7df   :  { %788 = vrot.lane.b32.xlu2 %v783_v56, %s1449_s25 }
 0x7f0   :  { %v827_v57 = vpop.permute.xlu1 %826 }
 0x7f8   :  { %v984_v59 = vpop.permute.xlu1 %983 }
 0x7f9   :  { %1276 = vmatmul.msk.bf16.vlgmr.msra.gmra.mxu0 %vm94_vm0, %v984_v59 }
 0x831   :  { %v787_v60 = vpop.permute.xlu2 %786 }
 0x832   :  { %v792_v61 = vsel %vm94_vm0, %v787_v60, 0.0 }
 0x833   :  { %793 = vadd.xlane.f32.xlu2 %v792_v61  ;;  %v1311_v61 = vld [vmem:[%s1827_s17 + $0x8] sm:$0xff] }
 0x834   :  { %1123 = vmatpush.bf16.msra.mxu1 %v1311_v61 }
 0x839   :  { %v789_v62 = vpop.permute.xlu2 %788 }
 0x83a   :  { %v795_v63 = vsel %vm94_vm0, %v789_v62, 0.0 }
 0x83b   :  { %796 = vadd.xlane.f32.xlu0 %v795_v63  ;;  %v1310_v63 = vld [vmem:[%s1827_s17] sm:$0xff] }
 0x83c   :  { %1124 = vmatpush.bf16.msra.mxu1 %v1310_v63 }
 0x84f   :  { %833 = vrot.lane.b32.xlu0 %v831_v0, %s1453_s7 }
 0x8a6   :  { %v794_v1 = vpop.xlane.xlu2 %793 }
 0x8a7   :  { %v798_v58 = vmul.f32 %v794_v1, %v1574_v10 }
 0x8a9   :  { %v800_v3 = vadd.f32 1e-05, %v798_v58 }
 0x8ab   :  { %1369 = vrsqrt.f32 %v800_v3  ;;  %vm808_vm10 = vweird.f32 %v800_v3 }
 0x8ae   :  { %v797_v4 = vpop.xlane.xlu0 %796 }
 0x8af   :  { %v799_v5 = vmul.f32 %v797_v4, %v1574_v10 }
 0x8b1   :  { %v1370_v7 = vpop.eup %1369  ;;  %v801_v8 = vadd.f32 1e-05, %v799_v5 }
 0x8b2   :  { %v803_v9 = vmul.f32 %v1370_v7, %v800_v3  ;;  %vm809_vm9 = vweird.f32 %v1370_v7 }
 0x8b3   :  { %1371 = vrsqrt.f32 %v801_v8  ;;  %vm810_vm15 = vmor %vm808_vm10, %vm809_vm9  ;;  %vm818_vm2 = vweird.f32 %v801_v8 }
 0x8b4   :  { %v804_v11 = vmul.f32 %v1370_v7, %v803_v9 }
 0x8b6   :  { %v805_v12 = vmul.f32 0.5, %v804_v11 }
 0x8b8   :  { %v806_v13 = vsub.f32 1.5, %v805_v12 }
 0x8b9   :  { %v1372_v14 = vpop.eup %1371 }
 0x8ba   :  { %v807_v15 = vmul.f32 %v1370_v7, %v806_v13  ;;  %v813_v16 = vmul.f32 %v1372_v14, %v801_v8  ;;  %vm819_vm1 = vweird.f32 %v1372_v14 }
 0x8bb   :  { %vm820_vm3 = vmor %vm818_vm2, %vm819_vm1 }
 0x8bc   :  { %v814_v17 = vmul.f32 %v1372_v14, %v813_v16  ;;  %v811_v18 = vsel %vm810_vm15, %v1370_v7, %v807_v15 }
 0x8bd   :  { %v822_v20 = vmul.f32 %v811_v18, %v780_v52 }
 0x8be   :  { %v815_v10 = vmul.f32 0.5, %v814_v17 }
 0x8bf   :  { %v829_v25 = vmul.f32 %v827_v57, %v822_v20 }
 0x8c0   :  { %v816_v19 = vsub.f32 1.5, %v815_v10 }
 0x8c1   :  { %v834_v26 = vpop.permute.xlu0 %833 }
 0x8c2   :  { %v817_v21 = vmul.f32 %v1372_v14, %v816_v19  ;;  %v836_v28 = vadd.f32 %v834_v26, %v829_v25 }
 0x8c4   :  { %v821_v22 = vsel %vm820_vm3, %v1372_v14, %v817_v21 }
 0x8c5   :  { %v823_v24 = vmul.f32 %v821_v22, %v781_v47 }
 0x8c7   :  { %v830_v27 = vmul.f32 %v827_v57, %v823_v24  ;;  %v1009_v57 = vpop.f32.mrf.mxu0 }
 0x8c9   :  { %v837_v29 = vadd.f32 %v834_v26, %v830_v27 }
 0x8cb   :  { %v852_v30 = vpack.c.bf16 %v837_v29, %v836_v28 }
 0x8cd   :  { %857 = vrot.lane.b32.xlu2 %v852_v30, %s1449_s25 }
 0x8cf   :  { %v1011_v0 = vpop.f32.mrf.mxu0 }
 0x927   :  { %v858_v31 = vpop.permute.xlu2 %857 }
 0x928   :  { %1241 = vmatmul.msk.bf16.vlgmr.msrb.gmra.mxu1 %vm94_vm0, %v858_v31 }
 0x9a5   :  { %v883_v36 = vpop.f32.mrf.mxu1 }
 0x9a6   :  { %v884_v39 = vadd.f32 %v1324_v37, %v883_v36 }
 0x9a8   :  { %v888_v44 = vmax.f32 %v884_v39, 0.0 }
 0x9ad   :  { %v885_v42 = vpop.f32.mrf.mxu1 }
 0x9ae   :  { %v886_v38 = vadd.f32 %v1324_v37, %v885_v42 }
 0x9b0   :  { %v889_v45 = vmax.f32 %v886_v38, 0.0 }
 0x9b2   :  { %v890_v46 = vpack.c.bf16 %v889_v45, %v888_v44 }
 0x9b4   :  { %1258 = vmatmul.msk.bf16.vlgmr.msrb.gmra.mxu2 %vm918_vm4, %v890_v46 }
 0xa37   :  { %v931_v50 = vpop.f32.mrf.mxu2 }
 0xa38   :  { %v932_v52 = vadd.f32 %v1325_v51, %v931_v50 }
 0xa3a   :  { %v949_v55 = vmax.f32 %v932_v52, 0.0 }
 0xa3f   :  { %v933_v53 = vpop.f32.mrf.mxu2 }
 0xa40   :  { %v934_v54 = vadd.f32 %v1325_v51, %v933_v53 }
 0xa42   :  { %v950_v47 = vmax.f32 %v934_v54, 0.0 }
 0xa44   :  { %v951_v56 = vpack.c.bf16 %v950_v47, %v949_v55 }
 0xa46   :  { %1267 = vmatmul.msk.bf16.vlgmr.msra.gmra.mxu3 %vm94_vm0, %v951_v56 }
 0xac9   :  { %v976_v59 = vpop.f32.mrf.mxu3 }
 0xaca   :  { %v1777_v60 = vadd.f32 %v1009_v57, %v976_v59 }
 0xacc   :  { %v1277_v62 = vmul.f32 -1.442695, %v1777_v60 }
 0xace   :  { %1373 = vpow2.f32 %v1277_v62 }
 0xad1   :  { %v978_v1 = vpop.f32.mrf.mxu3 }
 0xad2   :  { %v1015_v58 = vadd.f32 %v1011_v0, %v978_v1 }
 0xad4   :  { %v1374_v3 = vpop.eup %1373  ;;  %v1278_v2 = vmul.f32 -1.442695, %v1015_v58 }
 0xad5   :  { %v1022_v4 = vadd.f32 1.0, %v1374_v3 }
 0xad6   :  { %1375 = vpow2.f32 %v1278_v2 }
 0xad7   :  { %1377 = vrcp.f32 %v1022_v4  ;;  %v1035_v15 = vand.u32 2147483648, %v1022_v4  ;;  %vm1029_vm6 = vweird.f32 %v1022_v4  ;;  %v1033_v17 = vand.u32 2147483647, %v1022_v4 }
 0xad9   :  { %v1036_v21 = vor.u32 1.1754944e-38, %v1035_v15  ;;  %vm1034_vm13 = vcmp.eq.f32.partialorder %v1033_v17, 8.507059e+37 }
 0xadc   :  { %v1376_v5 = vpop.eup %1375 }
 0xadd   :  { %v1378_v6 = vpop.eup %1377  ;;  %v1023_v7 = vadd.f32 1.0, %v1376_v5 }
 0xade   :  { %v1025_v8 = vmul.f32 %v1378_v6, %v1022_v4  ;;  %vm1030_vm5 = vweird.f32 %v1378_v6 }
 0xadf   :  { %1379 = vrcp.f32 %v1023_v7  ;;  %v1050_v10 = vand.u32 2147483648, %v1023_v7  ;;  %vm1031_vm7 = vmor %vm1029_vm6, %vm1030_vm5  ;;  %v1048_v19 = vand.u32 2147483647, %v1023_v7  ;;  %vm1044_vm12 = vweird.f32 %v1023_v7 }
 0xae0   :  { %v1026_v9 = vsub.f32 1.0, %v1025_v8 }
 0xae1   :  { %v1051_v24 = vor.u32 1.1754944e-38, %v1050_v10  ;;  %vm1049_vm8 = vcmp.eq.f32.partialorder %v1048_v19, 8.507059e+37 }
 0xae2   :  { %v1027_v11 = vmul.f32 %v1378_v6, %v1026_v9 }
 0xae4   :  { %v1028_v14 = vadd.f32 %v1378_v6, %v1027_v11 }
 0xae5   :  { %v1380_v12 = vpop.eup %1379 }
 0xae6   :  { %v1040_v13 = vmul.f32 %v1380_v12, %v1023_v7  ;;  %vm1045_vm11 = vweird.f32 %v1380_v12  ;;  %v1032_v20 = vsel %vm1031_vm7, %v1378_v6, %v1028_v14 }
 0xae7   :  { %vm1046_vm14 = vmor %vm1044_vm12, %vm1045_vm11  ;;  %v1037_v25 = vsel %vm1034_vm13, %v1036_v21, %v1032_v20 }
 0xae8   :  { %v1041_v16 = vsub.f32 1.0, %v1040_v13  ;;  %v1099_v28 = vmul.f32 %v1037_v25, %v1711_v41 }
 0xaea   :  { %v1042_v18 = vmul.f32 %v1380_v12, %v1041_v16 }
 0xaec   :  { %v1043_v22 = vadd.f32 %v1380_v12, %v1042_v18 }
 0xaee   :  { %v1047_v26 = vsel %vm1046_vm14, %v1380_v12, %v1043_v22 }
 0xaef   :  { %v1052_v27 = vsel %vm1049_vm8, %v1051_v24, %v1047_v26 }
 0xaf0   :  { %v1100_v29 = vmul.f32 %v1052_v27, %v1715_v43 }
 0xaf2   :  { %v1101_v30 = vpack.c.bf16 %v1100_v29, %v1099_v28 }
 0xaf4   :  { %1289 = vmatmul.msk.bf16.vlgmr.msra.gmra.mxu1 %vm94_vm0, %v1101_v30 }
 0xb71   :  { %v1126_v31 = vpop.f32.mrf.mxu1 }
 0xb72   :  { %1133 = vrot.lane.b32.xlu0 %v1126_v31, %s1451_s26 }
 0xb79   :  { %v1128_v33 = vpop.f32.mrf.mxu1 }
 0xb7a   :  { %1056 = vrot.lane.b32.xlu0 %v1326_v32, %s1453_s7  ;;  %1135 = vrot.lane.b32.xlu1 %v1128_v33, %s1451_s26 }
 0xbe4   :  { %v1134_v34 = vpop.permute.xlu0 %1133 }
 0xbe5   :  { %v1139_v35 = vadd.f32 %v1134_v34, %v976_v59 }
 0xbe7   :  { %1381 = vtanh.f32 %v1139_v35 }
 0xbec   :  { %v1136_v41 = vpop.permute.xlu1 %1135  ;;  %v1057_v39 = vpop.permute.xlu0 %1056 }
 0xbed   :  { %v1382_v43 = vpop.eup %1381  ;;  %v1140_v36 = vadd.f32 %v1136_v41, %v978_v1  ;;  %v1059_v42 = vsub.f32 %v1777_v60, %v1057_v39  ;;  %v1060_v44 = vsub.f32 %v1015_v58, %v1057_v39 }
 0xbee   :  { %1149 = vrot.lane.b32.xlu1 %v1382_v43, %s1449_s25 }
 0xbef   :  { %1383 = vtanh.f32 %v1140_v36  ;;  %v1279_v38 = vmul.f32 -1.442695, %v1059_v42  ;;  %v1280_v45 = vmul.f32 -1.442695, %v1060_v44 }
 0xbf1   :  { %1385 = vpow2.f32 %v1279_v38 }
 0xbf2   :  { %1387 = vpow2.f32 %v1280_v45 }
 0xbf5   :  { %v1384_v37 = vpop.eup %1383 }
 0xbf6   :  { %1151 = vrot.lane.b32.xlu0 %v1384_v37, %s1449_s25 }
 0xbf7   :  { %v1386_v46 = vpop.eup %1385 }
 0xbf8   :  { %v1067_v48 = vadd.f32 1.0, %v1386_v46  ;;  %v1388_v49 = vpop.eup %1387 }
 0xbf9   :  { %v1068_v50 = vadd.f32 1.0, %v1388_v49 }
 0xbfa   :  { %1389 = vrcp.f32 %v1067_v48  ;;  %v1080_v59 = vand.u32 2147483648, %v1067_v48  ;;  %vm1074_vm10 = vweird.f32 %v1067_v48  ;;  %v1078_v60 = vand.u32 2147483647, %v1067_v48 }
 0xbfb   :  { %1391 = vrcp.f32 %v1068_v50  ;;  %v1095_v58 = vand.u32 2147483648, %v1068_v50  ;;  %vm1089_vm3 = vweird.f32 %v1068_v50  ;;  %v1093_v2 = vand.u32 2147483647, %v1068_v50 }
 0xbfc   :  { %v1081_v63 = vor.u32 1.1754944e-38, %v1080_v59  ;;  %vm1079_vm1 = vcmp.eq.f32.partialorder %v1078_v60, 8.507059e+37 }
 0xbfd   :  { %v1096_v6 = vor.u32 1.1754944e-38, %v1095_v58  ;;  %vm1094_vm5 = vcmp.eq.f32.partialorder %v1093_v2, 8.507059e+37 }
 0xc00   :  { %v1390_v51 = vpop.eup %1389 }
 0xc01   :  { %v1070_v52 = vmul.f32 %v1390_v51, %v1067_v48  ;;  %v1392_v54 = vpop.eup %1391  ;;  %vm1075_vm9 = vweird.f32 %v1390_v51 }
 0xc02   :  { %v1085_v47 = vmul.f32 %v1392_v54, %v1068_v50  ;;  %vm1076_vm15 = vmor %vm1074_vm10, %vm1075_vm9  ;;  %vm1090_vm2 = vweird.f32 %v1392_v54 }
 0xc03   :  { %v1071_v53 = vsub.f32 1.0, %v1070_v52  ;;  %vm1091_vm4 = vmor %vm1089_vm3, %vm1090_vm2 }
 0xc04   :  { %v1086_v57 = vsub.f32 1.0, %v1085_v47 }
 0xc05   :  { %v1072_v55 = vmul.f32 %v1390_v51, %v1071_v53 }
 0xc06   :  { %v1087_v62 = vmul.f32 %v1392_v54, %v1086_v57 }
 0xc07   :  { %v1073_v56 = vadd.f32 %v1390_v51, %v1072_v55 }
 0xc08   :  { %v1088_v1 = vadd.f32 %v1392_v54, %v1087_v62 }
 0xc09   :  { %v1077_v61 = vsel %vm1076_vm15, %v1390_v51, %v1073_v56 }
 0xc0a   :  { %v1082_v0 = vsel %vm1079_vm1, %v1081_v63, %v1077_v61  ;;  %v1092_v4 = vsel %vm1091_vm4, %v1392_v54, %v1088_v1 }
 0xc0b   :  { %v1143_v3 = vsub.f32 1.0, %v1082_v0  ;;  %v1097_v9 = vsel %vm1094_vm5, %v1096_v6, %v1092_v4 }
 0xc0c   :  { %v1144_v12 = vsub.f32 1.0, %v1097_v9 }
 0xc0d   :  { %v1145_v7 = vmul.f32 %v1143_v3, %v1703_v23 }
 0xc0e   :  { %v1146_v14 = vmul.f32 %v1144_v12, %v1707_v40 }
 0xc60   :  { %v1150_v5 = vpop.permute.xlu1 %1149 }
 0xc61   :  { %v1155_v8 = vmul.f32 %v1150_v5, %v1082_v0 }
 0xc63   :  { %v1157_v11 = vadd.f32 %v1155_v8, %v1145_v7 }
 0xc65   :  { %1161 = vrot.lane.b32.xlu2 %v1157_v11, %s1449_s25 }
 0xc68   :  { %v1152_v13 = vpop.permute.xlu0 %1151 }
 0xc69   :  { %v1156_v15 = vmul.f32 %v1152_v13, %v1097_v9 }
 0xc6b   :  { %v1158_v16 = vadd.f32 %v1156_v15, %v1146_v14 }
 0xc6d   :  { %1163 = vrot.lane.b32.xlu1 %v1158_v16, %s1449_s25 }
 0xcbf   :  { %v1162_v17 = vpop.permute.xlu2 %1161 }
 0xcc0   :  { %1167 = vst.msk [vmem:[%s1829_s19] sm:$0xff] %vm94_vm0, %v1162_v17 }
 0xcdf   :  { %v1164_v23 = vpop.permute.xlu1 %1163 }
 0xce0   :  { %1168 = vst.msk [vmem:[%s1829_s19 + $0x8] sm:$0xff] %vm94_vm0, %v1164_v23 }
 0xce1   :  { %1173 = vsyncpa [#allocation3], 1 }
 0xce2   :  { %1174 = vsyncpa [#allocation5], 1 }

// kernel: pi_transformer_forward.7
= control target key start
LH: loop header
LB: loop body
LE: loop exit
PB: predicated region body
PF: predicated region fallthrough
CT: control target
= control target key end

     0   :  { %12 = vsyncpa [#allocation3], 0  ;;  %s834_s27 = smov [#allocation2]   ;;  %s835_s29 = smov 128   ;;  %s975_s0 = inlined_call_operand.vmem [shape: f32[16,32], index: 0, kind: input, shape index: {}]   ;;  %s976_s1 = inlined_call_operand.vmem [shape: bf16[32,256], index: 1, kind: input, shape index: {}]   ;;  %s977_s2 = inlined_call_operand.vmem [shape: f32[1,256], index: 2, kind: input, shape index: {}]   ;;  %s978_s3 = inlined_call_operand.hbm [shape: bf16[256,256], index: 3, kind: input, shape index: {}]   ;;  %s979_s4 = inlined_call_operand.vmem [shape: f32[1,256], index: 4, kind: input, shape index: {}]   ;;  %s980_s5 = inlined_call_operand.vmem [shape: bf16[256,8], index: 5, kind: input, shape index: {}]   ;;  %s981_s6 = inlined_call_operand.vmem [shape: f32[1,8], index: 6, kind: input, shape index: {}]   ;;  %s982_s7 = inlined_call_operand.vmem [shape: f32[16,8], index: 7, kind: output, shape index: {}]  }
   0x1   :  { %s23_s26 = sshll.u32 %s978_s3, 4  ;;  %s25_s28 = sshll.u32 %s834_s27, 4  ;;  %s24_s26 = int_to_ptr.hbm [resolvable:$true] %s23_s26  ;;  %s26_s28 = int_to_ptr.vmem [resolvable:$true] %s25_s28 }
   0x2   :  { %s836_s30 = smov 8  }
   0x3   :  { %31 = dma.hbm_to_vmem [thread:$0]  %s24_s26, 4096, %s26_s28, [#allocation3], %s835_s29, %s835_s29, %s836_s30  }
   0x4   :  { %832 = dma.done.wait [#allocation3], 4096  }
   0x5   :  { %833 = vsyncadd [#allocation3], 4294963200  ;;  %v552_v0 = vld [vmem:[%s976_s1 + $0x10] sm:$0xf]  ;;  %v755_v1 = vld [vmem:[%s976_s1 + $0x14] sm:$0xf0] }
   0x6   :  { %v754_v2 = vld [vmem:[%s976_s1 + $0x14] sm:$0xf]  ;;  %v553_v3 = vor.u32 %v755_v1, %v552_v0  ;;  %v554_v4 = vld [vmem:[%s976_s1 + $0x18] sm:$0xf0]  ;;  %v544_v5 = vld [vmem:[%s976_s1] sm:$0xf] }
   0x7   :  { %v753_v6 = vld [vmem:[%s976_s1 + $0x4] sm:$0xf0]  ;;  %v557_v7 = vor.u32 %v754_v2, %v554_v4  ;;  %v752_v8 = vld [vmem:[%s976_s1 + $0x4] sm:$0xf]  ;;  %v546_v9 = vld [vmem:[%s976_s1 + $0x8] sm:$0xf0] }
   0x8   :  { %v43_v10 = vld [vmem:[%s975_s0] sm:$0xff]  ;;  %86 = vmatpush.bf16.msra.mxu0 %v553_v3  ;;  %v545_v11 = vor.u32 %v753_v6, %v544_v5  ;;  %v44_v12 = vld [vmem:[%s975_s0 + $0x8] sm:$0xff]  ;;  %vm76_vm0 = vcmask 261120   ;;  %v618_v13 = vld [vmem:[#allocation2 + $0x70] sm:$0xf]  ;;  %v549_v15 = vor.u32 %v752_v8, %v546_v9  ;;  %vm534_vm1 = vcmask 64512  }
   0x9   :  { %v771_v14 = vld [vmem:[#allocation2 + $0x74] sm:$0xf0]  ;;  %100 = vmatpush.bf16.msra.mxu1 %v557_v7  ;;  %v682_v17 = vld [vmem:[#allocation2 + $0xf0] sm:$0xf]  ;;  %v770_v19 = vld [vmem:[#allocation2 + $0x74] sm:$0xf]  ;;  %v45_v24 = vpack.c.bf16 %v44_v12, %v43_v10 }
   0xa   :  { %v619_v16 = vor.u32 %v771_v14, %v618_v13  ;;  %v787_v18 = vld [vmem:[#allocation2 + $0xf4] sm:$0xf0]  ;;  %v620_v21 = vld [vmem:[#allocation2 + $0x78] sm:$0xf0]  ;;  %v786_v22 = vld [vmem:[#allocation2 + $0xf4] sm:$0xf] }
   0xb   :  { %v683_v20 = vor.u32 %v787_v18, %v682_v17  ;;  %v684_v23 = vld [vmem:[#allocation2 + $0xf8] sm:$0xf0]  ;;  %v623_v25 = vor.u32 %v770_v19, %v620_v21  ;;  %v610_v27 = vld [vmem:[#allocation2 + $0x60] sm:$0xf]  ;;  %v769_v28 = vld [vmem:[#allocation2 + $0x64] sm:$0xf0] }
   0xc   :  { %312 = vmatpush.bf16.msra.mxu2 %v619_v16  ;;  %v687_v26 = vor.u32 %v786_v22, %v684_v23  ;;  %v674_v29 = vld [vmem:[#allocation2 + $0xe0] sm:$0xf]  ;;  %87 = vmatpush.bf16.msra.mxu0 %v545_v11  ;;  %v611_v30 = vor.u32 %v769_v28, %v610_v27  ;;  %v785_v31 = vld [vmem:[#allocation2 + $0xe4] sm:$0xf0]  ;;  %v768_v32 = vld [vmem:[#allocation2 + $0x64] sm:$0xf] }
   0xd   :  { %326 = vmatpush.bf16.msra.mxu3 %v683_v20  ;;  %v612_v33 = vld [vmem:[#allocation2 + $0x68] sm:$0xf0]  ;;  %101 = vmatpush.bf16.msra.mxu1 %v549_v15  ;;  %v675_v34 = vor.u32 %v785_v31, %v674_v29  ;;  %v784_v36 = vld [vmem:[#allocation2 + $0xe4] sm:$0xf]  ;;  %v602_v38 = vld [vmem:[#allocation2 + $0x50] sm:$0xf] }
   0xe   :  { %v615_v35 = vor.u32 %v768_v32, %v612_v33  ;;  %v676_v37 = vld [vmem:[#allocation2 + $0xe8] sm:$0xf0]  ;;  %v767_v40 = vld [vmem:[#allocation2 + $0x54] sm:$0xf0]  ;;  %v666_v41 = vld [vmem:[#allocation2 + $0xd0] sm:$0xf] }
   0xf   :  { %v679_v39 = vor.u32 %v784_v36, %v676_v37  ;;  %v783_v42 = vld [vmem:[#allocation2 + $0xd4] sm:$0xf0]  ;;  %558 = vmatmul.msk.bf16.vlgmr.msra.gmra.mxu0 %vm76_vm0, %v45_v24  ;;  %v603_v43 = vor.u32 %v767_v40, %v602_v38  ;;  %v766_v44 = vld [vmem:[#allocation2 + $0x54] sm:$0xf]  ;;  %v604_v45 = vld [vmem:[#allocation2 + $0x58] sm:$0xf0] }
  0x10   :  { %340 = vmatpush.bf16.msrb.mxu0 %v623_v25  ;;  %313 = vmatpush.bf16.msra.mxu2 %v611_v30  ;;  %v782_v46 = vld [vmem:[#allocation2 + $0xd4] sm:$0xf]  ;;  %v667_v47 = vor.u32 %v783_v42, %v666_v41  ;;  %v668_v48 = vld [vmem:[#allocation2 + $0xd8] sm:$0xf0]  ;;  %v594_v49 = vld [vmem:[#allocation2 + $0x40] sm:$0xf]  ;;  %v607_v51 = vor.u32 %v766_v44, %v604_v45 }
  0x11   :  { %354 = vmatpush.bf16.msrb.mxu1 %v687_v26  ;;  %327 = vmatpush.bf16.msra.mxu3 %v675_v34  ;;  %v765_v50 = vld [vmem:[#allocation2 + $0x44] sm:$0xf0]  ;;  %v658_v52 = vld [vmem:[#allocation2 + $0xc0] sm:$0xf]  ;;  %v671_v54 = vor.u32 %v782_v46, %v668_v48  ;;  %v764_v55 = vld [vmem:[#allocation2 + $0x44] sm:$0xf] }
  0x12   :  { %559 = vmatmul.msk.bf16.vlgmr.msra.gmra.mxu1 %vm76_vm0, %v45_v24  ;;  %v781_v53 = vld [vmem:[#allocation2 + $0xc4] sm:$0xf0]  ;;  %v596_v56 = vld [vmem:[#allocation2 + $0x48] sm:$0xf0]  ;;  %v595_v57 = vor.u32 %v765_v50, %v594_v49  ;;  %v780_v58 = vld [vmem:[#allocation2 + $0xc4] sm:$0xf] }
  0x13   :  { %v660_v59 = vld [vmem:[#allocation2 + $0xc8] sm:$0xf0]  ;;  %v659_v60 = vor.u32 %v781_v53, %v658_v52  ;;  %v599_v61 = vor.u32 %v764_v55, %v596_v56  ;;  %v586_v63 = vld [vmem:[#allocation2 + $0x30] sm:$0xf]  ;;  %v763_v0 = vld [vmem:[#allocation2 + $0x34] sm:$0xf0] }
  0x14   :  { %341 = vmatpush.bf16.msrb.mxu0 %v615_v35  ;;  %314 = vmatpush.bf16.msra.mxu2 %v603_v43  ;;  %v663_v62 = vor.u32 %v780_v58, %v660_v59  ;;  %v650_v1 = vld [vmem:[#allocation2 + $0xb0] sm:$0xf]  ;;  %v587_v2 = vor.u32 %v763_v0, %v586_v63  ;;  %v779_v3 = vld [vmem:[#allocation2 + $0xb4] sm:$0xf0]  ;;  %v762_v4 = vld [vmem:[#allocation2 + $0x34] sm:$0xf] }
  0x15   :  { %355 = vmatpush.bf16.msrb.mxu1 %v679_v39  ;;  %328 = vmatpush.bf16.msra.mxu3 %v667_v47  ;;  %v588_v5 = vld [vmem:[#allocation2 + $0x38] sm:$0xf0]  ;;  %v651_v6 = vor.u32 %v779_v3, %v650_v1  ;;  %v778_v8 = vld [vmem:[#allocation2 + $0xb4] sm:$0xf]  ;;  %v578_v11 = vld [vmem:[#allocation2 + $0x20] sm:$0xf] }
  0x16   :  { %v591_v7 = vor.u32 %v762_v4, %v588_v5  ;;  %v652_v9 = vld [vmem:[#allocation2 + $0xb8] sm:$0xf0]  ;;  %v761_v12 = vld [vmem:[#allocation2 + $0x24] sm:$0xf0]  ;;  %v642_v14 = vld [vmem:[#allocation2 + $0xa0] sm:$0xf] }
  0x17   :  { %v655_v10 = vor.u32 %v778_v8, %v652_v9  ;;  %v579_v13 = vor.u32 %v761_v12, %v578_v11  ;;  %v777_v15 = vld [vmem:[#allocation2 + $0xa4] sm:$0xf0]  ;;  %v760_v16 = vld [vmem:[#allocation2 + $0x24] sm:$0xf]  ;;  %v580_v18 = vld [vmem:[#allocation2 + $0x28] sm:$0xf0] }
  0x18   :  { %342 = vmatpush.bf16.msrb.mxu0 %v607_v51  ;;  %315 = vmatpush.bf16.msra.mxu2 %v595_v57  ;;  %v643_v17 = vor.u32 %v777_v15, %v642_v14  ;;  %v776_v19 = vld [vmem:[#allocation2 + $0xa4] sm:$0xf]  ;;  %v644_v20 = vld [vmem:[#allocation2 + $0xa8] sm:$0xf0]  ;;  %v583_v21 = vor.u32 %v760_v16, %v580_v18  ;;  %v570_v23 = vld [vmem:[#allocation2 + $0x10] sm:$0xf] }
  0x19   :  { %356 = vmatpush.bf16.msrb.mxu1 %v671_v54  ;;  %329 = vmatpush.bf16.msra.mxu3 %v659_v60  ;;  %v647_v22 = vor.u32 %v776_v19, %v644_v20  ;;  %v759_v24 = vld [vmem:[#allocation2 + $0x14] sm:$0xf0]  ;;  %v634_v25 = vld [vmem:[#allocation2 + $0x90] sm:$0xf]  ;;  %v758_v28 = vld [vmem:[#allocation2 + $0x14] sm:$0xf] }
  0x1a   :  { %v571_v26 = vor.u32 %v759_v24, %v570_v23  ;;  %v775_v27 = vld [vmem:[#allocation2 + $0x94] sm:$0xf0]  ;;  %v572_v29 = vld [vmem:[#allocation2 + $0x18] sm:$0xf0]  ;;  %v774_v32 = vld [vmem:[#allocation2 + $0x94] sm:$0xf] }
  0x1b   :  { %v635_v30 = vor.u32 %v775_v27, %v634_v25  ;;  %v575_v31 = vor.u32 %v758_v28, %v572_v29  ;;  %v636_v33 = vld [vmem:[#allocation2 + $0x98] sm:$0xf0]  ;;  %v562_v35 = vld [vmem:[#allocation2] sm:$0xf]  ;;  %v757_v36 = vld [vmem:[#allocation2 + $0x4] sm:$0xf0] }
  0x1c   :  { %343 = vmatpush.bf16.msrb.mxu0 %v599_v61  ;;  %316 = vmatpush.bf16.msra.mxu2 %v587_v2  ;;  %v639_v34 = vor.u32 %v774_v32, %v636_v33  ;;  %v626_v37 = vld [vmem:[#allocation2 + $0x80] sm:$0xf]  ;;  %v563_v38 = vor.u32 %v757_v36, %v562_v35  ;;  %v773_v39 = vld [vmem:[#allocation2 + $0x84] sm:$0xf0]  ;;  %v756_v40 = vld [vmem:[#allocation2 + $0x4] sm:$0xf] }
  0x1d   :  { %357 = vmatpush.bf16.msrb.mxu1 %v663_v62  ;;  %330 = vmatpush.bf16.msra.mxu3 %v651_v6  ;;  %v564_v41 = vld [vmem:[#allocation2 + $0x8] sm:$0xf0]  ;;  %v627_v42 = vor.u32 %v773_v39, %v626_v37  ;;  %v772_v44 = vld [vmem:[#allocation2 + $0x84] sm:$0xf]  ;;  %v803_v47 = vld [vmem:[%s980_s5 + $0x78] sm:$0xff] }
  0x1e   :  { %v567_v43 = vor.u32 %v756_v40, %v564_v41  ;;  %v628_v45 = vld [vmem:[#allocation2 + $0x88] sm:$0xf0]  ;;  %v795_v48 = vld [vmem:[%s980_s5 + $0x38] sm:$0xff]  ;;  %v802_v49 = vld [vmem:[%s980_s5 + $0x70] sm:$0xff] }
  0x1f   :  { %v631_v46 = vor.u32 %v772_v44, %v628_v45  ;;  %v794_v50 = vld [vmem:[%s980_s5 + $0x30] sm:$0xff]  ;;  %v801_v51 = vld [vmem:[%s980_s5 + $0x68] sm:$0xff]  ;;  %v800_v52 = vld [vmem:[%s980_s5 + $0x60] sm:$0xff] }
  0x20   :  { %344 = vmatpush.bf16.msrb.mxu0 %v591_v7  ;;  %317 = vmatpush.bf16.msra.mxu2 %v579_v13  ;;  %v50_v53 = vld [vmem:[%s977_s2] sm:$0x3]  ;;  %v793_v6 = vld [vmem:[%s980_s5 + $0x28] sm:$0xff]  ;;  %v799_v7 = vld [vmem:[%s980_s5 + $0x58] sm:$0xff] }
  0x21   :  { %358 = vmatpush.bf16.msrb.mxu1 %v655_v10  ;;  %331 = vmatpush.bf16.msra.mxu3 %v643_v17  ;;  %v52_v56 = vperm.slane %v50_v53, 0  ;;  %v53_v57 = vperm.slane %v50_v53, 1  ;;  %v792_v8 = vld [vmem:[%s980_s5 + $0x20] sm:$0xff]  ;;  %v798_v9 = vld [vmem:[%s980_s5 + $0x50] sm:$0xff]  ;;  %v791_v10 = vld [vmem:[%s980_s5 + $0x18] sm:$0xff] }
  0x22   :  { %v797_v11 = vld [vmem:[%s980_s5 + $0x48] sm:$0xff]  ;;  %v790_v12 = vld [vmem:[%s980_s5 + $0x10] sm:$0xff]  ;;  %v796_v13 = vld [vmem:[%s980_s5 + $0x40] sm:$0xff] }
  0x23   :  { %v789_v14 = vld [vmem:[%s980_s5 + $0x8] sm:$0xff]  ;;  %v788_v15 = vld [vmem:[%s980_s5] sm:$0xff] }
  0x24   :  { %345 = vmatpush.bf16.msrb.mxu0 %v583_v21  ;;  %318 = vmatpush.bf16.msra.mxu2 %v571_v26  ;;  %v146_v16 = vld [vmem:[%s979_s4] sm:$0x3] }
  0x25   :  { %359 = vmatpush.bf16.msrb.mxu1 %v647_v22  ;;  %332 = vmatpush.bf16.msra.mxu3 %v635_v30  ;;  %v149_v18 = vperm.slane %v146_v16, 1  ;;  %v148_v22 = vperm.slane %v146_v16, 0  ;;  %v807_v41 = vld [vmem:[%s981_s6] ss:$0 sm:$0xff] }
  0x28   :  { %346 = vmatpush.bf16.msrb.mxu0 %v575_v31  ;;  %319 = vmatpush.bf16.msra.mxu2 %v563_v38 }
  0x29   :  { %360 = vmatpush.bf16.msrb.mxu1 %v639_v34  ;;  %333 = vmatpush.bf16.msra.mxu3 %v627_v42 }
  0x2c   :  { %347 = vmatpush.bf16.msrb.mxu0 %v567_v43  ;;  %506 = vmatpush.bf16.msrb.mxu2 %v795_v48 }
  0x2d   :  { %361 = vmatpush.bf16.msrb.mxu1 %v631_v46  ;;  %520 = vmatpush.bf16.msrb.mxu3 %v803_v47 }
  0x30   :  { %507 = vmatpush.bf16.msrb.mxu2 %v794_v50 }
  0x31   :  { %521 = vmatpush.bf16.msrb.mxu3 %v802_v49 }
  0x34   :  { %508 = vmatpush.bf16.msrb.mxu2 %v793_v6 }
  0x35   :  { %522 = vmatpush.bf16.msrb.mxu3 %v801_v51 }
  0x38   :  { %509 = vmatpush.bf16.msrb.mxu2 %v792_v8 }
  0x39   :  { %523 = vmatpush.bf16.msrb.mxu3 %v800_v52 }
  0x3c   :  { %510 = vmatpush.bf16.msrb.mxu2 %v791_v10 }
  0x3d   :  { %524 = vmatpush.bf16.msrb.mxu3 %v799_v7 }
  0x40   :  { %511 = vmatpush.bf16.msrb.mxu2 %v790_v12 }
  0x41   :  { %525 = vmatpush.bf16.msrb.mxu3 %v798_v9 }
  0x44   :  { %512 = vmatpush.bf16.msrb.mxu2 %v789_v14 }
  0x45   :  { %526 = vmatpush.bf16.msrb.mxu3 %v797_v11 }
  0x48   :  { %513 = vmatpush.bf16.msrb.mxu2 %v788_v15 }
  0x49   :  { %527 = vmatpush.bf16.msrb.mxu3 %v796_v13 }
  0x8c   :  { %v89_v54 = vpop.f32.mrf.mxu0 }
  0x8d   :  { %v90_v58 = vadd.f32 %v89_v54, %v52_v56 }
  0x8f   :  { %v103_v55 = vpop.f32.mrf.mxu1  ;;  %v108_v0 = vmax.f32 %v90_v58, 0.0 }
  0x90   :  { %v104_v59 = vadd.f32 %v103_v55, %v53_v57 }
  0x92   :  { %v109_v2 = vmax.f32 %v104_v59, 0.0 }
  0x94   :  { %v91_v60 = vpop.f32.mrf.mxu0 }
  0x95   :  { %v92_v61 = vadd.f32 %v91_v60, %v52_v56 }
  0x97   :  { %v105_v62 = vpop.f32.mrf.mxu1  ;;  %v110_v1 = vmax.f32 %v92_v61, 0.0 }
  0x98   :  { %v106_v63 = vadd.f32 %v105_v62, %v53_v57 }
  0x99   :  { %v112_v4 = vpack.c.bf16 %v110_v1, %v108_v0 }
  0x9a   :  { %v111_v3 = vmax.f32 %v106_v63, 0.0 }
  0x9b   :  { %320 = vmatmul.bf16.vlgmr.msra.gmra.mxu2 %v112_v4  ;;  %348 = vmatmul.bf16.vlgmr.msrb.gmra.mxu0 %v112_v4 }
  0x9c   :  { %v113_v5 = vpack.c.bf16 %v111_v3, %v109_v2 }
  0x9e   :  { %334 = vmatmul.bf16.vlgmr.msra.gmra.mxu3 %v113_v5  ;;  %362 = vmatmul.bf16.vlgmr.msrb.gmra.mxu1 %v113_v5 }
 0x118   :  { %v349_v17 = vpop.f32.mrf.mxu0 }
 0x119   :  { %v350_v20 = vadd.f32 %v349_v17, %v149_v18 }
 0x11b   :  { %v363_v19 = vpop.f32.mrf.mxu1 }
 0x11c   :  { %v364_v25 = vadd.f32 %v363_v19, %v350_v20 }
 0x11e   :  { %v321_v21 = vpop.f32.mrf.mxu2  ;;  %v369_v30 = vmax.f32 %v364_v25, 0.0 }
 0x11f   :  { %v322_v28 = vadd.f32 %v321_v21, %v148_v22 }
 0x120   :  { %v351_v24 = vpop.f32.mrf.mxu0 }
 0x121   :  { %v335_v23 = vpop.f32.mrf.mxu3  ;;  %v352_v26 = vadd.f32 %v351_v24, %v149_v18 }
 0x122   :  { %v336_v33 = vadd.f32 %v335_v23, %v322_v28 }
 0x123   :  { %v365_v27 = vpop.f32.mrf.mxu1 }
 0x124   :  { %v366_v29 = vadd.f32 %v365_v27, %v352_v26  ;;  %v368_v38 = vmax.f32 %v336_v33, 0.0 }
 0x126   :  { %v371_v31 = vmax.f32 %v366_v29, 0.0  ;;  %v323_v32 = vpop.f32.mrf.mxu2 }
 0x127   :  { %v324_v35 = vadd.f32 %v323_v32, %v148_v22 }
 0x128   :  { %v373_v34 = vpack.c.bf16 %v371_v31, %v369_v30 }
 0x129   :  { %v337_v36 = vpop.f32.mrf.mxu3 }
 0x12a   :  { %v338_v37 = vadd.f32 %v337_v36, %v324_v35  ;;  %528 = vmatmul.bf16.vlgmr.msrb.gmra.mxu3 %v373_v34 }
 0x12c   :  { %v370_v39 = vmax.f32 %v338_v37, 0.0 }
 0x12e   :  { %v372_v40 = vpack.c.bf16 %v370_v39, %v368_v38 }
 0x130   :  { %514 = vmatmul.bf16.vlgmr.msrb.gmra.mxu2 %v372_v40 }
 0x1ad   :  { %v529_v42 = vpop.f32.mrf.mxu3 }
 0x1b3   :  { %v515_v43 = vpop.f32.mrf.mxu2 }
 0x1b4   :  { %v516_v44 = vadd.f32 %v807_v41, %v515_v43 }
 0x1b5   :  { %v531_v48 = vpop.f32.mrf.mxu3 }
 0x1b6   :  { %v530_v45 = vadd.f32 %v529_v42, %v516_v44 }
 0x1b8   :  { %535 = vst.msk [vmem:[%s982_s7] sm:$0xff] %vm534_vm1, %v530_v45 }
 0x1bb   :  { %v517_v46 = vpop.f32.mrf.mxu2 }
 0x1bc   :  { %v518_v47 = vadd.f32 %v807_v41, %v517_v46 }
 0x1be   :  { %v532_v49 = vadd.f32 %v531_v48, %v518_v47 }
 0x1c0   :  { %536 = vst.msk [vmem:[%s982_s7 + $0x8] sm:$0xff] %vm534_vm1, %v532_v49 }
 0x1c1   :  { %541 = vsyncpa [#allocation3], 1 }

// kernel: pi_transformer_forward.6
= control target key start
LH: loop header
LB: loop body
LE: loop exit
PB: predicated region body
PF: predicated region fallthrough
CT: control target
= control target key end

     0   :  { %s3171_s6 = smov 1   ;;  %s3172_s10 = smov 2   ;;  %s3814_s0 = inlined_call_operand.smem [shape: u32[33], index: -1, kind: input, shape index: {}] }
   0x1   :  { %s3239_s5 = sld [smem:[%s3814_s0]]   ;;  %s3173_s14 = smov 3  }
   0x2   :  { %s3244_s9 = sld [smem:[%s3814_s0 + %s3171_s6]]   ;;  %s3174_s18 = smov 4  }
   0x3   :  { %s3249_s13 = sld [smem:[%s3814_s0 + %s3172_s10]]   ;;  %s3175_s22 = smov 5  }
   0x4   :  { %s3254_s17 = sld [smem:[%s3814_s0 + %s3173_s14]]   ;;  %s3176_s26 = smov 6  }
   0x5   :  { %s3259_s21 = sld [smem:[%s3814_s0 + %s3174_s18]]   ;;  %s3177_s30 = smov 7  }
   0x6   :  { %s3264_s25 = sld [smem:[%s3814_s0 + %s3175_s22]]   ;;  %s3178_s4 = smov 8  }
   0x7   :  { %3828 = sst [smem:[#allocation44_spill]] %s3239_s5  ;;  %s3179_s10 = smov 9  }
   0x8   :  { %3829 = sst [smem:[#allocation45_spill]] %s3244_s9  ;;  %s3180_s15 = smov 10  }
   0x9   :  { %3830 = sst [smem:[#allocation46_spill]] %s3249_s13  ;;  %s3181_s20 = smov 11  }
   0xa   :  { %s3269_s29 = sld [smem:[%s3814_s0 + %s3176_s26]]   ;;  %s3182_s26 = smov 12  }
   0xb   :  { %3831 = sst [smem:[#allocation47_spill]] %s3259_s21  ;;  %s3183_s1 = smov 13  }
   0xc   :  { %3832 = sst [smem:[#allocation48_spill]] %s3264_s25  ;;  %s3184_s7 = smov 14  }
   0xd   :  { %s3274_s3 = sld [smem:[%s3814_s0 + %s3177_s30]]   ;;  %s3186_s22 = smov 16  }
   0xe   :  { %s3279_s8 = sld [smem:[%s3814_s0 + %s3178_s4]]   ;;  %s3187_s28 = smov 17  }
   0xf   :  { %s3284_s14 = sld [smem:[%s3814_s0 + %s3179_s10]]  }
  0x10   :  { %3833 = sst [smem:[#allocation49_spill]] %s3269_s29 }
  0x11   :  { %s3289_s19 = sld [smem:[%s3814_s0 + %s3180_s15]]   ;;  %s3185_s15 = smov 15  }
  0x12   :  { %s3294_s24 = sld [smem:[%s3814_s0 + %s3181_s20]]  }
  0x13   :  { %s3299_s30 = sld [smem:[%s3814_s0 + %s3182_s26]]  }
  0x14   :  { %3834 = sst [smem:[#allocation50_spill]] %s3279_s8 }
  0x15   :  { %3835 = sst [smem:[#allocation51_spill]] %s3284_s14 }
  0x16   :  { %s3304_s6 = sld [smem:[%s3814_s0 + %s3183_s1]]  }
  0x17   :  { %3836 = sst [smem:[#allocation52_spill]] %s3289_s19 }
  0x18   :  { %s3309_s12 = sld [smem:[%s3814_s0 + %s3184_s7]]   ;;  %s3188_s7 = smov 18  }
  0x19   :  { %s3314_s20 = sld [smem:[%s3814_s0 + %s3185_s15]]   ;;  %s3189_s15 = smov 19  }
  0x1a   :  { %s3319_s27 = sld [smem:[%s3814_s0 + %s3186_s22]]   ;;  %s3190_s22 = smov 20  }
  0x1b   :  { %s3324_s4 = sld [smem:[%s3814_s0 + %s3187_s28]]   ;;  %s3191_s28 = smov 21  }
  0x1c   :  { %3837 = sst [smem:[#allocation53_spill]] %s3304_s6 }
  0x1d   :  { %s3329_s9 = sld [smem:[%s3814_s0 + %s3188_s7]]   ;;  %s3192_s7 = smov 22  }
  0x1e   :  { %s3334_s6 = sld [smem:[%s3814_s0 + %s3189_s15]]   ;;  %s3193_s15 = smov 23  }
  0x1f   :  { %3838 = sst [smem:[#allocation54_spill]] %s3314_s20 }
  0x20   :  { %s3339_s20 = sld [smem:[%s3814_s0 + %s3190_s22]]   ;;  %s3194_s22 = smov 24  }
  0x21   :  { %s3344_s19 = sld [smem:[%s3814_s0 + %s3191_s28]]   ;;  %s3195_s28 = smov 25  }
  0x22   :  { %s3349_s8 = sld [smem:[%s3814_s0 + %s3192_s7]]   ;;  %s3196_s7 = smov 26  }
  0x23   :  { %s3354_s14 = sld [smem:[%s3814_s0 + %s3193_s15]]   ;;  %s3197_s15 = smov 27  }
  0x24   :  { %s3359_s29 = sld [smem:[%s3814_s0 + %s3194_s22]]   ;;  %s3198_s22 = smov 28  }
  0x25   :  { %s3364_s13 = sld [smem:[%s3814_s0 + %s3195_s28]]   ;;  %s3199_s28 = smov 29  }
  0x26   :  { %s3369_s25 = sld [smem:[%s3814_s0 + %s3196_s7]]   ;;  %s3200_s7 = smov 30  }
  0x27   :  { %s3374_s21 = sld [smem:[%s3814_s0 + %s3197_s15]]   ;;  %s3201_s15 = smov 31  }
  0x28   :  { %s3379_s5 = sld [smem:[%s3814_s0 + %s3198_s22]]   ;;  %s3202_s22 = smov 32  }
  0x29   :  { %3839 = sst [smem:[#allocation55_spill]] %s3354_s14 }
  0x2a   :  { %s3394_s14 = sld [smem:[%s3814_s0 + %s3201_s15]]  }
  0x2b   :  { %3840 = sst [smem:[#allocation56_spill]] %s3364_s13 }
  0x2c   :  { %3841 = sst [smem:[#allocation57_spill]] %s3369_s25 }
  0x2d   :  { %s3384_s13 = sld [smem:[%s3814_s0 + %s3199_s28]]  }
  0x2e   :  { %3842 = sst [smem:[#allocation58_spill]] %s3379_s5 }
  0x2f   :  { %s3389_s25 = sld [smem:[%s3814_s0 + %s3200_s7]]  }
  0x30   :  { %s3399_s5 = sld [smem:[%s3814_s0 + %s3202_s22]]  }
  0x31   :  { %70 = vsyncpa [#allocation3], 0 }
  0x32   :  { %71 = vsyncpa [#allocation5], 0 }
  0x33   :  { %72 = vsyncpa [#allocation8], 0 }
  0x34   :  { %73 = vsyncpa [#allocation11], 0 }
  0x35   :  { %74 = vsyncpa [#allocation14], 0 }
  0x36   :  { %75 = vsyncpa [#allocation17], 0 }
  0x37   :  { %76 = vsyncpa [#allocation20], 0 }
  0x38   :  { %77 = vsyncpa [#allocation23], 0 }
  0x39   :  { %78 = vsyncpa [#allocation26], 0 }
  0x3a   :  { %79 = vsyncpa [#allocation29], 0  ;;  %s109_s28 = sshll.u32 %s3274_s3, 4  ;;  %s110_s28 = int_to_ptr.hbm [resolvable:$true] %s109_s28 }
  0x3b   :  { %80 = vsyncpa [#allocation32], 0  ;;  %s3203_s1 = smov [#allocation4]   ;;  %s137_s2 = sshll.u32 %s3299_s30, 4  ;;  %s138_s2 = int_to_ptr.hbm [resolvable:$true] %s137_s2 }
  0x3c   :  { %s111_s0 = sshll.u32 %s3203_s1, 4  ;;  %s2669_s7 = sshra.s32 %s110_s28, 4  ;;  %s112_s0 = int_to_ptr.vmem [resolvable:$true] %s111_s0  ;;  %s2670_s7 = int_to_ptr.hbm [resolvable:$true] %s2669_s7 }
  0x3d   :  { %s2671_s10 = scalar_lea.hbm %s2670_s7, 1  ;;  %s2673_s11 = scalar_lea.hbm %s3274_s3, 1 }
  0x3e   :  { %p2672_p0 = scmp.ne.s32.totalorder %s2670_s7, %s2671_s10  ;;  %p2674_p1 = scmp.lt.s32.totalorder %s2670_s7, %s3274_s3 }
  0x3f   :  { %p2675_p2 = scmp.lt.s32.totalorder %s2673_s11, %s2671_s10 }
  0x41   :  { %p2676_p3 = por %p2675_p2, %p2674_p1 }
  0x43   :  { %p2677_p4 = pnand %p2676_p3, %p2672_p0 }
  0x45   :  { %2680 = shalt.err (!%p2677_p4)
}
  0x46   :  { %114 = dma.hbm_to_vmem [thread:$0]  %s110_s28, 16, %s112_s0, [#allocation5]  }
  0x47   :  { %s3204_s15 = smov [#allocation7]   ;;  %s163_s18 = sshll.u32 %s3319_s27, 4  ;;  %s164_s18 = int_to_ptr.hbm [resolvable:$true] %s163_s18 }
  0x48   :  { %s139_s16 = sshll.u32 %s3204_s15, 4  ;;  %s2693_s22 = sshra.s32 %s138_s2, 4  ;;  %s140_s16 = int_to_ptr.vmem [resolvable:$true] %s139_s16  ;;  %s2694_s22 = int_to_ptr.hbm [resolvable:$true] %s2693_s22 }
  0x49   :  { %s2695_s23 = scalar_lea.hbm %s2694_s22, 2  ;;  %s2697_s26 = scalar_lea.hbm %s3299_s30, 2 }
  0x4a   :  { %p2696_p5 = scmp.ne.s32.totalorder %s2694_s22, %s2695_s23  ;;  %p2698_p6 = scmp.lt.s32.totalorder %s2694_s22, %s3299_s30 }
  0x4b   :  { %p2699_p7 = scmp.lt.s32.totalorder %s2697_s26, %s2695_s23 }
  0x4d   :  { %p2700_p8 = por %p2699_p7, %p2698_p6 }
  0x4f   :  { %p2701_p9 = pnand %p2700_p8, %p2696_p5 }
  0x51   :  { %2704 = shalt.err (!%p2701_p9)
}
  0x52   :  { %142 = dma.hbm_to_vmem [thread:$0]  %s138_s2, 32, %s140_s16, [#allocation8]  }
  0x53   :  { %s187_s3 = sshll.u32 %s3329_s9, 4  ;;  %s3205_s28 = smov [#allocation10]   ;;  %s188_s3 = int_to_ptr.hbm [resolvable:$true] %s187_s3 }
  0x54   :  { %s165_s1 = sshll.u32 %s3205_s28, 4  ;;  %s2717_s0 = sshra.s32 %s164_s18, 4  ;;  %s166_s1 = int_to_ptr.vmem [resolvable:$true] %s165_s1  ;;  %s2718_s0 = int_to_ptr.hbm [resolvable:$true] %s2717_s0 }
  0x55   :  { %s2719_s7 = scalar_lea.hbm %s2718_s0, 1  ;;  %s2721_s10 = scalar_lea.hbm %s3319_s27, 1 }
  0x56   :  { %p2720_p10 = scmp.ne.s32.totalorder %s2718_s0, %s2719_s7  ;;  %p2722_p11 = scmp.lt.s32.totalorder %s2718_s0, %s3319_s27 }
  0x57   :  { %p2723_p12 = scmp.lt.s32.totalorder %s2721_s10, %s2719_s7 }
  0x59   :  { %p2724_p13 = por %p2723_p12, %p2722_p11 }
  0x5b   :  { %p2725_p0 = pnand %p2724_p13, %p2720_p10 }
  0x5d   :  { %2728 = shalt.err (!%p2725_p0)
}
  0x5e   :  { %168 = dma.hbm_to_vmem [thread:$0]  %s164_s18, 16, %s166_s1, [#allocation11]  }
  0x5f   :  { %s3206_s30 = smov [#allocation13]   ;;  %s2741_s11 = sshra.s32 %s188_s3, 4  ;;  %s2742_s11 = int_to_ptr.hbm [resolvable:$true] %s2741_s11 }
  0x60   :  { %s189_s2 = sshll.u32 %s3206_s30, 4  ;;  %s2743_s15 = scalar_lea.hbm %s2742_s11, 1  ;;  %s190_s2 = int_to_ptr.vmem [resolvable:$true] %s189_s2 }
  0x61   :  { %p2744_p1 = scmp.ne.s32.totalorder %s2742_s11, %s2743_s15  ;;  %s2745_s16 = scalar_lea.hbm %s3329_s9, 1 }
  0x62   :  { %p2746_p2 = scmp.lt.s32.totalorder %s2742_s11, %s3329_s9  ;;  %p2747_p3 = scmp.lt.s32.totalorder %s2745_s16, %s2743_s15 }
  0x64   :  { %p2748_p4 = por %p2747_p3, %p2746_p2 }
  0x66   :  { %p2749_p5 = pnand %p2748_p4, %p2744_p1 }
  0x68   :  { %2752 = shalt.err (!%p2749_p5)
}
  0x69   :  { %192 = dma.hbm_to_vmem [thread:$0]  %s188_s3, 16, %s190_s2, [#allocation14]  }
  0x6a   :  { %s210_s27 = sshll.u32 %s3339_s20, 4  ;;  %s3207_s18 = smov [#allocation16]   ;;  %s211_s27 = int_to_ptr.hbm [resolvable:$true] %s210_s27 }
  0x6b   :  { %s212_s22 = sshll.u32 %s3207_s18, 4  ;;  %s237_s23 = sshll.u32 %s3349_s8, 4  ;;  %s213_s22 = int_to_ptr.vmem [resolvable:$true] %s212_s22  ;;  %s238_s23 = int_to_ptr.hbm [resolvable:$true] %s237_s23 }
  0x6c   :  { %s2765_s26 = sshra.s32 %s211_s27, 4  ;;  %s2769_s9 = scalar_lea.hbm %s3339_s20, 16  ;;  %s2766_s26 = int_to_ptr.hbm [resolvable:$true] %s2765_s26 }
  0x6d   :  { %s2767_s28 = scalar_lea.hbm %s2766_s26, 16  ;;  %p2770_p7 = scmp.lt.s32.totalorder %s2766_s26, %s3339_s20 }
  0x6e   :  { %p2768_p6 = scmp.ne.s32.totalorder %s2766_s26, %s2767_s28  ;;  %p2771_p8 = scmp.lt.s32.totalorder %s2769_s9, %s2767_s28 }
  0x70   :  { %p2772_p9 = por %p2771_p8, %p2770_p7 }
  0x72   :  { %p2773_p10 = pnand %p2772_p9, %p2768_p6 }
  0x74   :  { %2776 = shalt.err (!%p2773_p10)
}
  0x75   :  { %s3208_s3 = smov 64   ;;  %s3209_s1 = smov 4  }
  0x76   :  { %218 = dma.hbm_to_vmem [thread:$0]  %s211_s27, 256, %s213_s22, [#allocation17], %s3208_s3, %s3208_s3, %s3209_s1  }
  0x77   :  { %s3210_s0 = smov [#allocation19]   ;;  %s258_s10 = sshll.u32 %s3359_s29, 4  ;;  %s3421_s10 = int_to_ptr.hbm [resolvable:$true] %s258_s10 }
  0x78   :  { %s239_s7 = sshll.u32 %s3210_s0, 4  ;;  %s2789_s20 = sshra.s32 %s238_s23, 4  ;;  %s240_s7 = int_to_ptr.vmem [resolvable:$true] %s239_s7  ;;  %s2790_s20 = int_to_ptr.hbm [resolvable:$true] %s2789_s20 }
  0x79   :  { %s2791_s30 = scalar_lea.hbm %s2790_s20, 1  ;;  %s2793_s2 = scalar_lea.hbm %s3349_s8, 1 }
  0x7a   :  { %p2792_p11 = scmp.ne.s32.totalorder %s2790_s20, %s2791_s30  ;;  %p2794_p12 = scmp.lt.s32.totalorder %s2790_s20, %s3349_s8 }
  0x7b   :  { %p2795_p13 = scmp.lt.s32.totalorder %s2793_s2, %s2791_s30 }
  0x7d   :  { %p2796_p0 = por %p2795_p13, %p2794_p12 }
  0x7f   :  { %p2797_p1 = pnand %p2796_p0, %p2792_p11 }
  0x81   :  { %2800 = shalt.err (!%p2797_p1)
}
  0x82   :  { %242 = dma.hbm_to_vmem [thread:$0]  %s238_s23, 16, %s240_s7, [#allocation20]  }
  0x83   :  { %s285_s11 = sshll.u32 %s3374_s21, 4  ;;  %s3211_s15 = smov [#allocation22]   ;;  %s286_s11 = int_to_ptr.hbm [resolvable:$true] %s285_s11 }
  0x84   :  { %s260_s16 = sshll.u32 %s3211_s15, 4  ;;  %s2813_s27 = sshra.s32 %s3421_s10, 4  ;;  %s261_s16 = int_to_ptr.vmem [resolvable:$true] %s260_s16  ;;  %s2814_s27 = int_to_ptr.hbm [resolvable:$true] %s2813_s27 }
  0x85   :  { %s2815_s18 = scalar_lea.hbm %s2814_s27, 16  ;;  %s2817_s22 = scalar_lea.hbm %s3359_s29, 16 }
  0x86   :  { %p2816_p2 = scmp.ne.s32.totalorder %s2814_s27, %s2815_s18  ;;  %p2818_p3 = scmp.lt.s32.totalorder %s2814_s27, %s3359_s29 }
  0x87   :  { %p2819_p4 = scmp.lt.s32.totalorder %s2817_s22, %s2815_s18 }
  0x89   :  { %p2820_p5 = por %p2819_p4, %p2818_p3 }
  0x8b   :  { %p2821_p6 = pnand %p2820_p5, %p2816_p2 }
  0x8d   :  { %2824 = shalt.err (!%p2821_p6)
}
  0x8e   :  { %266 = dma.hbm_to_vmem [thread:$0]  %s3421_s10, 256, %s261_s16, [#allocation23], %s3208_s3, %s3208_s3, %s3209_s1  }
  0x8f   :  { %s3212_s8 = smov [#allocation25]   ;;  %s308_s26 = sshll.u32 %s3384_s13, 4  ;;  %s3434_s26 = int_to_ptr.hbm [resolvable:$true] %s308_s26 }
  0x90   :  { %s287_s23 = sshll.u32 %s3212_s8, 4  ;;  %s2837_s28 = sshra.s32 %s286_s11, 4  ;;  %s288_s23 = int_to_ptr.vmem [resolvable:$true] %s287_s23  ;;  %s2838_s28 = int_to_ptr.hbm [resolvable:$true] %s2837_s28 }
  0x91   :  { %s2839_s29 = scalar_lea.hbm %s2838_s28, 1  ;;  %s2841_s9 = scalar_lea.hbm %s3374_s21, 1 }
  0x92   :  { %p2840_p7 = scmp.ne.s32.totalorder %s2838_s28, %s2839_s29  ;;  %p2842_p8 = scmp.lt.s32.totalorder %s2838_s28, %s3374_s21 }
  0x93   :  { %p2843_p9 = scmp.lt.s32.totalorder %s2841_s9, %s2839_s29 }
  0x95   :  { %p2844_p10 = por %p2843_p9, %p2842_p8 }
  0x97   :  { %p2845_p11 = pnand %p2844_p10, %p2840_p7 }
  0x99   :  { %2848 = shalt.err (!%p2845_p11)
}
  0x9a   :  { %290 = dma.hbm_to_vmem [thread:$0]  %s286_s11, 16, %s288_s23, [#allocation26]  }
  0x9b   :  { %s92_s0 = sshll.u32 %s3254_s17, 4  ;;  %s3213_s7 = smov [#allocation28]   ;;  %s93_s0 = int_to_ptr.hbm [resolvable:$true] %s92_s0 }
  0x9c   :  { %s310_s10 = sshll.u32 %s3213_s7, 4  ;;  %s2861_s20 = sshra.s32 %s3434_s26, 4  ;;  %s311_s10 = int_to_ptr.vmem [resolvable:$true] %s310_s10  ;;  %s2862_s20 = int_to_ptr.hbm [resolvable:$true] %s2861_s20 }
  0x9d   :  { %s2863_s30 = scalar_lea.hbm %s2862_s20, 16  ;;  %s2865_s2 = scalar_lea.hbm %s3384_s13, 16 }
  0x9e   :  { %p2864_p12 = scmp.ne.s32.totalorder %s2862_s20, %s2863_s30  ;;  %p2866_p13 = scmp.lt.s32.totalorder %s2862_s20, %s3384_s13 }
  0x9f   :  { %p2867_p0 = scmp.lt.s32.totalorder %s2865_s2, %s2863_s30 }
  0xa1   :  { %p2868_p1 = por %p2867_p0, %p2866_p13 }
  0xa3   :  { %p2869_p2 = pnand %p2868_p1, %p2864_p12 }
  0xa5   :  { %2872 = shalt.err (!%p2869_p2)
}
  0xa6   :  { %316 = dma.hbm_to_vmem [thread:$0]  %s3434_s26, 256, %s311_s10, [#allocation29], %s3208_s3, %s3208_s3, %s3209_s1  }
  0xa7   :  { %s3214_s21 = smov [#allocation2]   ;;  %s126_s15 = sshll.u32 %s3294_s24, 4  ;;  %s127_s15 = int_to_ptr.hbm [resolvable:$true] %s126_s15 }
  0xa8   :  { %s94_s11 = sshll.u32 %s3214_s21, 4  ;;  %s2885_s16 = sshra.s32 %s93_s0, 4  ;;  %s95_s11 = int_to_ptr.vmem [resolvable:$true] %s94_s11  ;;  %s2886_s16 = int_to_ptr.hbm [resolvable:$true] %s2885_s16 }
  0xa9   :  { %s2887_s13 = scalar_lea.hbm %s2886_s16, 2  ;;  %s2889_s27 = scalar_lea.hbm %s3254_s17, 2 }
  0xaa   :  { %p2888_p3 = scmp.ne.s32.totalorder %s2886_s16, %s2887_s13  ;;  %p2890_p4 = scmp.lt.s32.totalorder %s2886_s16, %s3254_s17 }
  0xab   :  { %p2891_p5 = scmp.lt.s32.totalorder %s2889_s27, %s2887_s13 }
  0xad   :  { %p2892_p6 = por %p2891_p5, %p2890_p4 }
  0xaf   :  { %p2893_p7 = pnand %p2892_p6, %p2888_p3 }
  0xb1   :  { %2896 = shalt.err (!%p2893_p7)
}
  0xb2   :  { %97 = dma.hbm_to_vmem [thread:$0]  %s93_s0, 32, %s95_s11, [#allocation3]  }
  0xb3   :  { %s150_s18 = sshll.u32 %s3309_s12, 4  ;;  %s3215_s22 = smov [#allocation6]   ;;  %s151_s18 = int_to_ptr.hbm [resolvable:$true] %s150_s18 }
  0xb4   :  { %s128_s8 = sshll.u32 %s3215_s22, 4  ;;  %s2909_s23 = sshra.s32 %s127_s15, 4  ;;  %s129_s8 = int_to_ptr.vmem [resolvable:$true] %s128_s8  ;;  %s2910_s23 = int_to_ptr.hbm [resolvable:$true] %s2909_s23 }
  0xb5   :  { %s2911_s26 = scalar_lea.hbm %s2910_s23, 1  ;;  %s2913_s28 = scalar_lea.hbm %s3294_s24, 1 }
  0xb6   :  { %p2912_p8 = scmp.ne.s32.totalorder %s2910_s23, %s2911_s26  ;;  %p2914_p9 = scmp.lt.s32.totalorder %s2910_s23, %s3294_s24 }
  0xb7   :  { %p2915_p10 = scmp.lt.s32.totalorder %s2913_s28, %s2911_s26 }
  0xb9   :  { %p2916_p11 = por %p2915_p10, %p2914_p9 }
  0xbb   :  { %p2917_p12 = pnand %p2916_p11, %p2912_p8 }
  0xbd   :  { %2920 = shalt.err (!%p2917_p12)
}
  0xbe   :  { %131 = dma.hbm_to_vmem [thread:$0]  %s127_s15, 16, %s129_s8, [#allocation5]  }
  0xbf   :  { %s3216_s17 = smov [#allocation9]   ;;  %s173_s9 = sshll.u32 %s3324_s4, 4  ;;  %s3453_s9 = int_to_ptr.hbm [resolvable:$true] %s173_s9 }
  0xc0   :  { %s152_s29 = sshll.u32 %s3216_s17, 4  ;;  %s2933_s0 = sshra.s32 %s151_s18, 4  ;;  %s153_s29 = int_to_ptr.vmem [resolvable:$true] %s152_s29  ;;  %s2934_s0 = int_to_ptr.hbm [resolvable:$true] %s2933_s0 }
  0xc1   :  { %s2935_s7 = scalar_lea.hbm %s2934_s0, 1  ;;  %s2937_s10 = scalar_lea.hbm %s3309_s12, 1 }
  0xc2   :  { %p2936_p13 = scmp.ne.s32.totalorder %s2934_s0, %s2935_s7  ;;  %p2938_p0 = scmp.lt.s32.totalorder %s2934_s0, %s3309_s12 }
  0xc3   :  { %p2939_p1 = scmp.lt.s32.totalorder %s2937_s10, %s2935_s7 }
  0xc5   :  { %p2940_p2 = por %p2939_p1, %p2938_p0 }
  0xc7   :  { %p2941_p3 = pnand %p2940_p2, %p2936_p13 }
  0xc9   :  { %2944 = shalt.err (!%p2941_p3)
}
  0xca   :  { %155 = dma.hbm_to_vmem [thread:$0]  %s151_s18, 16, %s153_s29, [#allocation8]  }
  0xcb   :  { %s197_s24 = sshll.u32 %s3334_s6, 4  ;;  %s3217_s20 = smov [#allocation12]   ;;  %s3458_s24 = int_to_ptr.hbm [resolvable:$true] %s197_s24 }
  0xcc   :  { %s175_s30 = sshll.u32 %s3217_s20, 4  ;;  %s2957_s2 = sshra.s32 %s3453_s9, 4  ;;  %s176_s30 = int_to_ptr.vmem [resolvable:$true] %s175_s30  ;;  %s2958_s2 = int_to_ptr.hbm [resolvable:$true] %s2957_s2 }
  0xcd   :  { %s2959_s21 = scalar_lea.hbm %s2958_s2, 16  ;;  %s2961_s12 = scalar_lea.hbm %s3324_s4, 16 }
  0xce   :  { %p2960_p4 = scmp.ne.s32.totalorder %s2958_s2, %s2959_s21  ;;  %p2962_p5 = scmp.lt.s32.totalorder %s2958_s2, %s3324_s4 }
  0xcf   :  { %p2963_p6 = scmp.lt.s32.totalorder %s2961_s12, %s2959_s21 }
  0xd1   :  { %p2964_p7 = por %p2963_p6, %p2962_p5 }
  0xd3   :  { %p2965_p8 = pnand %p2964_p7, %p2960_p4 }
  0xd5   :  { %2968 = shalt.err (!%p2965_p8)
}
  0xd6   :  { %181 = dma.hbm_to_vmem [thread:$0]  %s3453_s9, 256, %s176_s30, [#allocation11], %s3208_s3, %s3208_s3, %s3209_s1  }
  0xd7   :  { %s3218_s11 = smov [#allocation15]   ;;  %s223_s16 = sshll.u32 %s3344_s19, 4  ;;  %s3468_s16 = int_to_ptr.hbm [resolvable:$true] %s223_s16 }
  0xd8   :  { %s199_s15 = sshll.u32 %s3218_s11, 4  ;;  %s2981_s4 = sshra.s32 %s3458_s24, 4  ;;  %s200_s15 = int_to_ptr.vmem [resolvable:$true] %s199_s15  ;;  %s2982_s4 = int_to_ptr.hbm [resolvable:$true] %s2981_s4 }
  0xd9   :  { %s2983_s13 = scalar_lea.hbm %s2982_s4, 16  ;;  %s2985_s27 = scalar_lea.hbm %s3334_s6, 16 }
  0xda   :  { %p2984_p9 = scmp.ne.s32.totalorder %s2982_s4, %s2983_s13  ;;  %p2986_p10 = scmp.lt.s32.totalorder %s2982_s4, %s3334_s6 }
  0xdb   :  { %p2987_p11 = scmp.lt.s32.totalorder %s2985_s27, %s2983_s13 }
  0xdd   :  { %p2988_p12 = por %p2987_p11, %p2986_p10 }
  0xdf   :  { %p2989_p13 = pnand %p2988_p12, %p2984_p9 }
  0xe1   :  { %2992 = shalt.err (!%p2989_p13)
}
  0xe2   :  { %s3843_s18 = sld [smem:[#allocation55_spill]]  ;;  %s3219_s8 = smov [#allocation18]  }
  0xe3   :  { %205 = dma.hbm_to_vmem [thread:$0]  %s3458_s24, 256, %s200_s15, [#allocation14], %s3208_s3, %s3208_s3, %s3209_s1  }
  0xe4   :  { %s225_s23 = sshll.u32 %s3219_s8, 4  ;;  %s3005_s26 = sshra.s32 %s3468_s16, 4  ;;  %s226_s23 = int_to_ptr.vmem [resolvable:$true] %s225_s23  ;;  %s3006_s26 = int_to_ptr.hbm [resolvable:$true] %s3005_s26 }
  0xe5   :  { %s3007_s6 = scalar_lea.hbm %s3006_s26, 16  ;;  %s3009_s28 = scalar_lea.hbm %s3344_s19, 16 }
  0xe6   :  { %p3008_p0 = scmp.ne.s32.totalorder %s3006_s26, %s3007_s6  ;;  %p3010_p1 = scmp.lt.s32.totalorder %s3006_s26, %s3344_s19 }
  0xe7   :  { %p3011_p2 = scmp.lt.s32.totalorder %s3009_s28, %s3007_s6 }
  0xe8   :  { %s248_s22 = sshll.u32 %s3843_s18, 4  ;;  %s249_s22 = int_to_ptr.hbm [resolvable:$true] %s248_s22 }
  0xe9   :  { %p3012_p3 = por %p3011_p2, %p3010_p1 }
  0xeb   :  { %p3013_p4 = pnand %p3012_p3, %p3008_p0 }
  0xed   :  { %3016 = shalt.err (!%p3013_p4)
}
  0xee   :  { %s3844_s17 = sld [smem:[#allocation56_spill]]  ;;  %s3220_s29 = smov [#allocation21]  }
  0xef   :  { %231 = dma.hbm_to_vmem [thread:$0]  %s3468_s16, 256, %s226_s23, [#allocation17], %s3208_s3, %s3208_s3, %s3209_s1  }
  0xf0   :  { %s250_s9 = sshll.u32 %s3220_s29, 4  ;;  %s3029_s7 = sshra.s32 %s249_s22, 4  ;;  %s251_s9 = int_to_ptr.vmem [resolvable:$true] %s250_s9  ;;  %s3030_s7 = int_to_ptr.hbm [resolvable:$true] %s3029_s7 }
  0xf1   :  { %s3031_s19 = scalar_lea.hbm %s3030_s7, 2  ;;  %s3033_s10 = scalar_lea.hbm %s3843_s18, 2 }
  0xf2   :  { %p3032_p5 = scmp.ne.s32.totalorder %s3030_s7, %s3031_s19  ;;  %p3034_p6 = scmp.lt.s32.totalorder %s3030_s7, %s3843_s18 }
  0xf3   :  { %p3035_p7 = scmp.lt.s32.totalorder %s3033_s10, %s3031_s19 }
  0xf4   :  { %s272_s0 = sshll.u32 %s3844_s17, 4  ;;  %s273_s0 = int_to_ptr.hbm [resolvable:$true] %s272_s0 }
  0xf5   :  { %p3036_p8 = por %p3035_p7, %p3034_p6 }
  0xf7   :  { %p3037_p9 = pnand %p3036_p8, %p3032_p5 }
  0xf9   :  { %3040 = shalt.err (!%p3037_p9)
}
  0xfa   :  { %253 = dma.hbm_to_vmem [thread:$0]  %s249_s22, 32, %s251_s9, [#allocation20]  }
  0xfb   :  { %s3845_s24 = sld [smem:[#allocation58_spill]]  ;;  %s3221_s30 = smov [#allocation24]  }
  0xfc   :  { %s274_s2 = sshll.u32 %s3221_s30, 4  ;;  %s3053_s21 = sshra.s32 %s273_s0, 4  ;;  %s275_s2 = int_to_ptr.vmem [resolvable:$true] %s274_s2  ;;  %s3054_s21 = int_to_ptr.hbm [resolvable:$true] %s3053_s21 }
  0xfd   :  { %s3055_s12 = scalar_lea.hbm %s3054_s21, 1  ;;  %s3057_s11 = scalar_lea.hbm %s3844_s17, 1 }
  0xfe   :  { %p3056_p10 = scmp.ne.s32.totalorder %s3054_s21, %s3055_s12  ;;  %p3058_p11 = scmp.lt.s32.totalorder %s3054_s21, %s3844_s17 }
  0xff   :  { %p3059_p12 = scmp.lt.s32.totalorder %s3057_s11, %s3055_s12 }
 0x101   :  { %s295_s20 = sshll.u32 %s3845_s24, 4  ;;  %p3060_p13 = por %p3059_p12, %p3058_p11  ;;  %s3489_s20 = int_to_ptr.hbm [resolvable:$true] %s295_s20 }
 0x103   :  { %p3061_p0 = pnand %p3060_p13, %p3056_p10 }
 0x105   :  { %3064 = shalt.err (!%p3061_p0)
}
 0x106   :  { %277 = dma.hbm_to_vmem [thread:$0]  %s273_s0, 16, %s275_s2, [#allocation23]  }
 0x107   :  { %s3222_s15 = smov [#allocation27]   ;;  %s321_s4 = sshll.u32 %s3389_s25, 4  ;;  %s3494_s4 = int_to_ptr.hbm [resolvable:$true] %s321_s4 }
 0x108   :  { %s297_s16 = sshll.u32 %s3222_s15, 4  ;;  %s3077_s13 = sshra.s32 %s3489_s20, 4  ;;  %s298_s16 = int_to_ptr.vmem [resolvable:$true] %s297_s16  ;;  %s3078_s13 = int_to_ptr.hbm [resolvable:$true] %s3077_s13 }
 0x109   :  { %s3079_s27 = scalar_lea.hbm %s3078_s13, 16  ;;  %s3081_s18 = scalar_lea.hbm %s3845_s24, 16 }
 0x10a   :  { %p3080_p1 = scmp.ne.s32.totalorder %s3078_s13, %s3079_s27  ;;  %p3082_p2 = scmp.lt.s32.totalorder %s3078_s13, %s3845_s24 }
 0x10b   :  { %p3083_p3 = scmp.lt.s32.totalorder %s3081_s18, %s3079_s27 }
 0x10d   :  { %p3084_p4 = por %p3083_p3, %p3082_p2 }
 0x10f   :  { %p3085_p5 = pnand %p3084_p4, %p3080_p1 }
 0x111   :  { %3088 = shalt.err (!%p3085_p5)
}
 0x112   :  { %303 = dma.hbm_to_vmem [thread:$0]  %s3489_s20, 256, %s298_s16, [#allocation26], %s3208_s3, %s3208_s3, %s3209_s1  }
 0x113   :  { %s335_s22 = sshll.u32 %s3394_s14, 4  ;;  %s3223_s8 = smov [#allocation30]   ;;  %s336_s22 = int_to_ptr.hbm [resolvable:$true] %s335_s22 }
 0x114   :  { %s323_s23 = sshll.u32 %s3223_s8, 4  ;;  %s3101_s26 = sshra.s32 %s3494_s4, 4  ;;  %s324_s23 = int_to_ptr.vmem [resolvable:$true] %s323_s23  ;;  %s3102_s26 = int_to_ptr.hbm [resolvable:$true] %s3101_s26 }
 0x115   :  { %s3103_s6 = scalar_lea.hbm %s3102_s26, 16  ;;  %s3105_s28 = scalar_lea.hbm %s3389_s25, 16 }
 0x116   :  { %p3104_p6 = scmp.ne.s32.totalorder %s3102_s26, %s3103_s6  ;;  %p3106_p7 = scmp.lt.s32.totalorder %s3102_s26, %s3389_s25 }
 0x117   :  { %p3107_p8 = scmp.lt.s32.totalorder %s3105_s28, %s3103_s6 }
 0x119   :  { %p3108_p9 = por %p3107_p8, %p3106_p7 }
 0x11b   :  { %p3109_p10 = pnand %p3108_p9, %p3104_p6 }
 0x11d   :  { %3112 = shalt.err (!%p3109_p10)
}
 0x11e   :  { %329 = dma.hbm_to_vmem [thread:$0]  %s3494_s4, 256, %s324_s23, [#allocation29], %s3208_s3, %s3208_s3, %s3209_s1  }
 0x11f   :  { %s3224_s17 = smov [#allocation31]   ;;  %s3125_s9 = sshra.s32 %s336_s22, 4  ;;  %s3126_s9 = int_to_ptr.hbm [resolvable:$true] %s3125_s9 }
 0x120   :  { %s337_s29 = sshll.u32 %s3224_s17, 4  ;;  %s3127_s0 = scalar_lea.hbm %s3126_s9, 1  ;;  %s338_s29 = int_to_ptr.vmem [resolvable:$true] %s337_s29 }
 0x121   :  { %p3128_p11 = scmp.ne.s32.totalorder %s3126_s9, %s3127_s0  ;;  %s3129_s7 = scalar_lea.hbm %s3394_s14, 1 }
 0x122   :  { %p3130_p12 = scmp.lt.s32.totalorder %s3126_s9, %s3394_s14  ;;  %p3131_p13 = scmp.lt.s32.totalorder %s3129_s7, %s3127_s0 }
 0x124   :  { %p3132_p0 = por %p3131_p13, %p3130_p12 }
 0x126   :  { %p3133_p1 = pnand %p3132_p0, %p3128_p11 }
 0x128   :  { %3136 = shalt.err (!%p3133_p1)
}
 0x129   :  { %340 = dma.hbm_to_vmem [thread:$0]  %s336_s22, 16, %s338_s29, [#allocation32]  }
 0x12a   :  { %3149 = dma.done.wait [#allocation3], 32  }
 0x12b   :  { %3150 = vsyncadd [#allocation3], 4294967264 }
 0x12c   :  { %3151 = dma.done.wait [#allocation5], 32  }
 0x12d   :  { %3152 = vsyncadd [#allocation5], 4294967264 }
 0x12e   :  { %3153 = dma.done.wait [#allocation8], 48  }
 0x12f   :  { %3154 = vsyncadd [#allocation8], 4294967248 }
 0x130   :  { %3155 = dma.done.wait [#allocation11], 272  }
 0x131   :  { %3156 = vsyncadd [#allocation11], 4294967024 }
 0x132   :  { %3157 = dma.done.wait [#allocation14], 272  }
 0x133   :  { %3158 = vsyncadd [#allocation14], 4294967024 }
 0x134   :  { %3159 = dma.done.wait [#allocation17], 512  }
 0x135   :  { %3160 = vsyncadd [#allocation17], 4294966784 }
 0x136   :  { %3161 = dma.done.wait [#allocation20], 48  }
 0x137   :  { %3162 = vsyncadd [#allocation20], 4294967248 }
 0x138   :  { %3163 = dma.done.wait [#allocation23], 272  }
 0x139   :  { %3164 = vsyncadd [#allocation23], 4294967024 }
 0x13a   :  { %3165 = dma.done.wait [#allocation26], 272  }
 0x13b   :  { %3166 = vsyncadd [#allocation26], 4294967024 }
 0x13c   :  { %3167 = dma.done.wait [#allocation29], 512  }
 0x13d   :  { %3168 = vsyncadd [#allocation29], 4294966784 }
 0x13e   :  { %3169 = dma.done.wait [#allocation32], 16  }
 0x13f   :  { %3170 = vsyncadd [#allocation32], 4294967280  ;;  %s3846_s25 = sld [smem:[#allocation44_spill]]  ;;  %vm428_vm0 = vcmask 261120   ;;  %v3225_v4 = vmov 32.0   ;;  %s3226_s19 = smov 80  }
 0x140   :  { %2563 = vrcp.f32 %v3225_v4  ;;  %s3847_s14 = sld [smem:[#allocation47_spill]]  ;;  %v427_v40 = vld [vmem:[#allocation2] sm:$0x3]  ;;  %s3227_s10 = smov 96   ;;  %vm536_vm8 = vcmask 130048   ;;  %vm584_vm9 = vcmask 64512  }
 0x141   :  { %s3848_s1 = sld [smem:[#allocation48_spill]]  ;;  %v480_v43 = vperm.slane %v427_v40, 0  ;;  %v483_v48 = vperm.slane %v427_v40, 1  ;;  %s3228_s24 = smov 112   ;;  %vm640_vm10 = vcmask 1043456  }
 0x142   :  { %s3849_s20 = sld [smem:[#allocation46_spill]]  ;;  %s3229_s30 = smov 48  }
 0x143   :  { %s3850_s2 = sld [smem:[#allocation49_spill]]  ;;  %s3230_s11 = smov 32  }
 0x144   :  { %s3851_s21 = sld [smem:[#allocation51_spill]] }
 0x145   :  { %v3514_v0 = vld [vmem:[%s3846_s25] sm:$0xff]  ;;  %v3519_v2 = vld [vmem:[%s3846_s25 + $0x8] sm:$0xff]  ;;  %s3852_s12 = sld [smem:[#allocation50_spill]] }
 0x146   :  { %v429_v1 = vsel %vm428_vm0, %v3514_v0, 0.0  ;;  %v432_v3 = vsel %vm428_vm0, %v3519_v2, 0.0  ;;  %v2564_v5 = vpop.eup %2563  ;;  %v2460_v21 = vld [vmem:[%s3847_s14 + $0x8] sm:$0xff]  ;;  %v2459_v23 = vld [vmem:[%s3847_s14] sm:$0xff]  ;;  %s3853_s15 = sld [smem:[#allocation52_spill]] }
 0x147   :  { %430 = vadd.xlane.f32.xlu0 %v429_v1  ;;  %v436_v6 = vmul.f32 32.0, %v2564_v5  ;;  %vm440_vm1 = vweird.f32 %v2564_v5  ;;  %516 = vmatpush.bf16.msra.mxu0 %v2460_v21  ;;  %v2553_v53 = vld [vmem:[%s3848_s1] ss:$0 sm:$0xff]  ;;  %s3854_s16 = sld [smem:[#allocation54_spill]] }
 0x148   :  { %s3855_s4 = sld [smem:[#allocation53_spill]] }
 0x149   :  { %v437_v7 = vsub.f32 1.0, %v436_v6  ;;  %s3856_s13 = sld [smem:[#allocation45_spill]] }
 0x14a   :  { %s3857_s27 = sld [smem:[#allocation57_spill]] }
 0x14b   :  { %v438_v8 = vmul.f32 %v2564_v5, %v437_v7  ;;  %517 = vmatpush.bf16.msra.mxu0 %v2459_v23 }
 0x14d   :  { %v439_v9 = vadd.f32 %v2564_v5, %v438_v8 }
 0x14f   :  { %433 = vadd.xlane.f32.xlu0 %v432_v3  ;;  %v3523_v10 = vsel %vm440_vm1, %v2564_v5, %v439_v9 }
 0x1ba   :  { %v431_v11 = vpop.xlane.xlu0 %430 }
 0x1bb   :  { %v442_v12 = vmul.f32 %v3523_v10, %v431_v11 }
 0x1bd   :  { %v444_v13 = vsub.f32 %v3514_v0, %v442_v12 }
 0x1bf   :  { %v446_v14 = vmul.f32 %v444_v13, %v444_v13 }
 0x1c1   :  { %v448_v15 = vsel %vm428_vm0, %v446_v14, 0.0  ;;  %v426_v14 = vld [vmem:[%s3849_s20] sm:$0xff] }
 0x1c2   :  { %449 = vadd.xlane.f32.xlu1 %v448_v15  ;;  %v434_v16 = vpop.xlane.xlu0 %433 }
 0x1c3   :  { %v443_v17 = vmul.f32 %v3523_v10, %v434_v16 }
 0x1c5   :  { %v445_v18 = vsub.f32 %v3519_v2, %v443_v17 }
 0x1c7   :  { %v447_v19 = vmul.f32 %v445_v18, %v445_v18 }
 0x1c9   :  { %v451_v20 = vsel %vm428_vm0, %v447_v19, 0.0 }
 0x1ca   :  { %452 = vadd.xlane.f32.xlu1 %v451_v20 }
 0x235   :  { %v450_v22 = vpop.xlane.xlu1 %449 }
 0x236   :  { %v454_v24 = vmul.f32 %v450_v22, %v3523_v10 }
 0x238   :  { %v456_v25 = vadd.f32 1e-05, %v454_v24 }
 0x23a   :  { %2565 = vrsqrt.f32 %v456_v25  ;;  %vm464_vm3 = vweird.f32 %v456_v25 }
 0x23d   :  { %v453_v26 = vpop.xlane.xlu1 %452 }
 0x23e   :  { %v455_v27 = vmul.f32 %v453_v26, %v3523_v10 }
 0x240   :  { %v2566_v28 = vpop.eup %2565  ;;  %v457_v29 = vadd.f32 1e-05, %v455_v27 }
 0x241   :  { %v459_v30 = vmul.f32 %v2566_v28, %v456_v25  ;;  %vm465_vm2 = vweird.f32 %v2566_v28 }
 0x242   :  { %2567 = vrsqrt.f32 %v457_v29  ;;  %vm466_vm4 = vmor %vm464_vm3, %vm465_vm2  ;;  %vm474_vm6 = vweird.f32 %v457_v29 }
 0x243   :  { %v460_v31 = vmul.f32 %v2566_v28, %v459_v30 }
 0x245   :  { %v461_v32 = vmul.f32 0.5, %v460_v31 }
 0x247   :  { %v462_v33 = vsub.f32 1.5, %v461_v32 }
 0x248   :  { %v2568_v34 = vpop.eup %2567 }
 0x249   :  { %v463_v35 = vmul.f32 %v2566_v28, %v462_v33  ;;  %v469_v36 = vmul.f32 %v2568_v34, %v457_v29  ;;  %vm475_vm5 = vweird.f32 %v2568_v34 }
 0x24a   :  { %vm476_vm7 = vmor %vm474_vm6, %vm475_vm5 }
 0x24b   :  { %v470_v37 = vmul.f32 %v2568_v34, %v469_v36  ;;  %v467_v38 = vsel %vm466_vm4, %v2566_v28, %v463_v35 }
 0x24c   :  { %v478_v42 = vmul.f32 %v467_v38, %v444_v13 }
 0x24d   :  { %v471_v39 = vmul.f32 0.5, %v470_v37 }
 0x24e   :  { %v481_v47 = vmul.f32 %v480_v43, %v478_v42 }
 0x24f   :  { %v472_v41 = vsub.f32 1.5, %v471_v39 }
 0x250   :  { %v484_v50 = vadd.f32 %v483_v48, %v481_v47 }
 0x251   :  { %v473_v44 = vmul.f32 %v2568_v34, %v472_v41 }
 0x253   :  { %v477_v45 = vsel %vm476_vm7, %v2568_v34, %v473_v44 }
 0x254   :  { %v479_v46 = vmul.f32 %v477_v45, %v445_v18 }
 0x256   :  { %v482_v49 = vmul.f32 %v480_v43, %v479_v46 }
 0x258   :  { %v485_v51 = vadd.f32 %v483_v48, %v482_v49 }
 0x25a   :  { %v486_v52 = vpack.c.bf16 %v485_v51, %v484_v50 }
 0x25c   :  { %2285 = vmatmul.msk.bf16.vlgmr.msra.gmra.mxu0 %vm428_vm0, %v486_v52 }
 0x2d9   :  { %v519_v54 = vpop.f32.mrf.mxu0 }
 0x2da   :  { %v520_v55 = vadd.f32 %v2553_v53, %v519_v54 }
 0x2dc   :  { %v529_v56 = vpack.c.bf16 %v520_v55, %v520_v55 }
 0x2de   :  { %v532_v57 = vunpack.c.l.b16 %v529_v56 }
 0x2e0   :  { %v3537_v58 = vpack.c.b16 %v532_v57, %v532_v57 }
 0x2e1   :  { %v521_v59 = vpop.f32.mrf.mxu0 }
 0x2e2   :  { %v522_v60 = vadd.f32 %v2553_v53, %v521_v59  ;;  %681 = vrot.lane.b32.xlu0 %v3537_v58, %s3226_s19  ;;  %534 = vrot.lane.b32.xlu2 %v3537_v58, %s3227_s10 }
 0x2e4   :  { %v530_v61 = vpack.c.bf16 %v522_v60, %v522_v60 }
 0x2e6   :  { %v557_v62 = vunpack.c.l.b16 %v530_v61 }
 0x2e8   :  { %v3543_v63 = vpack.c.b16 %v557_v62, %v557_v62 }
 0x2ea   :  { %704 = vrot.lane.b32.xlu1 %v3543_v63, %s3226_s19  ;;  %559 = vrot.lane.b32.xlu2 %v3543_v63, %s3227_s10 }
 0x2f2   :  { %679 = vrot.lane.b32.xlu2 %v3537_v58, %s3228_s24 }
 0x2fa   :  { %702 = vrot.lane.b32.xlu2 %v3543_v63, %s3228_s24 }
 0x33c   :  { %v535_v1 = vpop.permute.xlu2 %534 }
 0x33d   :  { %v541_v3 = vsel %vm536_vm8, %v535_v1, 0 }
 0x33e   :  { %550 = vmatpush.bf16.xpose.msra.mxu1 %v541_v3 }
 0x344   :  { %v560_v4 = vpop.permute.xlu2 %559 }
 0x345   :  { %2286 = vmatmul.msk.bf16.vlgmr.msra.gmra.mxu1 %vm536_vm8, %v529_v56  ;;  %v565_v5 = vsel %vm536_vm8, %v560_v4, 0 }
 0x346   :  { %574 = vmatpush.bf16.xpose.msra.mxu2 %v565_v5 }
 0x34c   :  { %v680_v8 = vpop.permute.xlu2 %679 }
 0x34d   :  { %2287 = vmatmul.msk.bf16.vlgmr.msra.gmra.mxu2 %vm536_vm8, %v530_v61 }
 0x354   :  { %v682_v6 = vpop.permute.xlu0 %681  ;;  %v703_v12 = vpop.permute.xlu2 %702 }
 0x355   :  { %v687_v7 = vsel %vm536_vm8, %v682_v6, 0 }
 0x356   :  { %696 = vmatpush.bf16.xpose.msrb.mxu0 %v687_v7 }
 0x35c   :  { %v705_v9 = vpop.permute.xlu1 %704 }
 0x35d   :  { %2290 = vmatmul.msk.bf16.vlgmr.msrb.gmra.mxu0 %vm536_vm8, %v680_v8  ;;  %v710_v11 = vsel %vm536_vm8, %v705_v9, 0 }
 0x35e   :  { %719 = vmatpush.bf16.xpose.msrb.mxu1 %v710_v11 }
 0x365   :  { %2291 = vmatmul.msk.bf16.vlgmr.msrb.gmra.mxu1 %vm536_vm8, %v703_v12 }
 0x3c2   :  { %v552_v13 = vpop.f32.mrf.mxu1 }
 0x3c3   :  { %v580_v15 = vmul.f32 0.25, %v552_v13 }
 0x3c5   :  { %v582_v16 = vadd.f32 %v580_v15, %v426_v14 }
 0x3c7   :  { %v585_v17 = vsel %vm584_vm9, %v582_v16, -inf }
 0x3c8   :  { %586 = vmax.xlane.f32.xlu2 %v585_v17 }
 0x3ca   :  { %v554_v18 = vpop.f32.mrf.mxu1 }
 0x3d0   :  { %v576_v19 = vpop.f32.mrf.mxu2 }
 0x3d1   :  { %v581_v20 = vmul.f32 0.25, %v576_v19 }
 0x3d3   :  { %v583_v21 = vadd.f32 %v581_v20, %v426_v14 }
 0x3d5   :  { %v588_v22 = vsel %vm584_vm9, %v583_v21, -inf }
 0x3d6   :  { %589 = vmax.xlane.f32.xlu0 %v588_v22 }
 0x3d8   :  { %v578_v23 = vpop.f32.mrf.mxu2 }
 0x3da   :  { %v698_v24 = vpop.f32.mrf.mxu0 }
 0x3db   :  { %v725_v25 = vmul.f32 0.25, %v698_v24 }
 0x3dd   :  { %v727_v26 = vadd.f32 %v725_v25, %v426_v14 }
 0x3df   :  { %v729_v27 = vsel %vm584_vm9, %v727_v26, -inf }
 0x3e0   :  { %730 = vmax.xlane.f32.xlu1 %v729_v27 }
 0x3e2   :  { %v700_v28 = vpop.f32.mrf.mxu0  ;;  %v721_v29 = vpop.f32.mrf.mxu1 }
 0x3e3   :  { %v726_v30 = vmul.f32 0.25, %v721_v29 }
 0x3e5   :  { %v728_v31 = vadd.f32 %v726_v30, %v426_v14 }
 0x3e7   :  { %v732_v32 = vsel %vm584_vm9, %v728_v31, -inf }
 0x3e8   :  { %733 = vmax.xlane.f32.xlu2 %v732_v32 }
 0x3ea   :  { %v723_v33 = vpop.f32.mrf.mxu1 }
 0x3f9   :  { %635 = vrot.lane.b32.xlu1 %v3537_v58, %s3208_s3 }
 0x401   :  { %800 = vrot.lane.b32.xlu1 %v3543_v63, %s3229_s30 }
 0x43b   :  { %v587_v34 = vpop.xlane.xlu2 %586 }
 0x43c   :  { %v591_v35 = vsub.f32 %v582_v16, %v587_v34 }
 0x43e   :  { %v593_v36 = vmul.f32 1.442695, %v591_v35 }
 0x440   :  { %2569 = vpow2.f32 %v593_v36 }
 0x446   :  { %v2570_v37 = vpop.eup %2569 }
 0x447   :  { %v597_v38 = vsel %vm584_vm9, %v2570_v37, 0.0 }
 0x448   :  { %598 = vadd.xlane.f32.xlu0 %v597_v38 }
 0x449   :  { %v590_v39 = vpop.xlane.xlu0 %589 }
 0x44a   :  { %v592_v40 = vsub.f32 %v583_v21, %v590_v39 }
 0x44c   :  { %v595_v41 = vmul.f32 1.442695, %v592_v40 }
 0x44e   :  { %2571 = vpow2.f32 %v595_v41 }
 0x453   :  { %v731_v42 = vpop.xlane.xlu1 %730 }
 0x454   :  { %v3571_v43 = vpop.eup %2571  ;;  %v735_v44 = vsub.f32 %v727_v26, %v731_v42 }
 0x455   :  { %v600_v45 = vsel %vm584_vm9, %v3571_v43, 0.0 }
 0x456   :  { %v737_v46 = vmul.f32 1.442695, %v735_v44  ;;  %601 = vadd.xlane.f32.xlu2 %v600_v45 }
 0x458   :  { %2573 = vpow2.f32 %v737_v46 }
 0x45b   :  { %v734_v47 = vpop.xlane.xlu2 %733 }
 0x45c   :  { %v736_v48 = vsub.f32 %v728_v31, %v734_v47 }
 0x45e   :  { %v3575_v49 = vpop.eup %2573  ;;  %v739_v50 = vmul.f32 1.442695, %v736_v48 }
 0x45f   :  { %v741_v51 = vsel %vm584_vm9, %v3575_v49, 0.0 }
 0x460   :  { %2575 = vpow2.f32 %v739_v50  ;;  %742 = vadd.xlane.f32.xlu0 %v741_v51 }
 0x466   :  { %v3579_v52 = vpop.eup %2575 }
 0x467   :  { %v744_v53 = vsel %vm584_vm9, %v3579_v52, 0.0 }
 0x468   :  { %745 = vadd.xlane.f32.xlu2 %v744_v53 }
 0x46b   :  { %v636_v54 = vpop.permute.xlu1 %635 }
 0x46c   :  { %v642_v55 = vsel %vm640_vm10, %v636_v54, 0  ;;  %v2461_v54 = vld [vmem:[%s3850_s2] sm:$0xff] }
 0x46d   :  { %651 = vmatpush.bf16.msra.mxu3 %v642_v55  ;;  %861 = vmatpush.bf16.msra.mxu1 %v2461_v54 }
 0x473   :  { %v801_v35 = vpop.permute.xlu1 %800 }
 0x474   :  { %657 = vrot.lane.b32.xlu0 %v3543_v63, %s3208_s3  ;;  %v806_v44 = vsel %vm640_vm10, %v801_v35, 0 }
 0x480   :  { %779 = vrot.lane.b32.xlu2 %v3537_v58, %s3229_s30 }
 0x4bb   :  { %v599_v56 = vpop.xlane.xlu0 %598 }
 0x4bc   :  { %2577 = vrcp.f32 %v599_v56  ;;  %v614_v61 = vand.u32 2147483648, %v599_v56  ;;  %v612_v1 = vand.u32 2147483647, %v599_v56  ;;  %vm608_vm12 = vweird.f32 %v599_v56 }
 0x4be   :  { %v615_v5 = vor.u32 1.1754944e-38, %v614_v61  ;;  %vm613_vm14 = vcmp.eq.f32.partialorder %v612_v1, 8.507059e+37 }
 0x4c2   :  { %v2578_v57 = vpop.eup %2577 }
 0x4c3   :  { %v604_v59 = vmul.f32 %v2578_v57, %v599_v56  ;;  %vm609_vm11 = vweird.f32 %v2578_v57 }
 0x4c4   :  { %vm610_vm13 = vmor %vm608_vm12, %vm609_vm11 }
 0x4c5   :  { %v605_v60 = vsub.f32 1.0, %v604_v59 }
 0x4c7   :  { %v606_v62 = vmul.f32 %v2578_v57, %v605_v60 }
 0x4c9   :  { %v602_v3 = vpop.xlane.xlu2 %601  ;;  %v607_v4 = vadd.f32 %v2578_v57, %v606_v62 }
 0x4ca   :  { %2579 = vrcp.f32 %v602_v3  ;;  %v629_v18 = vand.u32 2147483648, %v602_v3  ;;  %vm623_vm1 = vweird.f32 %v602_v3  ;;  %v627_v19 = vand.u32 2147483647, %v602_v3 }
 0x4cb   :  { %v611_v6 = vsel %vm610_vm13, %v2578_v57, %v607_v4  ;;  %v2462_v57 = vld [vmem:[%s3850_s2 + $0x8] sm:$0xff] }
 0x4cc   :  { %v616_v63 = vsel %vm613_vm14, %v615_v5, %v611_v6  ;;  %v630_v25 = vor.u32 1.1754944e-38, %v629_v18  ;;  %vm628_vm4 = vcmp.eq.f32.partialorder %v627_v19, 8.507059e+37  ;;  %838 = vmatpush.bf16.msra.mxu0 %v2462_v57  ;;  %v2466_v5 = vld [vmem:[%s3851_s21 + $0x8] sm:$0xff]  ;;  %v2465_v6 = vld [vmem:[%s3851_s21] sm:$0xff] }
 0x4cd   :  { %v617_v7 = vmul.f32 %v2570_v37, %v616_v63  ;;  %v918_v63 = vpack.c.bf16 %v3519_v2, %v3514_v0 }
 0x4cf   :  { %v633_v58 = vpack.c.bf16 %v617_v7, %v617_v7  ;;  %v2464_v7 = vld [vmem:[%s3852_s12 + $0x8] sm:$0xff] }
 0x4d0   :  { %v2580_v8 = vpop.eup %2579 }
 0x4d1   :  { %v619_v9 = vmul.f32 %v2580_v8, %v602_v3  ;;  %2288 = vmatmul.msk.bf16.vlgmr.msra.gmra.mxu3 %vm584_vm9, %v633_v58  ;;  %vm624_vm15 = vweird.f32 %v2580_v8  ;;  %v2463_v58 = vld [vmem:[%s3852_s12] sm:$0xff] }
 0x4d2   :  { %vm625_vm2 = vmor %vm623_vm1, %vm624_vm15 }
 0x4d3   :  { %v620_v11 = vsub.f32 1.0, %v619_v9  ;;  %v743_v12 = vpop.xlane.xlu0 %742 }
 0x4d4   :  { %2581 = vrcp.f32 %v743_v12  ;;  %v758_v21 = vand.u32 2147483648, %v743_v12  ;;  %v756_v23 = vand.u32 2147483647, %v743_v12  ;;  %vm752_vm5 = vweird.f32 %v743_v12 }
 0x4d5   :  { %v621_v13 = vmul.f32 %v2580_v8, %v620_v11 }
 0x4d6   :  { %v759_v28 = vor.u32 1.1754944e-38, %v758_v21  ;;  %vm757_vm7 = vcmp.eq.f32.partialorder %v756_v23, 8.507059e+37 }
 0x4d7   :  { %v622_v15 = vadd.f32 %v2580_v8, %v621_v13  ;;  %v2554_v13 = vld [vmem:[#allocation4] ss:$0 sm:$0xff] }
 0x4d9   :  { %v626_v24 = vsel %vm625_vm2, %v2580_v8, %v622_v15  ;;  %v2555_v8 = vld [vmem:[#allocation6] ss:$0 sm:$0xff] }
 0x4da   :  { %v2582_v14 = vpop.eup %2581  ;;  %v631_v29 = vsel %vm628_vm4, %v630_v25, %v626_v24  ;;  %990 = vrot.lane.b32.xlu2 %v2555_v8, %s3230_s11  ;;  %v2468_v25 = vld [vmem:[%s3853_s15 + $0x8] sm:$0xff] }
 0x4db   :  { %v748_v16 = vmul.f32 %v2582_v14, %v743_v12  ;;  %v746_v17 = vpop.xlane.xlu2 %745  ;;  %vm753_vm3 = vweird.f32 %v2582_v14  ;;  %v632_v38 = vmul.f32 %v3571_v43, %v631_v29  ;;  %1057 = vmatpush.bf16.msrb.mxu0 %v2468_v25 }
 0x4dc   :  { %2583 = vrcp.f32 %v746_v17  ;;  %vm754_vm6 = vmor %vm752_vm5, %vm753_vm3  ;;  %v773_v47 = vand.u32 2147483648, %v746_v17  ;;  %vm767_vm12 = vweird.f32 %v746_v17  ;;  %v771_v43 = vand.u32 2147483647, %v746_v17 }
 0x4dd   :  { %v749_v20 = vsub.f32 1.0, %v748_v16  ;;  %v634_v45 = vpack.c.bf16 %v632_v38, %v632_v38 }
 0x4de   :  { %vm772_vm14 = vcmp.eq.f32.partialorder %v771_v43, 8.507059e+37 }
 0x4df   :  { %v750_v22 = vmul.f32 %v2582_v14, %v749_v20 }
 0x4e1   :  { %v751_v26 = vadd.f32 %v2582_v14, %v750_v22 }
 0x4e2   :  { %v2584_v27 = vpop.eup %2583 }
 0x4e3   :  { %v763_v30 = vmul.f32 %v2584_v27, %v746_v17  ;;  %v780_v31 = vpop.permute.xlu2 %779  ;;  %v755_v32 = vsel %vm754_vm6, %v2582_v14, %v751_v26  ;;  %vm768_vm11 = vweird.f32 %v2584_v27 }
 0x4e4   :  { %v785_v33 = vsel %vm640_vm10, %v780_v31, 0  ;;  %v760_v34 = vsel %vm757_vm7, %v759_v28, %v755_v32  ;;  %vm769_vm13 = vmor %vm767_vm12, %vm768_vm11 }
 0x4e5   :  { %v764_v36 = vsub.f32 1.0, %v763_v30  ;;  %794 = vmatpush.bf16.msrb.mxu2 %v785_v33  ;;  %v761_v37 = vmul.f32 %v3575_v49, %v760_v34  ;;  %v774_v49 = vor.u32 1.1754944e-38, %v773_v47 }
 0x4e6   :  { %v658_v39 = vpop.permute.xlu0 %657 }
 0x4e7   :  { %v765_v40 = vmul.f32 %v2584_v27, %v764_v36  ;;  %v663_v41 = vsel %vm640_vm10, %v658_v39, 0  ;;  %v777_v42 = vpack.c.bf16 %v761_v37, %v761_v37 }
 0x4e8   :  { %672 = vmatpush.bf16.msrb.mxu3 %v663_v41 }
 0x4e9   :  { %2292 = vmatmul.msk.bf16.vlgmr.msrb.gmra.mxu2 %vm584_vm9, %v777_v42  ;;  %v766_v46 = vadd.f32 %v2584_v27, %v765_v40 }
 0x4ea   :  { %910 = vmatpush.bf16.msra.mxu2 %v2464_v7 }
 0x4eb   :  { %2289 = vmatmul.msk.bf16.vlgmr.msrb.gmra.mxu3 %vm584_vm9, %v634_v45  ;;  %v770_v48 = vsel %vm769_vm13, %v2584_v27, %v766_v46  ;;  %v2467_v27 = vld [vmem:[%s3853_s15] sm:$0xff] }
 0x4ec   :  { %815 = vmatpush.bf16.msra.mxu3 %v806_v44  ;;  %v775_v50 = vsel %vm772_vm14, %v774_v49, %v770_v48  ;;  %1058 = vmatpush.bf16.msrb.mxu0 %v2467_v27 }
 0x4ed   :  { %v776_v51 = vmul.f32 %v3579_v52, %v775_v50 }
 0x4ee   :  { %911 = vmatpush.bf16.msra.mxu2 %v2463_v58 }
 0x4ef   :  { %v778_v53 = vpack.c.bf16 %v776_v51, %v776_v51 }
 0x4f0   :  { %940 = vmatpush.bf16.msrb.mxu3 %v2466_v5 }
 0x4f4   :  { %941 = vmatpush.bf16.msrb.mxu3 %v2465_v6 }
 0x4fb   :  { %2293 = vmatmul.msk.bf16.vlgmr.msra.gmra.mxu3 %vm584_vm9, %v778_v53 }
 0x50b   :  { %2321 = vmatmul.msk.bf16.vlgmr.msrb.gmra.mxu3 %vm428_vm0, %v918_v63 }
 0x534   :  { %v991_v63 = vpop.permute.xlu2 %990 }
 0x554   :  { %v653_v55 = vpop.f32.mrf.mxu3 }
 0x55c   :  { %v655_v56 = vpop.f32.mrf.mxu3 }
 0x56c   :  { %v796_v59 = vpop.f32.mrf.mxu2 }
 0x56e   :  { %v674_v60 = vpop.f32.mrf.mxu3 }
 0x56f   :  { %v678_v61 = vpack.c.bf16 %v674_v60, %v653_v55 }
 0x571   :  { %2303 = vmatmul.msk.bf16.vlgmr.msra.gmra.mxu1 %vm536_vm8, %v678_v61 }
 0x574   :  { %v798_v62 = vpop.f32.mrf.mxu2 }
 0x576   :  { %v676_v52 = vpop.f32.mrf.mxu3 }
 0x57e   :  { %v817_v1 = vpop.f32.mrf.mxu3 }
 0x57f   :  { %v821_v3 = vpack.c.bf16 %v817_v1, %v796_v59 }
 0x581   :  { %2298 = vmatmul.msk.bf16.vlgmr.msra.gmra.mxu0 %vm536_vm8, %v821_v3 }
 0x586   :  { %v819_v4 = vpop.f32.mrf.mxu3 }
 0x58e   :  { %v943_v22 = vpop.f32.mrf.mxu3 }
 0x596   :  { %v945_v28 = vpop.f32.mrf.mxu3 }
 0x5ee   :  { %v863_v9 = vpop.f32.mrf.mxu1 }
 0x5f6   :  { %v865_v14 = vpop.f32.mrf.mxu1 }
 0x5fe   :  { %v840_v11 = vpop.f32.mrf.mxu0 }
 0x5ff   :  { %v864_v12 = vadd.f32 %v863_v9, %v840_v11 }
 0x601   :  { %v871_v16 = vadd.f32 %v2554_v13, %v864_v12 }
 0x603   :  { %v886_v19 = vmax.f32 %v871_v16, 0.0 }
 0x606   :  { %v842_v15 = vpop.f32.mrf.mxu0 }
 0x607   :  { %v866_v17 = vadd.f32 %v865_v14, %v842_v15 }
 0x609   :  { %v872_v18 = vadd.f32 %v2554_v13, %v866_v17 }
 0x60b   :  { %v887_v20 = vmax.f32 %v872_v18, 0.0 }
 0x60d   :  { %v888_v21 = vpack.c.bf16 %v887_v20, %v886_v19 }
 0x60f   :  { %2312 = vmatmul.msk.bf16.vlgmr.msra.gmra.mxu2 %vm428_vm0, %v888_v21 }
 0x692   :  { %v913_v23 = vpop.f32.mrf.mxu2 }
 0x693   :  { %v3611_v24 = vadd.f32 %v943_v22, %v913_v23 }
 0x695   :  { %v2322_v26 = vmul.f32 -1.442695, %v3611_v24 }
 0x697   :  { %2585 = vpow2.f32 %v2322_v26 }
 0x69a   :  { %v915_v29 = vpop.f32.mrf.mxu2 }
 0x69b   :  { %v3616_v30 = vadd.f32 %v945_v28, %v915_v29 }
 0x69d   :  { %v2586_v31 = vpop.eup %2585  ;;  %v2323_v32 = vmul.f32 -1.442695, %v3616_v30  ;;  %v994_v11 = vsub.f32 %v3616_v30, %v991_v63 }
 0x69e   :  { %v956_v33 = vadd.f32 1.0, %v2586_v31 }
 0x69f   :  { %2587 = vpow2.f32 %v2323_v32  ;;  %v2325_v13 = vmul.f32 -1.442695, %v994_v11  ;;  %v2469_v11 = vld [vmem:[%s3855_s4] sm:$0xff] }
 0x6a0   :  { %2589 = vrcp.f32 %v956_v33  ;;  %v969_v44 = vand.u32 2147483648, %v956_v33  ;;  %vm963_vm1 = vweird.f32 %v956_v33  ;;  %v967_v46 = vand.u32 2147483647, %v956_v33 }
 0x6a2   :  { %v970_v50 = vor.u32 1.1754944e-38, %v969_v44  ;;  %vm968_vm5 = vcmp.eq.f32.partialorder %v967_v46, 8.507059e+37 }
 0x6a5   :  { %v2588_v34 = vpop.eup %2587 }
 0x6a6   :  { %v2590_v35 = vpop.eup %2589  ;;  %v957_v36 = vadd.f32 1.0, %v2588_v34 }
 0x6a7   :  { %v959_v37 = vmul.f32 %v2590_v35, %v956_v33  ;;  %vm964_vm15 = vweird.f32 %v2590_v35 }
 0x6a8   :  { %2591 = vrcp.f32 %v957_v36  ;;  %v984_v47 = vand.u32 2147483648, %v957_v36  ;;  %vm965_vm2 = vmor %vm963_vm1, %vm964_vm15  ;;  %v982_v49 = vand.u32 2147483647, %v957_v36  ;;  %vm978_vm4 = vweird.f32 %v957_v36 }
 0x6a9   :  { %v960_v38 = vsub.f32 1.0, %v959_v37 }
 0x6aa   :  { %v985_v53 = vor.u32 1.1754944e-38, %v984_v47  ;;  %vm983_vm7 = vcmp.eq.f32.partialorder %v982_v49, 8.507059e+37 }
 0x6ab   :  { %v961_v39 = vmul.f32 %v2590_v35, %v960_v38 }
 0x6ad   :  { %v962_v42 = vadd.f32 %v2590_v35, %v961_v39 }
 0x6ae   :  { %v2592_v40 = vpop.eup %2591 }
 0x6af   :  { %v974_v41 = vmul.f32 %v2592_v40, %v957_v36  ;;  %v966_v48 = vsel %vm965_vm2, %v2590_v35, %v962_v42  ;;  %vm979_vm3 = vweird.f32 %v2592_v40 }
 0x6b0   :  { %v971_v54 = vsel %vm968_vm5, %v970_v50, %v966_v48  ;;  %vm980_vm6 = vmor %vm978_vm4, %vm979_vm3 }
 0x6b1   :  { %v975_v45 = vsub.f32 1.0, %v974_v41  ;;  %v1033_v57 = vmul.f32 %v971_v54, %v3514_v0 }
 0x6b3   :  { %v976_v43 = vmul.f32 %v2592_v40, %v975_v45 }
 0x6b5   :  { %v977_v51 = vadd.f32 %v2592_v40, %v976_v43 }
 0x6b7   :  { %v981_v55 = vsel %vm980_vm6, %v2592_v40, %v977_v51 }
 0x6b8   :  { %v986_v56 = vsel %vm983_vm7, %v985_v53, %v981_v55 }
 0x6b9   :  { %v1034_v59 = vmul.f32 %v986_v56, %v3519_v2 }
 0x6bb   :  { %v1035_v60 = vpack.c.bf16 %v1034_v59, %v1033_v57  ;;  %v1101_v59 = vld [vmem:[#allocation7] sm:$0x3] }
 0x6bd   :  { %2334 = vmatmul.msk.bf16.vlgmr.msrb.gmra.mxu0 %vm428_vm0, %v1035_v60  ;;  %v1162_v60 = vperm.slane %v1101_v59, 0 }
 0x73a   :  { %v1060_v61 = vpop.f32.mrf.mxu0 }
 0x73b   :  { %1067 = vrot.lane.b32.xlu0 %v1060_v61, %s3208_s3 }
 0x742   :  { %v1062_v62 = vpop.f32.mrf.mxu0 }
 0x743   :  { %1081 = vrot.lane.b32.xlu0 %v3514_v0, %s3230_s11  ;;  %1069 = vrot.lane.b32.xlu1 %v1062_v62, %s3208_s3  ;;  %v993_v0 = vsub.f32 %v3611_v24, %v991_v63  ;;  %v2472_v63 = vld [vmem:[%s3854_s16 + $0x8] sm:$0xff] }
 0x744   :  { %1247 = vmatpush.bf16.msrb.mxu2 %v2472_v63 }
 0x745   :  { %v2324_v7 = vmul.f32 -1.442695, %v993_v0 }
 0x74b   :  { %1083 = vrot.lane.b32.xlu1 %v3519_v2, %s3230_s11 }
 0x7ad   :  { %v1068_v52 = vpop.permute.xlu0 %1067 }
 0x7ae   :  { %v1073_v1 = vadd.f32 %v1068_v52, %v913_v23 }
 0x7b0   :  { %2593 = vtanh.f32 %v1073_v1 }
 0x7b5   :  { %v1070_v3 = vpop.permute.xlu1 %1069  ;;  %v1082_v23 = vpop.permute.xlu0 %1081 }
 0x7b6   :  { %v2594_v4 = vpop.eup %2593  ;;  %v1074_v5 = vadd.f32 %v1070_v3, %v915_v29  ;;  %v1169_v3 = vperm.slane %v1101_v59, 1 }
 0x7b7   :  { %1091 = vrot.lane.b32.xlu2 %v2594_v4, %s3227_s10 }
 0x7b8   :  { %2595 = vtanh.f32 %v1074_v5 }
 0x7b9   :  { %2597 = vpow2.f32 %v2324_v7  ;;  %v2470_v7 = vld [vmem:[%s3855_s4 + $0x8] sm:$0xff] }
 0x7ba   :  { %1209 = vmatpush.bf16.msrb.mxu1 %v2470_v7 }
 0x7bd   :  { %v1084_v39 = vpop.permute.xlu1 %1083 }
 0x7be   :  { %v2596_v6 = vpop.eup %2595  ;;  %1210 = vmatpush.bf16.msrb.mxu1 %v2469_v11 }
 0x7bf   :  { %1093 = vrot.lane.b32.xlu0 %v2596_v6, %s3227_s10  ;;  %v2598_v58 = vpop.eup %2597 }
 0x7c0   :  { %v1001_v8 = vadd.f32 1.0, %v2598_v58 }
 0x7c2   :  { %2599 = vrcp.f32 %v1001_v8  ;;  %v1014_v16 = vand.u32 2147483648, %v1001_v8  ;;  %vm1008_vm12 = vweird.f32 %v1001_v8  ;;  %v1012_v17 = vand.u32 2147483647, %v1001_v8 }
 0x7c3   :  { %2601 = vpow2.f32 %v2325_v13 }
 0x7c4   :  { %v1015_v20 = vor.u32 1.1754944e-38, %v1014_v16  ;;  %vm1013_vm14 = vcmp.eq.f32.partialorder %v1012_v17, 8.507059e+37 }
 0x7c8   :  { %v2600_v2 = vpop.eup %2599 }
 0x7c9   :  { %v1004_v9 = vmul.f32 %v2600_v2, %v1001_v8  ;;  %vm1009_vm11 = vweird.f32 %v2600_v2  ;;  %v2602_v18 = vpop.eup %2601  ;;  %v2471_v8 = vld [vmem:[%s3854_s16] sm:$0xff] }
 0x7ca   :  { %vm1010_vm13 = vmor %vm1008_vm12, %vm1009_vm11  ;;  %v1002_v21 = vadd.f32 1.0, %v2602_v18  ;;  %1248 = vmatpush.bf16.msrb.mxu2 %v2471_v8 }
 0x7cb   :  { %v1005_v12 = vsub.f32 1.0, %v1004_v9  ;;  %v425_v9 = vld [vmem:[%s3856_s13 + $0x8] sm:$0xff] }
 0x7cc   :  { %2603 = vrcp.f32 %v1002_v21  ;;  %v1029_v34 = vand.u32 2147483648, %v1002_v21  ;;  %vm1023_vm1 = vweird.f32 %v1002_v21  ;;  %v1027_v35 = vand.u32 2147483647, %v1002_v21 }
 0x7cd   :  { %v1006_v14 = vmul.f32 %v2600_v2, %v1005_v12 }
 0x7ce   :  { %v1030_v37 = vor.u32 1.1754944e-38, %v1029_v34  ;;  %vm1028_vm3 = vcmp.eq.f32.partialorder %v1027_v35, 8.507059e+37 }
 0x7cf   :  { %v1007_v15 = vadd.f32 %v2600_v2, %v1006_v14 }
 0x7d1   :  { %v1011_v19 = vsel %vm1010_vm13, %v2600_v2, %v1007_v15  ;;  %v424_v2 = vld [vmem:[%s3856_s13] sm:$0xff] }
 0x7d2   :  { %v1016_v22 = vsel %vm1013_vm14, %v1015_v20, %v1011_v19  ;;  %v2604_v29 = vpop.eup %2603  ;;  %v1217_v15 = vpack.c.bf16 %v425_v9, %v424_v2 }
 0x7d3   :  { %v1077_v24 = vsub.f32 1.0, %v1016_v22  ;;  %v1019_v30 = vmul.f32 %v2604_v29, %v1002_v21  ;;  %vm1024_vm15 = vweird.f32 %v2604_v29 }
 0x7d4   :  { %vm1025_vm2 = vmor %vm1023_vm1, %vm1024_vm15  ;;  %2352 = vmatmul.msk.bf16.vlgmr.msrb.gmra.mxu2 %vm428_vm0, %v1217_v15 }
 0x7d5   :  { %v1087_v26 = vmul.f32 %v1082_v23, %v1077_v24  ;;  %v1020_v31 = vsub.f32 1.0, %v1019_v30 }
 0x7d7   :  { %v1021_v32 = vmul.f32 %v2604_v29, %v1020_v31 }
 0x7d9   :  { %v1022_v33 = vadd.f32 %v2604_v29, %v1021_v32 }
 0x7db   :  { %v1026_v36 = vsel %vm1025_vm2, %v2604_v29, %v1022_v33 }
 0x7dc   :  { %v1031_v38 = vsel %vm1028_vm3, %v1030_v37, %v1026_v36 }
 0x7dd   :  { %v1078_v40 = vsub.f32 1.0, %v1031_v38 }
 0x7df   :  { %v1088_v42 = vmul.f32 %v1084_v39, %v1078_v40  ;;  %v2556_v39 = vld [vmem:[#allocation10] ss:$0 sm:$0xff] }
 0x811   :  { %v1092_v25 = vpop.permute.xlu2 %1091 }
 0x812   :  { %v1097_v27 = vmul.f32 %v1092_v25, %v1016_v22 }
 0x814   :  { %v3632_v28 = vadd.f32 %v1097_v27, %v1087_v26 }
 0x816   :  { %1104 = vrot.lane.b32.xlu1 %v3632_v28, %s3227_s10 }
 0x831   :  { %v1094_v41 = vpop.permute.xlu0 %1093 }
 0x832   :  { %v1098_v44 = vmul.f32 %v1094_v41, %v1031_v38 }
 0x834   :  { %v3636_v45 = vadd.f32 %v1098_v44, %v1088_v42 }
 0x836   :  { %1106 = vrot.lane.b32.xlu2 %v3636_v45, %s3227_s10 }
 0x857   :  { %v1250_v40 = vpop.f32.mrf.mxu2 }
 0x858   :  { %v1251_v41 = vadd.f32 %v2556_v39, %v1250_v40 }
 0x85a   :  { %v1262_v42 = vpack.c.bf16 %v1251_v41, %v1251_v41 }
 0x85c   :  { %v1268_v44 = vsel %vm536_vm8, %v1262_v42, 0 }
 0x85d   :  { %1277 = vmatpush.bf16.xpose.msra.mxu3 %v1268_v44 }
 0x888   :  { %v3640_v46 = vpop.permute.xlu1 %1104 }
 0x889   :  { %v1110_v47 = vsel %vm428_vm0, %v3640_v46, 0.0 }
 0x88a   :  { %1111 = vadd.xlane.f32.xlu0 %v1110_v47  ;;  %v1355_v47 = vunpack.c.l.b16 %v1262_v42 }
 0x890   :  { %v3644_v43 = vpop.permute.xlu2 %1106 }
 0x891   :  { %v1113_v48 = vsel %vm428_vm0, %v3644_v43, 0.0 }
 0x892   :  { %1114 = vadd.xlane.f32.xlu1 %v1113_v48  ;;  %v3670_v48 = vpack.c.b16 %v1355_v47, %v1355_v47 }
 0x8ab   :  { %1164 = vrot.lane.b32.xlu1 %v1162_v60, %s3230_s11 }
 0x8b3   :  { %1408 = vrot.lane.b32.xlu1 %v3670_v48, %s3228_s24 }
 0x8fd   :  { %v1112_v49 = vpop.xlane.xlu0 %1111 }
 0x8fe   :  { %v1116_v50 = vmul.f32 %v1112_v49, %v3523_v10  ;;  %v1252_v49 = vpop.f32.mrf.mxu2 }
 0x900   :  { %v1118_v51 = vsub.f32 %v3632_v28, %v1116_v50  ;;  %v1253_v50 = vadd.f32 %v2556_v39, %v1252_v49 }
 0x902   :  { %v1120_v53 = vmul.f32 %v1118_v51, %v1118_v51 }
 0x904   :  { %1124 = vrot.lane.b32.xlu2 %v1120_v53, %s3227_s10 }
 0x905   :  { %v1115_v54 = vpop.xlane.xlu1 %1114 }
 0x906   :  { %v1117_v55 = vmul.f32 %v1115_v54, %v3523_v10 }
 0x908   :  { %v1119_v56 = vsub.f32 %v3636_v45, %v1117_v55 }
 0x90a   :  { %v1121_v57 = vmul.f32 %v1119_v56, %v1119_v56 }
 0x90c   :  { %1126 = vrot.lane.b32.xlu2 %v1121_v57, %s3227_s10 }
 0x91d   :  { %v1165_v27 = vpop.permute.xlu1 %1164 }
 0x95e   :  { %v1125_v61 = vpop.permute.xlu2 %1124 }
 0x95f   :  { %v1130_v62 = vsel %vm428_vm0, %v1125_v61, 0.0 }
 0x960   :  { %1131 = vadd.xlane.f32.xlu2 %v1130_v62 }
 0x966   :  { %v1127_v52 = vpop.permute.xlu2 %1126 }
 0x967   :  { %v1133_v1 = vsel %vm428_vm0, %v1127_v52, 0.0 }
 0x968   :  { %1134 = vadd.xlane.f32.xlu0 %v1133_v1 }
 0x97c   :  { %1171 = vrot.lane.b32.xlu0 %v1169_v3, %s3230_s11 }
 0x9d3   :  { %v1132_v4 = vpop.xlane.xlu2 %1131 }
 0x9d4   :  { %v1136_v5 = vmul.f32 %v1132_v4, %v3523_v10 }
 0x9d6   :  { %v1138_v6 = vadd.f32 1e-05, %v1136_v5 }
 0x9d8   :  { %2605 = vrsqrt.f32 %v1138_v6  ;;  %vm1146_vm5 = vweird.f32 %v1138_v6 }
 0x9db   :  { %v1135_v0 = vpop.xlane.xlu0 %1134 }
 0x9dc   :  { %v1137_v58 = vmul.f32 %v1135_v0, %v3523_v10 }
 0x9de   :  { %v2606_v12 = vpop.eup %2605  ;;  %v1139_v13 = vadd.f32 1e-05, %v1137_v58 }
 0x9df   :  { %v1141_v14 = vmul.f32 %v2606_v12, %v1138_v6  ;;  %vm1147_vm4 = vweird.f32 %v2606_v12  ;;  %v1409_v6 = vpop.permute.xlu1 %1408 }
 0x9e0   :  { %2607 = vrsqrt.f32 %v1139_v13  ;;  %vm1148_vm6 = vmor %vm1146_vm5, %vm1147_vm4  ;;  %vm1156_vm11 = vweird.f32 %v1139_v13  ;;  %v1414_v63 = vsel %vm536_vm8, %v1409_v6, 0 }
 0x9e1   :  { %v1142_v16 = vmul.f32 %v2606_v12, %v1141_v14  ;;  %1423 = vmatpush.bf16.xpose.msrb.mxu3 %v1414_v63 }
 0x9e3   :  { %v1143_v17 = vmul.f32 0.5, %v1142_v16 }
 0x9e5   :  { %v1144_v18 = vsub.f32 1.5, %v1143_v17 }
 0x9e6   :  { %v2608_v19 = vpop.eup %2607 }
 0x9e7   :  { %v1151_v20 = vmul.f32 %v2608_v19, %v1139_v13  ;;  %v1145_v21 = vmul.f32 %v2606_v12, %v1144_v18  ;;  %vm1157_vm7 = vweird.f32 %v2608_v19 }
 0x9e8   :  { %vm1158_vm12 = vmor %vm1156_vm11, %vm1157_vm7 }
 0x9e9   :  { %v1152_v22 = vmul.f32 %v2608_v19, %v1151_v20  ;;  %v1149_v24 = vsel %vm1148_vm6, %v2606_v12, %v1145_v21 }
 0x9ea   :  { %v1160_v26 = vmul.f32 %v1149_v24, %v1118_v51  ;;  %v1263_v51 = vpack.c.bf16 %v1253_v50, %v1253_v50 }
 0x9eb   :  { %v1153_v23 = vmul.f32 0.5, %v1152_v22 }
 0x9ec   :  { %v1167_v32 = vmul.f32 %v1165_v27, %v1160_v26  ;;  %v1287_v53 = vsel %vm536_vm8, %v1263_v51, 0  ;;  %v1379_v54 = vunpack.c.l.b16 %v1263_v51 }
 0x9ed   :  { %v1154_v25 = vsub.f32 1.5, %v1153_v23  ;;  %1296 = vmatpush.bf16.xpose.msra.mxu0 %v1287_v53 }
 0x9ee   :  { %v1172_v33 = vpop.permute.xlu0 %1171  ;;  %v3675_v55 = vpack.c.b16 %v1379_v54, %v1379_v54 }
 0x9ef   :  { %v1155_v29 = vmul.f32 %v2608_v19, %v1154_v25  ;;  %v1174_v35 = vadd.f32 %v1172_v33, %v1167_v32 }
 0x9f0   :  { %1434 = vrot.lane.b32.xlu0 %v3675_v55, %s3228_s24 }
 0x9f1   :  { %v1159_v30 = vsel %vm1158_vm12, %v2608_v19, %v1155_v29 }
 0x9f2   :  { %v1161_v31 = vmul.f32 %v1159_v30, %v1119_v56  ;;  %v2557_v56 = vld [vmem:[#allocation9] ss:$0 sm:$0xff] }
 0x9f4   :  { %v1168_v34 = vmul.f32 %v1165_v27, %v1161_v31 }
 0x9f6   :  { %v1175_v36 = vadd.f32 %v1172_v33, %v1168_v34 }
 0x9f8   :  { %v1176_v37 = vpack.c.bf16 %v1175_v36, %v1174_v35 }
 0x9fa   :  { %1186 = vrot.lane.b32.xlu2 %v1176_v37, %s3227_s10 }
 0xa54   :  { %v1187_v38 = vpop.permute.xlu2 %1186 }
 0xa55   :  { %2343 = vmatmul.msk.bf16.vlgmr.msrb.gmra.mxu1 %vm428_vm0, %v1187_v38  ;;  %v1646_v38 = vpack.c.bf16 %v3636_v45, %v3632_v28 }
 0xa62   :  { %v1435_v0 = vpop.permute.xlu0 %1434 }
 0xa63   :  { %v1440_v7 = vsel %vm536_vm8, %v1435_v0, 0 }
 0xa64   :  { %1449 = vmatpush.bf16.xpose.msrb.mxu0 %v1440_v7 }
 0xad2   :  { %v1212_v57 = vpop.f32.mrf.mxu1 }
 0xad3   :  { %v1213_v59 = vadd.f32 %v2557_v56, %v1212_v57 }
 0xad5   :  { %v1260_v60 = vpack.c.bf16 %v1213_v59, %v1213_v59 }
 0xad7   :  { %v1404_v61 = vunpack.c.l.b16 %v1260_v60  ;;  %2353 = vmatmul.msk.bf16.vlgmr.msra.gmra.mxu3 %vm536_vm8, %v1260_v60 }
 0xad9   :  { %v1405_v62 = vpack.c.b16 %v1404_v61, %v1404_v61 }
 0xada   :  { %v1214_v52 = vpop.f32.mrf.mxu1 }
 0xadb   :  { %v1215_v1 = vadd.f32 %v2557_v56, %v1214_v52  ;;  %1406 = vrot.lane.b32.xlu1 %v1405_v62, %s3228_s24 }
 0xadd   :  { %v1261_v3 = vpack.c.bf16 %v1215_v1, %v1215_v1 }
 0xadf   :  { %v1430_v4 = vunpack.c.l.b16 %v1261_v3  ;;  %2354 = vmatmul.msk.bf16.vlgmr.msra.gmra.mxu0 %vm536_vm8, %v1261_v3 }
 0xae1   :  { %v1431_v5 = vpack.c.b16 %v1430_v4, %v1430_v4 }
 0xae3   :  { %1432 = vrot.lane.b32.xlu0 %v1431_v5, %s3228_s24 }
 0xb4d   :  { %v1407_v58 = vpop.permute.xlu1 %1406 }
 0xb4e   :  { %2357 = vmatmul.msk.bf16.vlgmr.msrb.gmra.mxu3 %vm536_vm8, %v1407_v58 }
 0xb55   :  { %v1433_v8 = vpop.permute.xlu0 %1432 }
 0xb56   :  { %2358 = vmatmul.msk.bf16.vlgmr.msrb.gmra.mxu0 %vm536_vm8, %v1433_v8 }
 0xb5a   :  { %v1279_v2 = vpop.f32.mrf.mxu3 }
 0xb5b   :  { %v1302_v9 = vmul.f32 0.25, %v1279_v2 }
 0xb5c   :  { %v1298_v11 = vpop.f32.mrf.mxu0 }
 0xb5d   :  { %v1303_v12 = vmul.f32 0.25, %v1298_v11  ;;  %v1304_v13 = vsel %vm584_vm9, %v1302_v9, -inf }
 0xb5e   :  { %1305 = vmax.xlane.f32.xlu0 %v1304_v13 }
 0xb5f   :  { %v1307_v14 = vsel %vm584_vm9, %v1303_v12, -inf }
 0xb60   :  { %1308 = vmax.xlane.f32.xlu1 %v1307_v14 }
 0xb62   :  { %v1281_v15 = vpop.f32.mrf.mxu3 }
 0xb63   :  { %v2477_v15 = vld [vmem:[#allocation16] sm:$0xff] }
 0xb64   :  { %v1300_v16 = vpop.f32.mrf.mxu0 }
 0xb72   :  { %1381 = vrot.lane.b32.xlu0 %v3675_v55, %s3227_s10 }
 0xbd1   :  { %v1306_v17 = vpop.xlane.xlu0 %1305  ;;  %v1425_v18 = vpop.f32.mrf.mxu3 }
 0xbd2   :  { %v1310_v19 = vsub.f32 %v1302_v9, %v1306_v17  ;;  %v1455_v20 = vmul.f32 0.25, %v1425_v18  ;;  %v2478_v9 = vld [vmem:[#allocation16 + $0x8] sm:$0xff] }
 0xbd3   :  { %v1451_v21 = vpop.f32.mrf.mxu0  ;;  %v1309_v22 = vpop.xlane.xlu1 %1308 }
 0xbd4   :  { %v1312_v23 = vmul.f32 1.442695, %v1310_v19  ;;  %v1456_v24 = vmul.f32 0.25, %v1451_v21  ;;  %v1311_v25 = vsub.f32 %v1303_v12, %v1309_v22  ;;  %v1457_v26 = vsel %vm584_vm9, %v1455_v20, -inf }
 0xbd5   :  { %1458 = vmax.xlane.f32.xlu1 %v1457_v26 }
 0xbd6   :  { %2609 = vpow2.f32 %v1312_v23  ;;  %v1314_v27 = vmul.f32 1.442695, %v1311_v25  ;;  %v1460_v29 = vsel %vm584_vm9, %v1456_v24, -inf }
 0xbd7   :  { %1461 = vmax.xlane.f32.xlu2 %v1460_v29 }
 0xbd8   :  { %2611 = vpow2.f32 %v1314_v27 }
 0xbd9   :  { %v1427_v30 = vpop.f32.mrf.mxu3 }
 0xbdb   :  { %v1453_v31 = vpop.f32.mrf.mxu0 }
 0xbdc   :  { %v3693_v32 = vpop.eup %2609 }
 0xbdd   :  { %v1316_v33 = vsel %vm584_vm9, %v3693_v32, 0.0 }
 0xbde   :  { %v2612_v34 = vpop.eup %2611 }
 0xbdf   :  { %1317 = vadd.xlane.f32.xlu2 %v1316_v33  ;;  %v1319_v35 = vsel %vm584_vm9, %v2612_v34, 0.0 }
 0xbe0   :  { %1320 = vadd.xlane.f32.xlu0 %v1319_v35 }
 0xbe4   :  { %v1382_v36 = vpop.permute.xlu0 %1381 }
 0xbe5   :  { %v1387_v37 = vsel %vm640_vm10, %v1382_v36, 0 }
 0xbe6   :  { %1396 = vmatpush.bf16.msra.mxu2 %v1387_v37 }
 0xbf4   :  { %1507 = vrot.lane.b32.xlu0 %v3670_v48, %s3226_s19 }
 0xbfc   :  { %1648 = vrot.lane.b32.xlu0 %v1646_v38, %s3227_s10 }
 0xc48   :  { %v1459_v39 = vpop.xlane.xlu1 %1458 }
 0xc49   :  { %v1463_v40 = vsub.f32 %v1455_v20, %v1459_v39 }
 0xc4a   :  { %v1462_v41 = vpop.xlane.xlu2 %1461 }
 0xc4b   :  { %v1465_v42 = vmul.f32 1.442695, %v1463_v40  ;;  %v1464_v44 = vsub.f32 %v1456_v24, %v1462_v41 }
 0xc4d   :  { %2613 = vpow2.f32 %v1465_v42  ;;  %v1467_v47 = vmul.f32 1.442695, %v1464_v44 }
 0xc4f   :  { %2615 = vpow2.f32 %v1467_v47 }
 0xc52   :  { %v1318_v63 = vpop.xlane.xlu2 %1317 }
 0xc53   :  { %v3704_v49 = vpop.eup %2613  ;;  %v1321_v50 = vpop.xlane.xlu0 %1320  ;;  %v1333_v21 = vand.u32 2147483648, %v1318_v63  ;;  %vm1327_vm5 = vweird.f32 %v1318_v63  ;;  %v1331_v23 = vand.u32 2147483647, %v1318_v63 }
 0xc54   :  { %2617 = vrcp.f32 %v1321_v50  ;;  %v1469_v53 = vsel %vm584_vm9, %v3704_v49, 0.0  ;;  %v1348_v60 = vand.u32 2147483648, %v1321_v50  ;;  %v1346_v62 = vand.u32 2147483647, %v1321_v50 }
 0xc55   :  { %v3706_v51 = vpop.eup %2615  ;;  %1470 = vadd.xlane.f32.xlu2 %v1469_v53  ;;  %vm1342_vm14 = vweird.f32 %v1321_v50  ;;  %2619 = vrcp.f32 %v1318_v63  ;;  %v1334_v30 = vor.u32 1.1754944e-38, %v1333_v21  ;;  %vm1332_vm12 = vcmp.eq.f32.partialorder %v1331_v23, 8.507059e+37  ;;  %v2480_v21 = vld [vmem:[#allocation18 + $0x8] sm:$0xff]  ;;  %v2479_v23 = vld [vmem:[#allocation18] sm:$0xff] }
 0xc56   :  { %v1472_v54 = vsel %vm584_vm9, %v3706_v51, 0.0  ;;  %v1349_v1 = vor.u32 1.1754944e-38, %v1348_v60  ;;  %vm1347_vm1 = vcmp.eq.f32.partialorder %v1346_v62, 8.507059e+37  ;;  %v2474_v62 = vld [vmem:[#allocation12 + $0x8] sm:$0xff] }
 0xc57   :  { %1473 = vadd.xlane.f32.xlu1 %v1472_v54  ;;  %1566 = vmatpush.bf16.msra.mxu3 %v2474_v62 }
 0xc5a   :  { %v2618_v56 = vpop.eup %2617 }
 0xc5b   :  { %v1338_v57 = vmul.f32 %v2618_v56, %v1321_v50  ;;  %vm1343_vm13 = vweird.f32 %v2618_v56  ;;  %v2620_v0 = vpop.eup %2619  ;;  %1788 = vmatpush.bf16.msrb.mxu3 %v2480_v21 }
 0xc5c   :  { %vm1344_vm15 = vmor %vm1342_vm14, %vm1343_vm13  ;;  %v1323_v8 = vmul.f32 %v2620_v0, %v1318_v63  ;;  %vm1328_vm3 = vweird.f32 %v2620_v0 }
 0xc5d   :  { %v1339_v59 = vsub.f32 1.0, %v1338_v57  ;;  %vm1329_vm7 = vmor %vm1327_vm5, %vm1328_vm3 }
 0xc5e   :  { %v1324_v2 = vsub.f32 1.0, %v1323_v8 }
 0xc5f   :  { %v1340_v61 = vmul.f32 %v2618_v56, %v1339_v59  ;;  %1789 = vmatpush.bf16.msrb.mxu3 %v2479_v23 }
 0xc60   :  { %v1325_v14 = vmul.f32 %v2620_v0, %v1324_v2 }
 0xc61   :  { %v1341_v52 = vadd.f32 %v2618_v56, %v1340_v61  ;;  %v2473_v61 = vld [vmem:[#allocation12] sm:$0xff] }
 0xc62   :  { %v1326_v19 = vadd.f32 %v2620_v0, %v1325_v14  ;;  %1589 = vmatpush.bf16.msra.mxu0 %v2473_v61 }
 0xc63   :  { %v1345_v3 = vsel %vm1344_vm15, %v2618_v56, %v1341_v52 }
 0xc64   :  { %v1350_v4 = vsel %vm1347_vm1, %v1349_v1, %v1345_v3  ;;  %v1330_v26 = vsel %vm1329_vm7, %v2620_v0, %v1326_v19  ;;  %v2476_v0 = vld [vmem:[#allocation15 + $0x8] sm:$0xff] }
 0xc65   :  { %v1351_v5 = vmul.f32 %v2612_v34, %v1350_v4  ;;  %v1335_v33 = vsel %vm1332_vm12, %v1334_v30, %v1330_v26 }
 0xc66   :  { %v1336_v36 = vmul.f32 %v3693_v32, %v1335_v33  ;;  %v1508_v37 = vpop.permute.xlu0 %1507 }
 0xc67   :  { %v1353_v6 = vpack.c.bf16 %v1351_v5, %v1351_v5  ;;  %v1513_v41 = vsel %vm640_vm10, %v1508_v37, 0 }
 0xc68   :  { %v1352_v42 = vpack.c.bf16 %v1336_v36, %v1336_v36 }
 0xc69   :  { %2356 = vmatmul.msk.bf16.vlgmr.msra.gmra.mxu2 %vm584_vm9, %v1353_v6 }
 0xc6d   :  { %1528 = vrot.lane.b32.xlu2 %v3675_v55, %s3226_s19 }
 0xc6e   :  { %v1649_v56 = vpop.permute.xlu0 %1648 }
 0xc70   :  { %1357 = vrot.lane.b32.xlu1 %v3670_v48, %s3227_s10 }
 0xcc8   :  { %v3717_v7 = vpop.xlane.xlu2 %1470 }
 0xcc9   :  { %v1486_v47 = vand.u32 2147483648, %v3717_v7  ;;  %vm1480_vm14 = vweird.f32 %v3717_v7  ;;  %v1484_v32 = vand.u32 2147483647, %v3717_v7 }
 0xcca   :  { %v1474_v58 = vpop.xlane.xlu1 %1473 }
 0xccb   :  { %2621 = vrcp.f32 %v1474_v58  ;;  %v1501_v16 = vand.u32 2147483648, %v1474_v58  ;;  %v1499_v18 = vand.u32 2147483647, %v1474_v58  ;;  %vm1495_vm4 = vweird.f32 %v1474_v58 }
 0xccc   :  { %2623 = vrcp.f32 %v3717_v7  ;;  %vm1485_vm1 = vcmp.eq.f32.partialorder %v1484_v32, 8.507059e+37 }
 0xccd   :  { %v1502_v24 = vor.u32 1.1754944e-38, %v1501_v16  ;;  %vm1500_vm11 = vcmp.eq.f32.partialorder %v1499_v18, 8.507059e+37 }
 0xcd0   :  { %v1529_v12 = vpop.permute.xlu2 %1528 }
 0xcd1   :  { %v2622_v11 = vpop.eup %2621  ;;  %v1534_v55 = vsel %vm640_vm10, %v1529_v12, 0 }
 0xcd2   :  { %v1491_v13 = vmul.f32 %v2622_v11, %v1474_v58  ;;  %1543 = vmatpush.bf16.msrb.mxu2 %v1534_v55  ;;  %vm1496_vm2 = vweird.f32 %v2622_v11  ;;  %v2624_v20 = vpop.eup %2623  ;;  %v2559_v58 = vld [vmem:[#allocation19] ss:$0 sm:$0xff] }
 0xcd3   :  { %vm1497_vm6 = vmor %vm1495_vm4, %vm1496_vm2  ;;  %v1476_v27 = vmul.f32 %v2624_v20, %v3717_v7  ;;  %vm1481_vm13 = vweird.f32 %v2624_v20  ;;  %v2475_v7 = vld [vmem:[#allocation15] sm:$0xff]  ;;  %1721 = vrot.lane.b32.xlu0 %v2559_v58, %s3230_s11 }
 0xcd4   :  { %v1492_v48 = vsub.f32 1.0, %v1491_v13  ;;  %vm1482_vm15 = vmor %vm1480_vm14, %vm1481_vm13 }
 0xcd5   :  { %v1477_v35 = vsub.f32 1.0, %v1476_v27 }
 0xcd6   :  { %1671 = vmatpush.bf16.msra.mxu2 %v2478_v9  ;;  %v1493_v17 = vmul.f32 %v2622_v11, %v1492_v48 }
 0xcd7   :  { %v1478_v39 = vmul.f32 %v2624_v20, %v1477_v35 }
 0xcd8   :  { %v1494_v22 = vadd.f32 %v2622_v11, %v1493_v17 }
 0xcd9   :  { %v1479_v44 = vadd.f32 %v2624_v20, %v1478_v39 }
 0xcda   :  { %1672 = vmatpush.bf16.msra.mxu2 %v2477_v15  ;;  %v1498_v25 = vsel %vm1497_vm6, %v2622_v11, %v1494_v22  ;;  %v2558_v11 = vld [vmem:[#allocation13] ss:$0 sm:$0xff] }
 0xcdb   :  { %v1503_v29 = vsel %vm1500_vm11, %v1502_v24, %v1498_v25  ;;  %v1483_v50 = vsel %vm1482_vm15, %v2624_v20, %v1479_v44 }
 0xcdc   :  { %v1504_v31 = vmul.f32 %v3706_v51, %v1503_v29  ;;  %v1487_v51 = vor.u32 1.1754944e-38, %v1486_v47 }
 0xcde   :  { %v1506_v34 = vpack.c.bf16 %v1504_v31, %v1504_v31  ;;  %v1488_v54 = vsel %vm1485_vm1, %v1487_v51, %v1483_v50 }
 0xcdf   :  { %v1489_v57 = vmul.f32 %v3704_v49, %v1488_v54 }
 0xce0   :  { %2360 = vmatmul.msk.bf16.vlgmr.msrb.gmra.mxu2 %vm584_vm9, %v1506_v34 }
 0xce1   :  { %v1505_v60 = vpack.c.bf16 %v1489_v57, %v1489_v57 }
 0xce2   :  { %v1358_v38 = vpop.permute.xlu1 %1357 }
 0xce3   :  { %v1363_v40 = vsel %vm640_vm10, %v1358_v38, 0 }
 0xce4   :  { %1372 = vmatpush.bf16.msra.mxu1 %v1363_v40 }
 0xce7   :  { %2355 = vmatmul.msk.bf16.vlgmr.msra.gmra.mxu1 %vm584_vm9, %v1352_v42 }
 0xce8   :  { %1522 = vmatpush.bf16.msrb.mxu1 %v1513_v41 }
 0xcec   :  { %v1398_v53 = vpop.f32.mrf.mxu2  ;;  %1638 = vmatpush.bf16.msra.mxu1 %v2476_v0 }
 0xcf0   :  { %2388 = vmatmul.msk.bf16.vlgmr.msra.gmra.mxu2 %vm428_vm0, %v1649_v56  ;;  %1639 = vmatpush.bf16.msra.mxu1 %v2475_v7 }
 0xcf4   :  { %v1400_v59 = vpop.f32.mrf.mxu2 }
 0xcf7   :  { %2359 = vmatmul.msk.bf16.vlgmr.msrb.gmra.mxu1 %vm584_vm9, %v1505_v60 }
 0xd63   :  { %v1545_v52 = vpop.f32.mrf.mxu2 }
 0xd64   :  { %v1374_v1 = vpop.f32.mrf.mxu1 }
 0xd65   :  { %v1402_v3 = vpack.c.bf16 %v1398_v53, %v1374_v1 }
 0xd67   :  { %2370 = vmatmul.msk.bf16.vlgmr.msra.gmra.mxu0 %vm536_vm8, %v1402_v3 }
 0xd6b   :  { %v1547_v4 = vpop.f32.mrf.mxu2 }
 0xd6c   :  { %v1376_v5 = vpop.f32.mrf.mxu1 }
 0xd73   :  { %v1674_v18 = vpop.f32.mrf.mxu2 }
 0xd74   :  { %v1524_v6 = vpop.f32.mrf.mxu1 }
 0xd75   :  { %v1549_v63 = vpack.c.bf16 %v1545_v52, %v1524_v6 }
 0xd77   :  { %2365 = vmatmul.msk.bf16.vlgmr.msra.gmra.mxu3 %vm536_vm8, %v1549_v63 }
 0xd7b   :  { %v1676_v24 = vpop.f32.mrf.mxu2 }
 0xd7c   :  { %v1526_v49 = vpop.f32.mrf.mxu1 }
 0xde4   :  { %v1591_v8 = vpop.f32.mrf.mxu0 }
 0xdec   :  { %v1593_v12 = vpop.f32.mrf.mxu0 }
 0xdfa   :  { %v1568_v2 = vpop.f32.mrf.mxu3 }
 0xdfb   :  { %v1592_v9 = vadd.f32 %v1591_v8, %v1568_v2 }
 0xdfd   :  { %v1599_v55 = vadd.f32 %v2558_v11, %v1592_v9 }
 0xdff   :  { %v1614_v15 = vmax.f32 %v1599_v55, 0.0 }
 0xe02   :  { %v1570_v13 = vpop.f32.mrf.mxu3 }
 0xe03   :  { %v1594_v14 = vadd.f32 %v1593_v12, %v1570_v13 }
 0xe05   :  { %v1600_v48 = vadd.f32 %v2558_v11, %v1594_v14 }
 0xe07   :  { %v1615_v16 = vmax.f32 %v1600_v48, 0.0 }
 0xe09   :  { %v1616_v17 = vpack.c.bf16 %v1615_v16, %v1614_v15 }
 0xe0b   :  { %2379 = vmatmul.msk.bf16.vlgmr.msra.gmra.mxu1 %vm428_vm0, %v1616_v17 }
 0xe88   :  { %v1641_v19 = vpop.f32.mrf.mxu1 }
 0xe89   :  { %v3738_v20 = vadd.f32 %v1674_v18, %v1641_v19 }
 0xe8b   :  { %v2389_v22 = vmul.f32 -1.442695, %v3738_v20 }
 0xe8d   :  { %2625 = vpow2.f32 %v2389_v22 }
 0xe90   :  { %v1643_v25 = vpop.f32.mrf.mxu1 }
 0xe91   :  { %v1680_v26 = vadd.f32 %v1676_v24, %v1643_v25 }
 0xe93   :  { %v2626_v27 = vpop.eup %2625  ;;  %v2390_v29 = vmul.f32 -1.442695, %v1680_v26 }
 0xe94   :  { %v1687_v30 = vadd.f32 1.0, %v2626_v27 }
 0xe95   :  { %2627 = vpow2.f32 %v2390_v29 }
 0xe96   :  { %2629 = vrcp.f32 %v1687_v30  ;;  %v1700_v41 = vand.u32 2147483648, %v1687_v30  ;;  %vm1694_vm9 = vweird.f32 %v1687_v30  ;;  %v1698_v44 = vand.u32 2147483647, %v1687_v30 }
 0xe98   :  { %v1701_v53 = vor.u32 1.1754944e-38, %v1700_v41  ;;  %vm1699_vm4 = vcmp.eq.f32.partialorder %v1698_v44, 8.507059e+37 }
 0xe9b   :  { %v2628_v31 = vpop.eup %2627 }
 0xe9c   :  { %v2630_v33 = vpop.eup %2629  ;;  %v1688_v34 = vadd.f32 1.0, %v2628_v31 }
 0xe9d   :  { %v1690_v35 = vmul.f32 %v2630_v33, %v1687_v30  ;;  %vm1695_vm8 = vweird.f32 %v2630_v33 }
 0xe9e   :  { %2631 = vrcp.f32 %v1688_v34  ;;  %v1715_v47 = vand.u32 2147483648, %v1688_v34  ;;  %vm1696_vm10 = vmor %vm1694_vm9, %vm1695_vm8  ;;  %v1713_v51 = vand.u32 2147483647, %v1688_v34  ;;  %vm1709_vm3 = vweird.f32 %v1688_v34 }
 0xe9f   :  { %v1691_v36 = vsub.f32 1.0, %v1690_v35 }
 0xea0   :  { %v1716_v56 = vor.u32 1.1754944e-38, %v1715_v47  ;;  %vm1714_vm6 = vcmp.eq.f32.partialorder %v1713_v51, 8.507059e+37 }
 0xea1   :  { %v1692_v37 = vmul.f32 %v2630_v33, %v1691_v36 }
 0xea3   :  { %v1693_v40 = vadd.f32 %v2630_v33, %v1692_v37 }
 0xea4   :  { %v2632_v38 = vpop.eup %2631 }
 0xea5   :  { %v1705_v39 = vmul.f32 %v2632_v38, %v1688_v34  ;;  %v1697_v50 = vsel %vm1696_vm10, %v2630_v33, %v1693_v40  ;;  %vm1710_vm2 = vweird.f32 %v2632_v38 }
 0xea6   :  { %v1702_v57 = vsel %vm1699_vm4, %v1701_v53, %v1697_v50  ;;  %vm1711_vm5 = vmor %vm1709_vm3, %vm1710_vm2 }
 0xea7   :  { %v1706_v42 = vsub.f32 1.0, %v1705_v39  ;;  %v1764_v61 = vmul.f32 %v1702_v57, %v3640_v46 }
 0xea9   :  { %v1707_v32 = vmul.f32 %v2632_v38, %v1706_v42 }
 0xeab   :  { %v1708_v54 = vadd.f32 %v2632_v38, %v1707_v32 }
 0xead   :  { %v1712_v59 = vsel %vm1711_vm5, %v2632_v38, %v1708_v54 }
 0xeae   :  { %v1717_v60 = vsel %vm1714_vm6, %v1716_v56, %v1712_v59  ;;  %vm1979_vm6 = vcmask 523264  }
 0xeaf   :  { %v1765_v62 = vmul.f32 %v1717_v60, %v3644_v43  ;;  %v1722_v43 = vpop.permute.xlu0 %1721  ;;  %v1824_v60 = vld [vmem:[#allocation21] sm:$0x3] }
 0xeb0   :  { %v1725_v0 = vsub.f32 %v1680_v26, %v1722_v43  ;;  %v1724_v13 = vsub.f32 %v3738_v20, %v1722_v43 }
 0xeb1   :  { %v1766_v52 = vpack.c.bf16 %v1765_v62, %v1764_v61  ;;  %v1885_v61 = vperm.slane %v1824_v60, 0 }
 0xeb2   :  { %v2392_v7 = vmul.f32 -1.442695, %v1725_v0  ;;  %v2391_v48 = vmul.f32 -1.442695, %v1724_v13  ;;  %v2482_v0 = vld [vmem:[#allocation22 + $0x8] sm:$0xff] }
 0xeb3   :  { %2401 = vmatmul.msk.bf16.vlgmr.msrb.gmra.mxu3 %vm428_vm0, %v1766_v52  ;;  %1941 = vmatpush.bf16.msrb.mxu0 %v2482_v0 }
 0xf36   :  { %v1791_v1 = vpop.f32.mrf.mxu3 }
 0xf37   :  { %1798 = vrot.lane.b32.xlu1 %v1791_v1, %s3208_s3 }
 0xf3e   :  { %v1793_v3 = vpop.f32.mrf.mxu3 }
 0xf3f   :  { %1800 = vrot.lane.b32.xlu2 %v1793_v3, %s3208_s3 }
 0xf99   :  { %v1801_v4 = vpop.permute.xlu2 %1800 }
 0xf9a   :  { %v1805_v5 = vadd.f32 %v1801_v4, %v1643_v25 }
 0xf9c   :  { %2633 = vtanh.f32 %v1805_v5  ;;  %v1892_v5 = vperm.slane %v1824_v60, 1 }
 0xfa2   :  { %v2634_v6 = vpop.eup %2633 }
 0xfa3   :  { %1816 = vrot.lane.b32.xlu2 %v2634_v6, %s3227_s10  ;;  %v2490_v6 = vld [vmem:[#allocation28 + $0x8] sm:$0xff] }
 0xfa4   :  { %2067 = vmatpush.bf16.msra.mxu3 %v2490_v6  ;;  %v2492_v6 = vld [vmem:[#allocation30 + $0x8] sm:$0xff] }
 0xfa9   :  { %v1799_v63 = vpop.permute.xlu1 %1798 }
 0xfaa   :  { %v1804_v49 = vadd.f32 %v1799_v63, %v1641_v19  ;;  %v2489_v63 = vld [vmem:[#allocation28] sm:$0xff] }
 0xfab   :  { %2068 = vmatpush.bf16.msra.mxu3 %v2489_v63 }
 0xfac   :  { %2635 = vtanh.f32 %v1804_v49 }
 0xfad   :  { %2637 = vpow2.f32 %v2392_v7 }
 0xfb2   :  { %v2636_v46 = vpop.eup %2635 }
 0xfb3   :  { %1814 = vrot.lane.b32.xlu1 %v2636_v46, %s3227_s10  ;;  %v2638_v58 = vpop.eup %2637 }
 0xfb4   :  { %v1733_v8 = vadd.f32 1.0, %v2638_v58 }
 0xfb6   :  { %2639 = vrcp.f32 %v1733_v8  ;;  %v1760_v14 = vand.u32 2147483648, %v1733_v8  ;;  %vm1754_vm11 = vweird.f32 %v1733_v8  ;;  %v1758_v15 = vand.u32 2147483647, %v1733_v8 }
 0xfb7   :  { %2641 = vpow2.f32 %v2391_v48 }
 0xfb8   :  { %v1761_v17 = vor.u32 1.1754944e-38, %v1760_v14  ;;  %vm1759_vm13 = vcmp.eq.f32.partialorder %v1758_v15, 8.507059e+37 }
 0xfbc   :  { %v2640_v2 = vpop.eup %2639 }
 0xfbd   :  { %v1750_v9 = vmul.f32 %v2640_v2, %v1733_v8  ;;  %vm1755_vm7 = vweird.f32 %v2640_v2  ;;  %v2642_v21 = vpop.eup %2641  ;;  %v2481_v8 = vld [vmem:[#allocation22] sm:$0xff] }
 0xfbe   :  { %vm1756_vm12 = vmor %vm1754_vm11, %vm1755_vm7  ;;  %v1732_v25 = vadd.f32 1.0, %v2642_v21  ;;  %1942 = vmatpush.bf16.msrb.mxu0 %v2481_v8 }
 0xfbf   :  { %v1751_v11 = vsub.f32 1.0, %v1750_v9 }
 0xfc0   :  { %2643 = vrcp.f32 %v1732_v25  ;;  %v1745_v33 = vand.u32 2147483648, %v1732_v25  ;;  %vm1739_vm15 = vweird.f32 %v1732_v25  ;;  %v1743_v34 = vand.u32 2147483647, %v1732_v25 }
 0xfc1   :  { %v1752_v12 = vmul.f32 %v2640_v2, %v1751_v11 }
 0xfc2   :  { %vm1744_vm8 = vcmp.eq.f32.partialorder %v1743_v34, 8.507059e+37  ;;  %2184 = vmatpush.bf16.msra.mxu0 %v2492_v6 }
 0xfc3   :  { %v1753_v55 = vadd.f32 %v2640_v2, %v1752_v12 }
 0xfc5   :  { %v1757_v16 = vsel %vm1756_vm12, %v2640_v2, %v1753_v55 }
 0xfc6   :  { %v1762_v18 = vsel %vm1759_vm13, %v1761_v17, %v1757_v16  ;;  %v2644_v26 = vpop.eup %2643 }
 0xfc7   :  { %v1809_v19 = vsub.f32 1.0, %v1762_v18  ;;  %v1735_v27 = vmul.f32 %v2644_v26, %v1732_v25  ;;  %vm1740_vm14 = vweird.f32 %v2644_v26 }
 0xfc8   :  { %vm1741_vm1 = vmor %vm1739_vm15, %vm1740_vm14 }
 0xfc9   :  { %v1811_v23 = vmul.f32 %v1809_v19, %v3636_v45  ;;  %v1736_v29 = vsub.f32 1.0, %v1735_v27  ;;  %v1746_v45 = vor.u32 1.1754944e-38, %v1745_v33 }
 0xfcb   :  { %v1737_v30 = vmul.f32 %v2644_v26, %v1736_v29 }
 0xfcd   :  { %v1738_v31 = vadd.f32 %v2644_v26, %v1737_v30 }
 0xfcf   :  { %v1742_v35 = vsel %vm1741_vm1, %v2644_v26, %v1738_v31 }
 0xfd0   :  { %v1747_v36 = vsel %vm1744_vm8, %v1746_v45, %v1742_v35  ;;  %v2486_v35 = vld [vmem:[%s3857_s27 + $0x18] sm:$0xff]  ;;  %v2485_v45 = vld [vmem:[%s3857_s27 + $0x10] sm:$0xff] }
 0xfd1   :  { %v1808_v37 = vsub.f32 1.0, %v1747_v36  ;;  %1987 = vmatpush.bf16.msrb.mxu1 %v2486_v35  ;;  %v2562_v35 = vld [vmem:[#allocation31] ss:$0 sm:$0xff] }
 0xfd3   :  { %v1810_v39 = vmul.f32 %v1808_v37, %v3632_v28  ;;  %v2483_v37 = vld [vmem:[%s3857_s27] sm:$0xff] }
 0xfd5   :  { %1988 = vmatpush.bf16.msrb.mxu1 %v2485_v45 }
 0xffd   :  { %v1817_v22 = vpop.permute.xlu2 %1816 }
 0xffe   :  { %v1821_v24 = vmul.f32 %v1817_v22, %v1762_v18 }
0x1000   :  { %v3750_v20 = vadd.f32 %v1821_v24, %v1811_v23 }
0x1002   :  { %1829 = vrot.lane.b32.xlu1 %v3750_v20, %s3227_s10 }
0x1025   :  { %v1815_v38 = vpop.permute.xlu1 %1814 }
0x1026   :  { %v1820_v40 = vmul.f32 %v1815_v38, %v1747_v36  ;;  %v2484_v36 = vld [vmem:[%s3857_s27 + $0x8] sm:$0xff] }
0x1027   :  { %1989 = vmatpush.bf16.msrb.mxu1 %v2484_v36 }
0x1028   :  { %v3755_v41 = vadd.f32 %v1820_v40, %v1810_v39  ;;  %v2560_v39 = vld [vmem:[#allocation24] ss:$0 sm:$0xff] }
0x102a   :  { %1827 = vrot.lane.b32.xlu0 %v3755_v41, %s3227_s10  ;;  %v2042_v4 = vpack.c.bf16 %v3750_v20, %v3755_v41 }
0x102b   :  { %1990 = vmatpush.bf16.msrb.mxu1 %v2483_v37 }
0x1074   :  { %v3759_v42 = vpop.permute.xlu1 %1829 }
0x1075   :  { %v1836_v44 = vsel %vm428_vm0, %v3759_v42, 0.0 }
0x1076   :  { %1837 = vadd.xlane.f32.xlu0 %v1836_v44 }
0x108a   :  { %1887 = vrot.lane.b32.xlu0 %v1885_v61, %s3230_s11 }
0x109c   :  { %v3763_v47 = vpop.permute.xlu0 %1827 }
0x109d   :  { %v1833_v32 = vsel %vm428_vm0, %v3763_v47, 0.0 }
0x109e   :  { %1834 = vadd.xlane.f32.xlu2 %v1833_v32 }
0x10e9   :  { %v1838_v51 = vpop.xlane.xlu0 %1837 }
0x10ea   :  { %v1840_v54 = vmul.f32 %v1838_v51, %v3523_v10 }
0x10ec   :  { %v1842_v57 = vsub.f32 %v3750_v20, %v1840_v54  ;;  %v2487_v54 = vld [vmem:[#allocation27] sm:$0xff] }
0x10ee   :  { %v1844_v59 = vmul.f32 %v1842_v57, %v1842_v57 }
0x10fc   :  { %v1888_v22 = vpop.permute.xlu0 %1887 }
0x1111   :  { %v1835_v50 = vpop.xlane.xlu2 %1834 }
0x1112   :  { %v1839_v28 = vmul.f32 %v1835_v50, %v3523_v10 }
0x1114   :  { %v1841_v53 = vsub.f32 %v3755_v41, %v1839_v28 }
0x1116   :  { %v1843_v56 = vmul.f32 %v1841_v53, %v1841_v53 }
0x1118   :  { %1847 = vrot.lane.b32.xlu1 %v1843_v56, %s3227_s10 }
0x1120   :  { %1849 = vrot.lane.b32.xlu1 %v1844_v59, %s3227_s10 }
0x118a   :  { %v1848_v62 = vpop.permute.xlu1 %1847 }
0x118b   :  { %v1853_v52 = vsel %vm428_vm0, %v1848_v62, 0.0 }
0x118c   :  { %1854 = vadd.xlane.f32.xlu1 %v1853_v52 }
0x1192   :  { %v1850_v1 = vpop.permute.xlu1 %1849 }
0x1193   :  { %v1856_v3 = vsel %vm428_vm0, %v1850_v1, 0.0 }
0x1194   :  { %1857 = vadd.xlane.f32.xlu2 %v1856_v3 }
0x11a5   :  { %2044 = vrot.lane.b32.xlu1 %v2042_v4, %s3227_s10 }
0x11ac   :  { %1894 = vrot.lane.b32.xlu2 %v1892_v5, %s3230_s11 }
0x11ff   :  { %v1855_v49 = vpop.xlane.xlu1 %1854 }
0x1200   :  { %v1859_v46 = vmul.f32 %v1855_v49, %v3523_v10  ;;  %v2491_v49 = vld [vmem:[#allocation30] sm:$0xff] }
0x1201   :  { %2185 = vmatpush.bf16.msra.mxu0 %v2491_v49 }
0x1202   :  { %v1861_v43 = vadd.f32 1e-05, %v1859_v46 }
0x1204   :  { %2645 = vrsqrt.f32 %v1861_v43  ;;  %vm1869_vm10 = vweird.f32 %v1861_v43 }
0x1207   :  { %v1858_v7 = vpop.xlane.xlu2 %1857 }
0x1208   :  { %v1860_v58 = vmul.f32 %v1858_v7, %v3523_v10 }
0x120a   :  { %v2646_v2 = vpop.eup %2645  ;;  %v1862_v9 = vadd.f32 1e-05, %v1860_v58 }
0x120b   :  { %v1864_v11 = vmul.f32 %v2646_v2, %v1861_v43  ;;  %vm1870_vm9 = vweird.f32 %v2646_v2 }
0x120c   :  { %2647 = vrsqrt.f32 %v1862_v9  ;;  %vm1871_vm2 = vmor %vm1869_vm10, %vm1870_vm9  ;;  %vm1879_vm4 = vweird.f32 %v1862_v9 }
0x120d   :  { %v1865_v12 = vmul.f32 %v2646_v2, %v1864_v11 }
0x120f   :  { %v1866_v13 = vmul.f32 0.5, %v1865_v12  ;;  %v1895_v27 = vpop.permute.xlu2 %1894 }
0x1211   :  { %v1867_v55 = vsub.f32 1.5, %v1866_v13 }
0x1212   :  { %v2648_v14 = vpop.eup %2647 }
0x1213   :  { %v1874_v48 = vmul.f32 %v2648_v14, %v1862_v9  ;;  %v1868_v15 = vmul.f32 %v2646_v2, %v1867_v55  ;;  %vm1880_vm3 = vweird.f32 %v2648_v14 }
0x1214   :  { %vm1881_vm5 = vmor %vm1879_vm4, %vm1880_vm3 }
0x1215   :  { %v1875_v16 = vmul.f32 %v2648_v14, %v1874_v48  ;;  %v1872_v18 = vsel %vm1871_vm2, %v2646_v2, %v1868_v15 }
0x1216   :  { %v1883_v21 = vmul.f32 %v1872_v18, %v1841_v53  ;;  %v2488_v53 = vld [vmem:[#allocation27 + $0x8] sm:$0xff] }
0x1217   :  { %v1876_v17 = vmul.f32 0.5, %v1875_v16  ;;  %v2045_v10 = vpop.permute.xlu1 %2044  ;;  %2034 = vmatpush.bf16.msrb.mxu2 %v2488_v53 }
0x1218   :  { %2445 = vmatmul.msk.bf16.vlgmr.msra.gmra.mxu3 %vm428_vm0, %v2045_v10  ;;  %v1890_v26 = vmul.f32 %v1888_v22, %v1883_v21 }
0x1219   :  { %v1877_v19 = vsub.f32 1.5, %v1876_v17 }
0x121a   :  { %v1897_v30 = vadd.f32 %v1895_v27, %v1890_v26 }
0x121b   :  { %v1878_v23 = vmul.f32 %v2648_v14, %v1877_v19  ;;  %2035 = vmatpush.bf16.msrb.mxu2 %v2487_v54 }
0x121d   :  { %v1882_v24 = vsel %vm1881_vm5, %v2648_v14, %v1878_v23 }
0x121e   :  { %v1884_v25 = vmul.f32 %v1882_v24, %v1842_v57  ;;  %v2561_v57 = vld [vmem:[#allocation25] ss:$0 sm:$0xff] }
0x1220   :  { %v1891_v29 = vmul.f32 %v1888_v22, %v1884_v25 }
0x1222   :  { %v1898_v31 = vadd.f32 %v1895_v27, %v1891_v29 }
0x1224   :  { %v1913_v33 = vpack.c.bf16 %v1898_v31, %v1897_v30 }
0x1226   :  { %1918 = vrot.lane.b32.xlu0 %v1913_v33, %s3227_s10 }
0x1298   :  { %v1919_v34 = vpop.permute.xlu0 %1918 }
0x1299   :  { %2410 = vmatmul.msk.bf16.vlgmr.msrb.gmra.mxu0 %vm428_vm0, %v1919_v34 }
0x129b   :  { %v2070_v3 = vpop.f32.mrf.mxu3 }
0x12a3   :  { %v2072_v46 = vpop.f32.mrf.mxu3 }
0x1316   :  { %v1944_v38 = vpop.f32.mrf.mxu0 }
0x1317   :  { %v1945_v40 = vadd.f32 %v2560_v39, %v1944_v38 }
0x1319   :  { %v1949_v50 = vmax.f32 %v1945_v40, 0.0 }
0x131e   :  { %v1946_v44 = vpop.f32.mrf.mxu0 }
0x131f   :  { %v1947_v32 = vadd.f32 %v2560_v39, %v1946_v44 }
0x1321   :  { %v1950_v28 = vmax.f32 %v1947_v32, 0.0 }
0x1323   :  { %v1951_v51 = vpack.c.bf16 %v1950_v28, %v1949_v50 }
0x1325   :  { %2427 = vmatmul.msk.bf16.vlgmr.msrb.gmra.mxu1 %vm1979_vm6, %v1951_v51 }
0x13a2   :  { %v1992_v56 = vpop.f32.mrf.mxu1 }
0x13a3   :  { %v1993_v59 = vadd.f32 %v2561_v57, %v1992_v56 }
0x13a5   :  { %v2010_v62 = vmax.f32 %v1993_v59, 0.0 }
0x13aa   :  { %v1994_v60 = vpop.f32.mrf.mxu1 }
0x13ab   :  { %v1995_v61 = vadd.f32 %v2561_v57, %v1994_v60 }
0x13ad   :  { %v2011_v52 = vmax.f32 %v1995_v61, 0.0 }
0x13af   :  { %v2012_v1 = vpack.c.bf16 %v2011_v52, %v2010_v62 }
0x13b1   :  { %2436 = vmatmul.msk.bf16.vlgmr.msrb.gmra.mxu2 %vm428_vm0, %v2012_v1 }
0x1434   :  { %v3790_v4 = vpop.f32.mrf.mxu2 }
0x1435   :  { %v3793_v5 = vadd.f32 %v2070_v3, %v3790_v4 }
0x1437   :  { %v2446_v63 = vmul.f32 -1.442695, %v3793_v5 }
0x1439   :  { %2649 = vpow2.f32 %v2446_v63 }
0x143c   :  { %v2039_v43 = vpop.f32.mrf.mxu2 }
0x143d   :  { %v2076_v0 = vadd.f32 %v2072_v46, %v2039_v43 }
0x143f   :  { %v2650_v7 = vpop.eup %2649  ;;  %v2447_v58 = vmul.f32 -1.442695, %v2076_v0 }
0x1440   :  { %v2083_v8 = vadd.f32 1.0, %v2650_v7 }
0x1441   :  { %2651 = vpow2.f32 %v2447_v58 }
0x1442   :  { %2653 = vrcp.f32 %v2083_v8  ;;  %v2096_v16 = vand.u32 2147483648, %v2083_v8  ;;  %vm2090_vm11 = vweird.f32 %v2083_v8  ;;  %v2094_v18 = vand.u32 2147483647, %v2083_v8 }
0x1444   :  { %v2097_v23 = vor.u32 1.1754944e-38, %v2096_v16  ;;  %vm2095_vm15 = vcmp.eq.f32.partialorder %v2094_v18, 8.507059e+37 }
0x1447   :  { %v2652_v2 = vpop.eup %2651 }
0x1448   :  { %v2654_v9 = vpop.eup %2653  ;;  %v2084_v11 = vadd.f32 1.0, %v2652_v2 }
0x1449   :  { %v2086_v12 = vmul.f32 %v2654_v9, %v2083_v8  ;;  %vm2091_vm7 = vweird.f32 %v2654_v9 }
0x144a   :  { %2655 = vrcp.f32 %v2084_v11  ;;  %v2111_v10 = vand.u32 2147483648, %v2084_v11  ;;  %vm2092_vm12 = vmor %vm2090_vm11, %vm2091_vm7  ;;  %v2109_v21 = vand.u32 2147483647, %v2084_v11  ;;  %vm2105_vm14 = vweird.f32 %v2084_v11 }
0x144b   :  { %v2087_v13 = vsub.f32 1.0, %v2086_v12 }
0x144c   :  { %v2112_v25 = vor.u32 1.1754944e-38, %v2111_v10  ;;  %vm2110_vm8 = vcmp.eq.f32.partialorder %v2109_v21, 8.507059e+37 }
0x144d   :  { %v2088_v55 = vmul.f32 %v2654_v9, %v2087_v13 }
0x144f   :  { %v2089_v15 = vadd.f32 %v2654_v9, %v2088_v55 }
0x1450   :  { %v2656_v14 = vpop.eup %2655 }
0x1451   :  { %v2101_v48 = vmul.f32 %v2656_v14, %v2084_v11  ;;  %vm2106_vm13 = vweird.f32 %v2656_v14  ;;  %v2093_v22 = vsel %vm2092_vm12, %v2654_v9, %v2089_v15 }
0x1452   :  { %vm2107_vm1 = vmor %vm2105_vm14, %vm2106_vm13  ;;  %v2098_v26 = vsel %vm2095_vm15, %v2097_v23, %v2093_v22 }
0x1453   :  { %v2102_v17 = vsub.f32 1.0, %v2101_v48  ;;  %v2160_v30 = vmul.f32 %v2098_v26, %v3763_v47 }
0x1455   :  { %v2103_v19 = vmul.f32 %v2656_v14, %v2102_v17 }
0x1457   :  { %v2104_v24 = vadd.f32 %v2656_v14, %v2103_v19 }
0x1459   :  { %v2108_v27 = vsel %vm2107_vm1, %v2656_v14, %v2104_v24 }
0x145a   :  { %v2113_v29 = vsel %vm2110_vm8, %v2112_v25, %v2108_v27 }
0x145b   :  { %v2161_v31 = vmul.f32 %v2113_v29, %v3759_v42 }
0x145d   :  { %v2162_v33 = vpack.c.bf16 %v2161_v31, %v2160_v30 }
0x145f   :  { %2458 = vmatmul.msk.bf16.vlgmr.msra.gmra.mxu0 %vm428_vm0, %v2162_v33 }
0x14dc   :  { %v2187_v34 = vpop.f32.mrf.mxu0 }
0x14dd   :  { %2194 = vrot.lane.b32.xlu0 %v2187_v34, %s3208_s3 }
0x14e4   :  { %v2189_v45 = vpop.f32.mrf.mxu0 }
0x14e5   :  { %2117 = vrot.lane.b32.xlu0 %v2562_v35, %s3230_s11  ;;  %2196 = vrot.lane.b32.xlu2 %v2189_v45, %s3208_s3 }
0x153f   :  { %v2197_v36 = vpop.permute.xlu2 %2196 }
0x1540   :  { %v2201_v37 = vadd.f32 %v2197_v36, %v2039_v43 }
0x1542   :  { %2657 = vtanh.f32 %v2201_v37 }
0x1548   :  { %v2658_v38 = vpop.eup %2657 }
0x1549   :  { %2212 = vrot.lane.b32.xlu0 %v2658_v38, %s3227_s10 }
0x154f   :  { %v2195_v47 = vpop.permute.xlu0 %2194 }
0x1550   :  { %v2200_v42 = vadd.f32 %v2195_v47, %v3790_v4 }
0x1552   :  { %2659 = vtanh.f32 %v2200_v42 }
0x1557   :  { %v2118_v40 = vpop.permute.xlu0 %2117 }
0x1558   :  { %v2660_v39 = vpop.eup %2659  ;;  %v2120_v44 = vsub.f32 %v3793_v5, %v2118_v40  ;;  %v2121_v50 = vsub.f32 %v2076_v0, %v2118_v40 }
0x1559   :  { %2210 = vrot.lane.b32.xlu2 %v2660_v39, %s3227_s10 }
0x155a   :  { %v2448_v32 = vmul.f32 -1.442695, %v2120_v44  ;;  %v2449_v28 = vmul.f32 -1.442695, %v2121_v50 }
0x155c   :  { %2661 = vpow2.f32 %v2448_v32 }
0x155d   :  { %2663 = vpow2.f32 %v2449_v28 }
0x1562   :  { %v2662_v51 = vpop.eup %2661 }
0x1563   :  { %v2128_v53 = vadd.f32 1.0, %v2662_v51  ;;  %v2664_v54 = vpop.eup %2663 }
0x1564   :  { %v2129_v56 = vadd.f32 1.0, %v2664_v54 }
0x1565   :  { %2665 = vrcp.f32 %v2128_v53  ;;  %v2141_v4 = vand.u32 2147483648, %v2128_v53  ;;  %vm2135_vm10 = vweird.f32 %v2128_v53  ;;  %v2139_v5 = vand.u32 2147483647, %v2128_v53 }
0x1566   :  { %2667 = vrcp.f32 %v2129_v56  ;;  %v2156_v0 = vand.u32 2147483648, %v2129_v56  ;;  %vm2150_vm5 = vweird.f32 %v2129_v56  ;;  %v2154_v58 = vand.u32 2147483647, %v2129_v56 }
0x1567   :  { %v2142_v49 = vor.u32 1.1754944e-38, %v2141_v4  ;;  %vm2140_vm3 = vcmp.eq.f32.partialorder %v2139_v5, 8.507059e+37 }
0x1568   :  { %v2157_v9 = vor.u32 1.1754944e-38, %v2156_v0  ;;  %vm2155_vm7 = vcmp.eq.f32.partialorder %v2154_v58, 8.507059e+37 }
0x156b   :  { %v2666_v57 = vpop.eup %2665 }
0x156c   :  { %v2131_v59 = vmul.f32 %v2666_v57, %v2128_v53  ;;  %v2668_v61 = vpop.eup %2667  ;;  %vm2136_vm9 = vweird.f32 %v2666_v57 }
0x156d   :  { %v2146_v52 = vmul.f32 %v2668_v61, %v2129_v56  ;;  %vm2137_vm2 = vmor %vm2135_vm10, %vm2136_vm9  ;;  %vm2151_vm4 = vweird.f32 %v2668_v61 }
0x156e   :  { %v2132_v60 = vsub.f32 1.0, %v2131_v59  ;;  %vm2152_vm6 = vmor %vm2150_vm5, %vm2151_vm4 }
0x156f   :  { %v2147_v3 = vsub.f32 1.0, %v2146_v52 }
0x1570   :  { %v2133_v62 = vmul.f32 %v2666_v57, %v2132_v60 }
0x1571   :  { %v2148_v63 = vmul.f32 %v2668_v61, %v2147_v3 }
0x1572   :  { %v2134_v1 = vadd.f32 %v2666_v57, %v2133_v62 }
0x1573   :  { %v2149_v43 = vadd.f32 %v2668_v61, %v2148_v63 }
0x1574   :  { %v2138_v6 = vsel %vm2137_vm2, %v2666_v57, %v2134_v1 }
0x1575   :  { %v2143_v46 = vsel %vm2140_vm3, %v2142_v49, %v2138_v6  ;;  %v2153_v8 = vsel %vm2152_vm6, %v2668_v61, %v2149_v43 }
0x1576   :  { %v2204_v7 = vsub.f32 1.0, %v2143_v46  ;;  %v2158_v13 = vsel %vm2155_vm7, %v2157_v9, %v2153_v8 }
0x1577   :  { %v2205_v14 = vsub.f32 1.0, %v2158_v13 }
0x1578   :  { %v2206_v11 = vmul.f32 %v2204_v7, %v3755_v41 }
0x1579   :  { %v2207_v15 = vmul.f32 %v2205_v14, %v3750_v20 }
0x15b3   :  { %v2211_v2 = vpop.permute.xlu2 %2210 }
0x15b4   :  { %v2216_v12 = vmul.f32 %v2211_v2, %v2143_v46 }
0x15b6   :  { %v2218_v55 = vadd.f32 %v2216_v12, %v2206_v11 }
0x15b8   :  { %2222 = vrot.lane.b32.xlu2 %v2218_v55, %s3227_s10 }
0x15bb   :  { %v2213_v48 = vpop.permute.xlu0 %2212 }
0x15bc   :  { %v2217_v16 = vmul.f32 %v2213_v48, %v2158_v13 }
0x15be   :  { %v2219_v17 = vadd.f32 %v2217_v16, %v2207_v15 }
0x15c0   :  { %2224 = vrot.lane.b32.xlu1 %v2219_v17, %s3227_s10 }
0x1612   :  { %v2223_v18 = vpop.permute.xlu2 %2222 }
0x1613   :  { %2228 = vst.msk [vmem:[%s3399_s5] sm:$0xff] %vm428_vm0, %v2223_v18 }
0x1632   :  { %v2225_v10 = vpop.permute.xlu1 %2224 }
0x1633   :  { %2229 = vst.msk [vmem:[%s3399_s5 + $0x8] sm:$0xff] %vm428_vm0, %v2225_v10 }
0x1634   :  { %2234 = vsyncpa [#allocation3], 1 }
0x1635   :  { %2235 = vsyncpa [#allocation5], 1 }
0x1636   :  { %2236 = vsyncpa [#allocation8], 1 }
0x1637   :  { %2237 = vsyncpa [#allocation11], 1 }
0x1638   :  { %2238 = vsyncpa [#allocation14], 1 }
0x1639   :  { %2239 = vsyncpa [#allocation17], 1 }
0x163a   :  { %2240 = vsyncpa [#allocation20], 1 }
0x163b   :  { %2241 = vsyncpa [#allocation23], 1 }
0x163c   :  { %2242 = vsyncpa [#allocation26], 1 }
0x163d   :  { %2243 = vsyncpa [#allocation29], 1 }
0x163e   :  { %2244 = vsyncpa [#allocation32], 1 }

</bundles_post_ra>
